<compile_context>
chip_gen: v7x
topology: tpu7x:2x2x1
jax: 0.10.0
libtpu: 0.0.40
codegen_flags: <defaults>
</compile_context>

<pallas_src>
import functools

import jax
import jax.numpy as jnp
from jax.experimental import pallas as pl
from jax.experimental.pallas import tpu as pltpu


# ---------------------------------------------------------------------------
# Pallas kernel: whole EdgeConv forward hot path for a tile of TN nodes.
# ---------------------------------------------------------------------------
def edgeconv_kernel(
    h_ref,        # [TN, Cin]        node features of this tile
    pnb_ref,      # [TN*K, C0]       pre-gathered bn0-folded source-node term
    theta_w_ref,  # [Cin, C0]        theta weight, bn0 scale folded in
    fc1_w_ref,    # [C0, C1]         fc1 weight, bn1 scale / K folded in
    bn1_b_ref,    # [1, C1]          bn1 shift / K (f32)
    sc_w_ref,     # [Cin, C1]        shortcut weight, sc_bn scale folded in
    sc_b_ref,     # [1, C1]          sc_bn shift (f32)
    out_ref,      # [TN, C1]
):
    tn = h_ref.shape[0]
    tk, c0 = pnb_ref.shape          # tk = tn * k
    c1 = out_ref.shape[-1]
    k = tk // tn

    h_t = h_ref[...]

    # Destination-node term theta(x_i) (bn0 scale already folded into theta_w).
    t = jnp.dot(h_t, theta_w_ref[...], preferred_element_type=jnp.float32)   # [TN, C0]

    # Source-node term (phi - theta)(x_j) + bn0 shift, gathered in the wrapper.
    p_nb = pnb_ref[...].astype(jnp.float32)                                   # [TN*K, C0]

    # Layer 0: (bn0 folded) + relu     e_ij = relu(theta_i + p_j)
    e = jnp.maximum(p_nb.reshape(tn, k, c0) + t.reshape(tn, 1, c0), 0.0)

    # Layer 1: fc1 (+ bn1/K folded) + relu
    e2 = jnp.dot(e.reshape(tk, c0).astype(fc1_w_ref.dtype), fc1_w_ref[...],
                 preferred_element_type=jnp.float32)
    e2 = jnp.maximum(e2 + bn1_b_ref[...], 0.0)                                # [TN*K, C1]

    # Mean over the K in-edges (1/K already folded into bn1) -> plain sum.
    x = e2.reshape(tn, k, c1).sum(axis=1)                                     # [TN, C1]

    # Shortcut: sc_bn(sc_linear(h))
    sc = jnp.dot(h_t, sc_w_ref[...], preferred_element_type=jnp.float32) + sc_b_ref[...]

    out_ref[...] = jnp.maximum(x + sc, 0.0).astype(out_ref.dtype)


# ---------------------------------------------------------------------------
# Wrapper: BN/mean folding + compact per-node precompute & gather in JAX,
# the rest (per-edge MLP, aggregation, shortcut, ReLUs) in Pallas.
# ---------------------------------------------------------------------------
@functools.partial(jax.jit, static_argnames=("tn", "compute_dtype"))
def edgeconv_forward(h, nbr, params, *, tn=256, compute_dtype=jnp.float32):
    """h: [N, Cin] float32, nbr: [N, K] int (src node of each in-edge)."""
    n, cin = h.shape
    k = nbr.shape[1]
    c0 = params["theta_w"].shape[1]
    c1 = params["fc1_w"].shape[1]

    tn = min(tn, n)
    assert n % tn == 0 and tn % 8 == 0, (n, tn)

    f32 = jnp.float32
    # ---- fold eval-mode BN affines and the 1/K of the mean into the weights ----
    # theta(x_i - x_j) + phi(x_j) = theta(x_i) + (phi - theta)(x_j)
    theta_eff = params["theta_w"] * params["bn0_scale"]                        # [Cin, C0]
    psi_eff = (params["phi_w"] - params["theta_w"]) * params["bn0_scale"]      # [Cin, C0]
    p = h.astype(f32) @ psi_eff + params["bn0_shift"]                          # [N, C0]
    fc1_eff = params["fc1_w"] * (params["bn1_scale"] / k)                      # mean -> sum
    bn1_b_eff = (params["bn1_shift"] / k).astype(f32)
    sc_eff = params["sc_w"] * params["sc_scale"]
    sc_b = params["sc_shift"].astype(f32)

    cd = compute_dtype
    h_c = h.astype(cd)
    theta_c, fc1_c, sc_c = theta_eff.astype(cd), fc1_eff.astype(cd), sc_eff.astype(cd)

    # One compact gather on the C0-wide per-node tensor (XLA dynamic gather);
    # the kernel never holds the full-N tensor and never builds a one-hot.
    idx = nbr.astype(jnp.int32).reshape(n * k)
    p_nb = jnp.take(p.astype(cd), idx, axis=0)                                 # [N*K, C0]

    full = lambda i: (0, 0)
    isz = jnp.dtype(cd).itemsize
    cost = pl.CostEstimate(
        flops=2 * n * k * c0 * c1 + 2 * n * cin * (c0 + c1),
        transcendentals=0,
        bytes_accessed=(n * cin + n * k * c0 + cin * c0 + c0 * c1 + cin * c1) * isz
        + n * c1 * 4 + 2 * c1 * 4,
    )

    return pl.pallas_call(
        edgeconv_kernel,
        out_shape=jax.ShapeDtypeStruct((n, c1), jnp.float32),
        grid_spec=pltpu.PrefetchScalarGridSpec(
            num_scalar_prefetch=0,
            grid=(n // tn,),
            in_specs=[
                pl.BlockSpec((tn, cin), lambda i: (i, 0)),        # h tile
                pl.BlockSpec((tn * k, c0), lambda i: (i, 0)),     # gathered p (edge-major)
                pl.BlockSpec((cin, c0), full),                    # theta_eff
                pl.BlockSpec((c0, c1), full),                     # fc1_eff
                pl.BlockSpec((1, c1), full),                      # bn1 shift
                pl.BlockSpec((cin, c1), full),                    # sc_eff
                pl.BlockSpec((1, c1), full),                      # sc shift
            ],
            out_specs=pl.BlockSpec((tn, c1), lambda i: (i, 0)),
        ),
        compiler_params=pltpu.CompilerParams(
            dimension_semantics=("parallel",),
            # Plenty for the demo; raise toward 64-100 MiB on v5e/v6e (keep well
            # under 48 MiB per-TC on v7x) when tn / channel widths are scaled up.
            vmem_limit_bytes=32 * 1024 * 1024,
        ),
        cost_estimate=cost,
    )(h_c, p_nb, theta_c, fc1_c, bn1_b_eff, sc_c, sc_b)


# ---------------------------------------------------------------------------
# Reference (plain JAX, unfolded math) for correctness checking.
# ---------------------------------------------------------------------------
def edgeconv_reference(h, nbr, params):
    x_src = jnp.take(h, nbr, axis=0)
    diff = h[:, None, :] - x_src
    e = diff @ params["theta_w"] + x_src @ params["phi_w"]
    e = jnp.maximum(e * params["bn0_scale"] + params["bn0_shift"], 0.0)
    e = e @ params["fc1_w"]
    e = jnp.maximum(e * params["bn1_scale"] + params["bn1_shift"], 0.0)
    x = jnp.mean(e, axis=1)
    sc = h @ params["sc_w"] * params["sc_scale"] + params["sc_shift"]
    return jnp.maximum(x + sc, 0.0)


# ---------------------------------------------------------------------------
# Deterministic parameter construction (mirrors EdgeConvBlock.__init__).
#   in_feat=8, out_feats=(16, 32), batch_norm=True, activation=True
#   -> theta/phi: Linear(8,16,bias=False), fcs[0]: Linear(16,32,bias=False)
#      bns: BN(16), BN(32); sc: Linear(8,32,bias=False), sc_bn: BN(32)
# ---------------------------------------------------------------------------
def make_params(key, in_feat, out_feats):
    c0, c1 = out_feats
    ks = jax.random.split(key, 8)
    eps = 1e-5

    def lin_w(k, cin, cout):
        # PyTorch Linear weight is [out, in]; kernel uses [in, out].
        w = jax.random.normal(k, (cout, cin), jnp.float32) * 0.1
        return jnp.transpose(w)

    def bn_fold(k, c):
        kg, kb, km, kv = jax.random.split(k, 4)
        gamma = 1.0 + 0.1 * jax.random.normal(kg, (c,), jnp.float32)
        beta = 0.1 * jax.random.normal(kb, (c,), jnp.float32)
        mean = 0.1 * jax.random.normal(km, (c,), jnp.float32)
        var = jnp.abs(jax.random.normal(kv, (c,), jnp.float32)) + 0.5
        scale = gamma / jnp.sqrt(var + eps)
        shift = beta - mean * scale
        return scale.reshape(1, c), shift.reshape(1, c)

    bn0_s, bn0_b = bn_fold(ks[3], c0)
    bn1_s, bn1_b = bn_fold(ks[4], c1)
    sc_s, sc_b = bn_fold(ks[5], c1)

    return {
        "theta_w": lin_w(ks[0], in_feat, c0),
        "phi_w": lin_w(ks[1], in_feat, c0),
        "fc1_w": lin_w(ks[2], c0, c1),
        "bn0_scale": bn0_s, "bn0_shift": bn0_b,
        "bn1_scale": bn1_s, "bn1_shift": bn1_b,
        "sc_w": lin_w(ks[6], in_feat, c1),
        "sc_scale": sc_s, "sc_shift": sc_b,
    }


if __name__ == "__main__":
    N, K, IN_FEAT = 256, 8, 8
    OUT_FEATS = (16, 32)
    TN = 128   # tunable node tile; grid = (N // TN,) = (2,) -> even for v7x 2-TC

    key = jax.random.PRNGKey(0)
    k_h, k_nbr, k_p = jax.random.split(key, 3)

    h = jax.random.normal(k_h, (N, IN_FEAT), jnp.float32)
    nbr = jax.random.randint(k_nbr, (N, K), 0, N, jnp.int32)
    params = make_params(k_p, IN_FEAT, OUT_FEATS)

    ref = edgeconv_reference(h, nbr, params)

    # f32 path (v5e-friendly; tight check).
    out = edgeconv_forward(h, nbr, params, tn=TN)
    out = jax.block_until_ready(out)
    assert out.shape == (N, OUT_FEATS[-1])
    assert jnp.allclose(out, ref, atol=1e-4, rtol=1e-4), "f32 kernel mismatch vs reference"

    # bf16 matmul operands (f32 accumulation / f32 BN+ReLU) -- v6e / v7x path.
    out_bf16 = edgeconv_forward(h, nbr, params, tn=TN, compute_dtype=jnp.bfloat16)
    out_bf16 = jax.block_until_ready(out_bf16)
    assert jnp.allclose(out_bf16, ref, atol=6e-2, rtol=6e-2), "bf16 kernel mismatch vs reference"

    print("KERNEL_OK")
</pallas_src>

<mosaic_0001>
module attributes {stable_mosaic.version = 11 : i64} {
  func.func @edgeconv_kernel(%arg0: i32, %arg1: memref<128x8xf32, #tpu.memory_space<vmem>>, %arg2: memref<1024x16xf32, #tpu.memory_space<vmem>>, %arg3: memref<8x16xf32, #tpu.memory_space<vmem>>, %arg4: memref<16x32xf32, #tpu.memory_space<vmem>>, %arg5: memref<1x32xf32, #tpu.memory_space<vmem>>, %arg6: memref<8x32xf32, #tpu.memory_space<vmem>>, %arg7: memref<1x32xf32, #tpu.memory_space<vmem>>, %arg8: memref<128x32xf32, #tpu.memory_space<vmem>>) attributes {dimension_semantics = [#tpu.dimension_semantics<parallel>], iteration_bounds = array<i64: 2>, scalar_prefetch = 0 : i64, scratch_operands = 0 : i64, tpu.core_type = #tpu.core_type<tc>, window_params = [{transform_indices = @transform_0, window_bounds = array<i64: 128, 8>}, {transform_indices = @transform_1, window_bounds = array<i64: 1024, 16>}, {pipeline_mode = #tpu.pipeline_mode<synchronous>, transform_indices = @transform_2, window_bounds = array<i64: 8, 16>}, {pipeline_mode = #tpu.pipeline_mode<synchronous>, transform_indices = @transform_3, window_bounds = array<i64: 16, 32>}, {pipeline_mode = #tpu.pipeline_mode<synchronous>, transform_indices = @transform_4, window_bounds = array<i64: 1, 32>}, {pipeline_mode = #tpu.pipeline_mode<synchronous>, transform_indices = @transform_5, window_bounds = array<i64: 8, 32>}, {pipeline_mode = #tpu.pipeline_mode<synchronous>, transform_indices = @transform_6, window_bounds = array<i64: 1, 32>}, {transform_indices = @transform_7, window_bounds = array<i64: 128, 32>}]} {
    %c0 = arith.constant 0 : index
    %c0_0 = arith.constant 0 : index
    %0 = vector.load %arg1[%c0, %c0_0] : memref<128x8xf32, #tpu.memory_space<vmem>>, vector<128x8xf32>
    %c0_1 = arith.constant 0 : index
    %c0_2 = arith.constant 0 : index
    %1 = vector.load %arg3[%c0_1, %c0_2] : memref<8x16xf32, #tpu.memory_space<vmem>>, vector<8x16xf32>
    %cst = arith.constant dense<0.000000e+00> : vector<128x16xf32>
    %2 = tpu.matmul %0, %1, %cst {dimension_numbers = #tpu.dot_dimension_numbers<[1], [0], [0], [1], [0, 0, 1, 1], [], []>} : vector<128x8xf32>, vector<8x16xf32>, vector<128x16xf32> -> vector<128x16xf32>
    %c0_3 = arith.constant 0 : index
    %c0_4 = arith.constant 0 : index
    %3 = vector.load %arg2[%c0_3, %c0_4] : memref<1024x16xf32, #tpu.memory_space<vmem>>, vector<1024x16xf32>
    %4 = vector.shape_cast %3 : vector<1024x16xf32> to vector<128x8x16xf32>
    %5 = vector.shape_cast %2 : vector<128x16xf32> to vector<128x1x16xf32>
    %6 = vector.broadcast %5 : vector<128x1x16xf32> to vector<128x8x16xf32>
    %7 = arith.addf %4, %6 : vector<128x8x16xf32>
    %cst_5 = arith.constant 0.000000e+00 : f32
    %8 = vector.broadcast %cst_5 : f32 to vector<128x8x16xf32>
    %9 = arith.maximumf %7, %8 : vector<128x8x16xf32>
    %10 = vector.shape_cast %9 : vector<128x8x16xf32> to vector<1024x16xf32>
    %c0_6 = arith.constant 0 : index
    %c0_7 = arith.constant 0 : index
    %11 = vector.load %arg4[%c0_6, %c0_7] : memref<16x32xf32, #tpu.memory_space<vmem>>, vector<16x32xf32>
    %cst_8 = arith.constant dense<0.000000e+00> : vector<1024x32xf32>
    %12 = tpu.matmul %10, %11, %cst_8 {dimension_numbers = #tpu.dot_dimension_numbers<[1], [0], [0], [1], [0, 0, 1, 1], [], []>} : vector<1024x16xf32>, vector<16x32xf32>, vector<1024x32xf32> -> vector<1024x32xf32>
    %c0_9 = arith.constant 0 : index
    %c0_10 = arith.constant 0 : index
    %13 = vector.load %arg5[%c0_9, %c0_10] : memref<1x32xf32, #tpu.memory_space<vmem>>, vector<1x32xf32>
    %14 = vector.broadcast %13 : vector<1x32xf32> to vector<1024x32xf32>
    %15 = arith.addf %12, %14 : vector<1024x32xf32>
    %cst_11 = arith.constant 0.000000e+00 : f32
    %16 = vector.broadcast %cst_11 : f32 to vector<1024x32xf32>
    %17 = arith.maximumf %15, %16 : vector<1024x32xf32>
    %18 = vector.shape_cast %17 : vector<1024x32xf32> to vector<128x8x32xf32>
    %cst_12 = arith.constant dense<0.000000e+00> : vector<128x32xf32>
    %19 = vector.multi_reduction <add>, %18, %cst_12 [1] : vector<128x8x32xf32> to vector<128x32xf32>
    %c0_13 = arith.constant 0 : index
    %c0_14 = arith.constant 0 : index
    %20 = vector.load %arg6[%c0_13, %c0_14] : memref<8x32xf32, #tpu.memory_space<vmem>>, vector<8x32xf32>
    %cst_15 = arith.constant dense<0.000000e+00> : vector<128x32xf32>
    %21 = tpu.matmul %0, %20, %cst_15 {dimension_numbers = #tpu.dot_dimension_numbers<[1], [0], [0], [1], [0, 0, 1, 1], [], []>} : vector<128x8xf32>, vector<8x32xf32>, vector<128x32xf32> -> vector<128x32xf32>
    %c0_16 = arith.constant 0 : index
    %c0_17 = arith.constant 0 : index
    %22 = vector.load %arg7[%c0_16, %c0_17] : memref<1x32xf32, #tpu.memory_space<vmem>>, vector<1x32xf32>
    %23 = vector.broadcast %22 : vector<1x32xf32> to vector<128x32xf32>
    %24 = arith.addf %21, %23 : vector<128x32xf32>
    %25 = arith.addf %19, %24 : vector<128x32xf32>
    %cst_18 = arith.constant 0.000000e+00 : f32
    %26 = vector.broadcast %cst_18 : f32 to vector<128x32xf32>
    %27 = arith.maximumf %25, %26 : vector<128x32xf32>
    %c0_19 = arith.constant 0 : index
    %c0_20 = arith.constant 0 : index
    %28 = vector.load %arg8[%c0_19, %c0_20] : memref<128x32xf32, #tpu.memory_space<vmem>>, vector<128x32xf32>
    tpu.vector_store %arg8[%c0_19, %c0_20], %27 {strides = array<i32>} : memref<128x32xf32, #tpu.memory_space<vmem>>, vector<128x32xf32>,
    return
  }
  func.func @transform_0(%arg0: i32) -> (i32, i32) {
    %c0_i32 = arith.constant 0 : i32
    %c0_i32_0 = arith.constant 0 : i32
    return %arg0, %c0_i32 : i32, i32
  }
  func.func @transform_1(%arg0: i32) -> (i32, i32) {
    %c0_i32 = arith.constant 0 : i32
    %c0_i32_0 = arith.constant 0 : i32
    return %arg0, %c0_i32 : i32, i32
  }
  func.func @transform_2(%arg0: i32) -> (i32, i32) {
    %c0_i32 = arith.constant 0 : i32
    %c0_i32_0 = arith.constant 0 : i32
    %c0_i32_1 = arith.constant 0 : i32
    return %c0_i32, %c0_i32_0 : i32, i32
  }
  func.func @transform_3(%arg0: i32) -> (i32, i32) {
    %c0_i32 = arith.constant 0 : i32
    %c0_i32_0 = arith.constant 0 : i32
    %c0_i32_1 = arith.constant 0 : i32
    return %c0_i32, %c0_i32_0 : i32, i32
  }
  func.func @transform_4(%arg0: i32) -> (i32, i32) {
    %c0_i32 = arith.constant 0 : i32
    %c0_i32_0 = arith.constant 0 : i32
    %c0_i32_1 = arith.constant 0 : i32
    return %c0_i32, %c0_i32_0 : i32, i32
  }
  func.func @transform_5(%arg0: i32) -> (i32, i32) {
    %c0_i32 = arith.constant 0 : i32
    %c0_i32_0 = arith.constant 0 : i32
    %c0_i32_1 = arith.constant 0 : i32
    return %c0_i32, %c0_i32_0 : i32, i32
  }
  func.func @transform_6(%arg0: i32) -> (i32, i32) {
    %c0_i32 = arith.constant 0 : i32
    %c0_i32_0 = arith.constant 0 : i32
    %c0_i32_1 = arith.constant 0 : i32
    return %c0_i32, %c0_i32_0 : i32, i32
  }
  func.func @transform_7(%arg0: i32) -> (i32, i32) {
    %c0_i32 = arith.constant 0 : i32
    %c0_i32_0 = arith.constant 0 : i32
    return %arg0, %c0_i32 : i32, i32
  }
}

</mosaic_0001>

<bundles_post_ra>
// kernel: edgeconv_forward.1
= control target key start
LH: loop header
LB: loop body
LE: loop exit
PB: predicated region body
PF: predicated region fallthrough
CT: control target
= control target key end

     0   :  { %s6258_s24 = smov 0   ;;  %s8430_s0 = inlined_call_operand.vmem [shape: f32[256,8], index: 0, kind: input, shape index: {}]   ;;  %s8431_s1 = inlined_call_operand.vmem [shape: f32[2048,16], index: 1, kind: input, shape index: {}]   ;;  %s8432_s2 = inlined_call_operand.vmem [shape: f32[8,16], index: 2, kind: input, shape index: {}]   ;;  %s8433_s3 = inlined_call_operand.vmem [shape: f32[16,32], index: 3, kind: input, shape index: {}]   ;;  %s8434_s4 = inlined_call_operand.vmem [shape: f32[1,32], index: 4, kind: input, shape index: {}]   ;;  %s8435_s5 = inlined_call_operand.vmem [shape: f32[8,32], index: 5, kind: input, shape index: {}]   ;;  %s8436_s6 = inlined_call_operand.vmem [shape: f32[1,32], index: 6, kind: input, shape index: {}]   ;;  %s8437_s7 = inlined_call_operand.vmem [shape: f32[256,32], index: 7, kind: output, shape index: {}]  }
   0x1 LB: > { %s5587_s25 = sadd.s32 4294967295, %s6215_s24   ;;  %p5591_p0 = scmp.ge.s32.totalorder %s6215_s24, 1  ;;  %s6215_s24 = sphi %s6258_s24, %s17_s24  }
   0x2   : > { %p249_p1 = scmp.lt.s32.totalorder %s6215_s24, 3 }
   0x4   : > { %p250_p2 = pnand %p5591_p0, %p249_p1 }
   0x6   : > { %253 = sbr.rel (%p250_p2) target bundleno = 924 (0x39c), region = 48 }
   0xd   : > { %v320_v0 = vld [vmem:[%s8432_s2] sm:$0xff]  ;;  %s5592_s28 = sshll.u32 %s5587_s25, 4  ;;  %vm321_vm0 = vcmask 64512   ;;  %v2340_v18 = vld [vmem:[%s8433_s3 + $0x8] sm:$0xff]  ;;  %v6217_v21 = vmov 1966171168   ;;  %v663_v23 = vlaneseq }
   0xe   : > { %5926 = vmatprep.subr.mxu0 %v320_v0  ;;  %p287_p3 = scmp.lt.s32.totalorder %s5592_s28, 31  ;;  %v2339_v17 = vld [vmem:[%s8433_s3] sm:$0xff]  ;;  %v661_v22 = vunpack.c.l.s4 %v6217_v21  ;;  %s5594_s16 = sshll.u32 %s5587_s25, 7  ;;  %vm2348_vm1 = vcmask 130048   ;;  %vm3566_vm2 = vcmask 261120   ;;  %vm5257_vm3 = vcmask 1041409  }
   0xf   : > { %5927 = vmatpush3.msra.mxu0 %v320_v0  ;;  %v6174_v19 = vpack.c.bf16 %v2340_v18, %v2339_v17  ;;  %v6322_v20 = vld [vmem:[%s8435_s5] sm:$0xff]  ;;  %v664_v26 = vshrl.u32 %v663_v23, 7  ;;  %p293_p4 = scmp.lt.s32.totalorder %s5594_s16, 255  ;;  %vm5260_vm4 = vcmask 1042434   ;;  %vm5263_vm5 = vcmask 1043459  }
  0x10   : > { %s8663_s28 = smov (!%p287_p3, %s5592_s28), 31  ;;  %v662_v25 = vunpack.c.0.s8 %v661_v22  ;;  %vm5266_vm6 = vcmask 1044484   ;;  %vm5269_vm7 = vcmask 1045509   ;;  %vm5272_vm8 = vcmask 1046534  }
  0x11   : > { %s5593_s29 = sshll.u32 %s8663_s28, 3  ;;  %6175 = vmatprep.subr.bf16.mxu0 %v6174_v19  ;;  %6178 = vmatprep.subr.bf16.mxu1 %v6174_v19  ;;  %s8665_s16 = smov (!%p293_p4, %s5594_s16), 255  ;;  %v6342_v45 = vsub.s32 0, %v664_v26  ;;  %vm5275_vm9 = vcmask 1047559  }
  0x12   : > { %s6279_s9 = scalar_lea.vmem %s8430_s0, %s5593_s29  ;;  %6179 = vmatpush3.bf16.msra.mxu1 %v6174_v19  ;;  %v6327_v29 = vsub.s32 %v662_v25, %v664_v26  ;;  %s5595_s17 = sshll.u32 %s8665_s16, 3 }
  0x13   : > { %v304_v1 = vld [vmem:[%s6279_s9] sm:$0xff]  ;;  %v305_v2 = vld [vmem:[%s6279_s9 + $0x8] sm:$0xff]  ;;  %v306_v3 = vld [vmem:[%s6279_s9 + $0x10] sm:$0xff]  ;;  %s6354_s20 = scalar_lea.vmem %s8431_s1, %s5595_s17 }
  0x14   : > { %5928 = vmatprep.mubr.msk.f32.mxu0 %vm321_vm0, %v304_v1  ;;  %v307_v4 = vld [vmem:[%s6279_s9 + $0x18] sm:$0xff]  ;;  %v308_v5 = vld [vmem:[%s6279_s9 + $0x20] sm:$0xff]  ;;  %v309_v6 = vld [vmem:[%s6279_s9 + $0x28] sm:$0xff] }
  0x15   : > { %5929 = vmatmul.mubr.msk.f32.vlgmr.msra.gmra.mrb[0].mxu0 %vm321_vm0, %v305_v2  ;;  %v310_v7 = vld [vmem:[%s6279_s9 + $0x30] sm:$0xff]  ;;  %v311_v8 = vld [vmem:[%s6279_s9 + $0x38] sm:$0xff]  ;;  %v312_v9 = vld [vmem:[%s6279_s9 + $0x40] sm:$0xff] }
  0x16   : > { %5931 = vmatprep.mubr.msk.f32.mxu0 %vm321_vm0, %v306_v3  ;;  %v313_v10 = vld [vmem:[%s6279_s9 + $0x48] sm:$0xff]  ;;  %v314_v11 = vld [vmem:[%s6279_s9 + $0x50] sm:$0xff]  ;;  %v315_v12 = vld [vmem:[%s6279_s9 + $0x58] sm:$0xff]  ;;  %6177 = vmatpush3.bf16.msra.mxu0 %v6174_v19 }
  0x17   : > { %v316_v13 = vld [vmem:[%s6279_s9 + $0x60] sm:$0xff]  ;;  %v317_v14 = vld [vmem:[%s6279_s9 + $0x68] sm:$0xff]  ;;  %v318_v15 = vld [vmem:[%s6279_s9 + $0x70] sm:$0xff]  ;;  %6148 = vmatprep.subr.mxu0 %v6322_v20 }
  0x18   : > { %v319_v16 = vld [vmem:[%s6279_s9 + $0x78] sm:$0xff]  ;;  %v523_v59 = vld [vmem:[%s6354_s20 + $0x40] sm:$0xff]  ;;  %v565_v3 = vld [vmem:[%s6354_s20 + $0x190] sm:$0xff] }
  0x19   : > { %5932 = vmatmul.mubr.msk.f32.gmra.mrb[2].mxu0 %vm321_vm0, %v307_v4 }
  0x1a   : > { %5934 = vmatprep.mubr.msk.f32.mxu0 %vm321_vm0, %v308_v5 }
  0x1d   : > { %5935 = vmatmul.mubr.msk.f32.gmra.mrb[4].mxu0 %vm321_vm0, %v309_v6 }
  0x1e   : > { %5937 = vmatprep.mubr.msk.f32.mxu0 %vm321_vm0, %v310_v7 }
  0x21   : > { %5938 = vmatmul.mubr.msk.f32.gmra.mrb[6].mxu0 %vm321_vm0, %v311_v8 }
  0x22   : > { %5940 = vmatprep.mubr.msk.f32.mxu0 %vm321_vm0, %v312_v9 }
  0x25   : > { %5941 = vmatmul.mubr.msk.f32.gmra.mrb[8].mxu0 %vm321_vm0, %v313_v10  ;;  %v516_v10 = vld [vmem:[%s6354_s20 + $0x8] sm:$0xff] }
  0x26   : > { %5943 = vmatprep.mubr.msk.f32.mxu0 %vm321_vm0, %v314_v11 }
  0x29   : > { %5944 = vmatmul.mubr.msk.f32.gmra.mrb[10].mxu0 %vm321_vm0, %v315_v12 }
  0x2a   : > { %5946 = vmatprep.mubr.msk.f32.mxu0 %vm321_vm0, %v316_v13 }
  0x2d   : > { %5947 = vmatmul.mubr.msk.f32.gmra.mrb[12].mxu0 %vm321_vm0, %v317_v14 }
  0x2e   : > { %5949 = vmatprep.mubr.msk.f32.mxu0 %vm321_vm0, %v318_v15 }
  0x31   : > { %5950 = vmatmul.mubr.msk.f32.gmra.mrb[14].mxu0 %vm321_vm0, %v319_v16  ;;  %v515_v16 = vld [vmem:[%s6354_s20] sm:$0xff] }
  0xe8   : > { %v5930_v24 = vpop.f32.mrb[0].mxu0 }
  0xe9   : > { %v436_v27 = vpop.f32.mrb[1].mxu0  ;;  %v708_v31 = vcombine.high %v5930_v24, %v5930_v24  ;;  %v715_v33 = vrot.slane %v5930_v24, %v6327_v29 }
  0xea   : > { %v659_v35 = vcombine.high %v436_v27, %v436_v27  ;;  %v666_v36 = vrot.slane %v436_v27, %v6327_v29 }
  0xeb   : > { %v722_v37 = vrot.slane %v708_v31, %v6327_v29  ;;  %v723_v39 = vcombine.high %v715_v33, %v715_v33  ;;  %v731_v41 = vrot.slane %v715_v33, %v6327_v29 }
  0xec   : > { %v5933_v28 = vpop.f32.mrb[2].mxu0  ;;  %v673_v42 = vrot.slane %v659_v35, %v6327_v29  ;;  %v674_v43 = vcombine.high %v666_v36, %v666_v36  ;;  %v682_v56 = vrot.slane %v666_v36, %v6327_v29 }
  0xed   : > { %v446_v30 = vpop.f32.mrb[3].mxu0  ;;  %v724_v44 = vcombine.high %v722_v37, %v722_v37  ;;  %v6347_v47 = vrot.slane %v723_v39, %v6327_v29  ;;  %v6357_v49 = vrot.slane %v722_v37, %v6327_v29  ;;  %v753_v50 = vcombine.high %v731_v41, %v731_v41 }
  0xee   : > { %v675_v51 = vcombine.high %v673_v42, %v673_v42  ;;  %v696_v52 = vrot.slane %v674_v43, %v6327_v29  ;;  %v806_v53 = vcombine.high %v5933_v28, %v5933_v28  ;;  %v1478_v55 = vrot.slane %v731_v41, %v6342_v45 }
  0xef   : > { %v6361_v54 = vrot.slane %v724_v44, %v6327_v29  ;;  %v813_v57 = vrot.slane %v5933_v28, %v6327_v29  ;;  %v755_v60 = vcombine.high %v6347_v47, %v6347_v47  ;;  %v6372_v61 = vrot.slane %v673_v42, %v6327_v29 }
  0xf0   : > { %v6329_v32 = vpop.f32.mrb[4].mxu0  ;;  %v757_v62 = vcombine.high %v446_v30, %v446_v30  ;;  %v754_v0 = vcombine.high %v6357_v49, %v6357_v49  ;;  %v6381_v2 = vrot.slane %v753_v50, %v6342_v45  ;;  %v6386_v4 = vrot.slane %v675_v51, %v6327_v29 }
  0xf1   : > { %v6332_v34 = vpop.f32.mrb[5].mxu0  ;;  %v1450_v5 = vrot.slane %v696_v52, %v6342_v45  ;;  %v820_v6 = vrot.slane %v806_v53, %v6327_v29  ;;  %v764_v7 = vrot.slane %v446_v30, %v6327_v29  ;;  %v6393_v9 = vadd.f32 %v1478_v55, %v523_v59  ;;  %v539_v53 = vld [vmem:[%s6354_s20 + $0xc0] sm:$0xff] }
  0xf2   : > { %v1446_v11 = vrot.slane %v682_v56, %v6342_v45  ;;  %v821_v12 = vcombine.high %v813_v57, %v813_v57  ;;  %v6400_v14 = vrot.slane %v755_v60, %v6342_v45  ;;  %v704_v17 = vcombine.high %v682_v56, %v682_v56 }
  0xf3   : > { %v771_v18 = vrot.slane %v757_v62, %v6327_v29  ;;  %v6409_v21 = vrot.slane %v754_v0, %v6342_v45  ;;  %v705_v22 = vcombine.high %v6372_v61, %v6372_v61  ;;  %v706_v23 = vcombine.high %v696_v52, %v696_v52 }
  0xf4   : > { %v6336_v38 = vpop.f32.mrb[6].mxu0  ;;  %v829_v24 = vrot.slane %v813_v57, %v6327_v29  ;;  %v707_v25 = vcombine.high %v6386_v4, %v6386_v4  ;;  %v2084_v26 = vadd.f32 %v1450_v5, %v516_v10  ;;  %v822_v27 = vcombine.high %v820_v6, %v820_v6 }
  0xf5   : > { %v6338_v40 = vpop.f32.mrb[7].mxu0  ;;  %v772_v28 = vcombine.high %v764_v7, %v764_v7  ;;  %v1462_v30 = vrot.slane %v6372_v61, %v6342_v45  ;;  %v2083_v31 = vadd.f32 %v1446_v11, %v515_v16  ;;  %v6419_v33 = vrot.slane %v820_v6, %v6327_v29 }
  0xf6   : > { %v6422_v35 = vrot.slane %v821_v12, %v6327_v29  ;;  %v1454_v36 = vrot.slane %v704_v17, %v6342_v45  ;;  %v1466_v37 = vrot.slane %v6386_v4, %v6342_v45  ;;  %v773_v39 = vcombine.high %v771_v18, %v771_v18 }
  0xf7   : > { %v780_v41 = vrot.slane %v764_v7, %v6327_v29  ;;  %v1458_v42 = vrot.slane %v706_v23, %v6342_v45  ;;  %v851_v43 = vcombine.high %v829_v24, %v829_v24  ;;  %v1542_v44 = vrot.slane %v829_v24, %v6342_v45 }
  0xf8   : > { %v6344_v46 = vpop.f32.mrb[8].mxu0  ;;  %v6431_v50 = vrot.slane %v771_v18, %v6327_v29  ;;  %v6434_v51 = vrot.slane %v705_v22, %v6342_v45  ;;  %v2212_v52 = vmax.f32 %v2084_v26, 0.0  ;;  %v6438_v55 = vrot.slane %v822_v27, %v6327_v29  ;;  %v531_v26 = vld [vmem:[%s6354_s20 + $0x80] sm:$0xff] }
  0xf9   : > { %v6349_v48 = vpop.f32.mrb[9].mxu0  ;;  %v6441_v56 = vrot.slane %v772_v28, %v6327_v29  ;;  %v852_v57 = vcombine.high %v6419_v33, %v6419_v33  ;;  %v853_v59 = vcombine.high %v6422_v35, %v6422_v35  ;;  %v904_v60 = vcombine.high %v6329_v32, %v6329_v32  ;;  %v520_v28 = vld [vmem:[%s6354_s20 + $0x28] sm:$0xff] }
  0xfa   : > { %v2211_v62 = vmax.f32 %v2083_v31, 0.0  ;;  %v6452_v5 = vrot.slane %v773_v39, %v6327_v29  ;;  %v802_v6 = vcombine.high %v780_v41, %v780_v41  ;;  %v911_v7 = vrot.slane %v6329_v32, %v6327_v29 }
  0xfb   : > { %v6459_v11 = vrot.slane %v851_v43, %v6342_v45  ;;  %v6461_v12 = vadd.f32 %v1542_v44, %v539_v53  ;;  %v803_v16 = vcombine.high %v6431_v50, %v6431_v50  ;;  %v804_v32 = vcombine.high %v6441_v56, %v6441_v56 }
  0xfc   : > { %v6366_v58 = vpop.f32.mrb[10].mxu0  ;;  %5956 = vmatprep.mubr.msk.f32.mxu0 %vm2348_vm1, %v2211_v62  ;;  %v1510_v22 = vrot.slane %v780_v41, %v6342_v45  ;;  %v6475_v23 = vrot.slane %v853_v59, %v6342_v45  ;;  %v6478_v24 = vrot.slane %v852_v57, %v6342_v45  ;;  %v6489_v39 = vrot.slane %v802_v6, %v6342_v45  ;;  %v517_v57 = vld [vmem:[%s6354_s20 + $0x10] sm:$0xff]  ;;  %v518_v59 = vld [vmem:[%s6354_s20 + $0x18] sm:$0xff]  ;;  %v519_v62 = vld [vmem:[%s6354_s20 + $0x20] sm:$0xff] }
  0xfd   : > { %v6374_v63 = vpop.f32.mrb[11].mxu0  ;;  %5957 = vmatmul.mubr.msk.f32.vlgmr.msra.gmra.mrb[16].mxu0 %vm2348_vm1, %v2212_v52  ;;  %v953_v41 = vcombine.high %v6338_v40, %v6338_v40  ;;  %v960_v43 = vrot.slane %v6338_v40, %v6327_v29  ;;  %v6498_v52 = vrot.slane %v803_v16, %v6342_v45  ;;  %v919_v53 = vcombine.high %v911_v7, %v911_v7 }
  0xfe   : > { %6149 = vmatpush3.msra.mxu0 %v6322_v20  ;;  %v6501_v20 = vrot.slane %v904_v60, %v6327_v29  ;;  %v6509_v17 = vrot.slane %v804_v32, %v6342_v45  ;;  %v6511_v40 = vadd.f32 %v1510_v22, %v531_v26  ;;  %v6514_v18 = vrot.slane %v911_v7, %v6327_v29 }
  0xff   : > { %v855_v60 = vcombine.high %v6332_v34, %v6332_v34  ;;  %v6522_v0 = vrot.slane %v6332_v34, %v6327_v29  ;;  %v967_v32 = vrot.slane %v953_v41, %v6327_v29  ;;  %v968_v22 = vcombine.high %v960_v43, %v960_v43 }
 0x100   : > { %v6397_v13 = vpop.f32.mrb[12].mxu0  ;;  %v976_v26 = vrot.slane %v960_v43, %v6327_v29  ;;  %v2085_v7 = vadd.f32 %v1454_v36, %v517_v57  ;;  %v2086_v31 = vadd.f32 %v1458_v42, %v518_v59  ;;  %v2087_v44 = vadd.f32 %v1462_v30, %v519_v62  ;;  %v521_v36 = vld [vmem:[%s6354_s20 + $0x30] sm:$0xff] }
 0x101   : > { %v6406_v19 = vpop.f32.mrb[13].mxu0  ;;  %v920_v34 = vcombine.high %v6501_v20, %v6501_v20  ;;  %v6536_v27 = vrot.slane %v6501_v20, %v6327_v29  ;;  %v6539_v41 = vrot.slane %v919_v53, %v6327_v29  ;;  %v990_v43 = vrot.slane %v968_v22, %v6327_v29  ;;  %v564_v53 = vld [vmem:[%s6354_s20 + $0x188] sm:$0xff] }
 0x102   : > { %v969_v42 = vcombine.high %v967_v32, %v967_v32  ;;  %v983_v61 = vrot.slane %v967_v32, %v6327_v29  ;;  %v998_v57 = vcombine.high %v976_v26, %v976_v26  ;;  %v2213_v30 = vmax.f32 %v2085_v7, 0.0 }
 0x103   : > { %v1000_v59 = vcombine.high %v990_v43, %v990_v43  ;;  %v1642_v62 = vrot.slane %v990_v43, %v6342_v45  ;;  %v2214_v8 = vmax.f32 %v2086_v31, 0.0  ;;  %v2088_v20 = vadd.f32 %v1466_v37, %v520_v28 }
 0x104   : > { %v6506_v6 = vpop.f32.mrb[14].mxu0  ;;  %v1009_v22 = vrot.slane %v6336_v38, %v6327_v29  ;;  %v1646_v15 = vrot.slane %v998_v57, %v6342_v45  ;;  %5959 = vmatprep.mubr.msk.f32.mxu0 %vm2348_vm1, %v2213_v30  ;;  %v2215_v32 = vmax.f32 %v2087_v44, 0.0  ;;  %v2089_v7 = vadd.f32 %v6434_v51, %v521_v36  ;;  %v563_v57 = vld [vmem:[%s6354_s20 + $0x180] sm:$0xff]  ;;  %v522_v44 = vld [vmem:[%s6354_s20 + $0x38] sm:$0xff] }
 0x105   : > { %8440 = vst [vmem:[#allocation2_spill] sm:$0xff] %v6506_v6  ;;  %v6518_v16 = vpop.f32.mrb[15].mxu0  ;;  %v6560_v37 = vrot.slane %v855_v60, %v6327_v29  ;;  %5960 = vmatmul.mubr.msk.f32.gmra.mrb[18].mxu0 %vm2348_vm1, %v2214_v8  ;;  %v997_v51 = vrot.slane %v969_v42, %v6327_v29  ;;  %v1638_v36 = vrot.slane %v976_v26, %v6342_v45  ;;  %v2216_v43 = vmax.f32 %v2088_v20, 0.0  ;;  %v524_v6 = vld [vmem:[%s6354_s20 + $0x48] sm:$0xff]  ;;  %v566_v26 = vld [vmem:[%s6354_s20 + $0x198] sm:$0xff] }
 0x106   : > { %8441 = vst [vmem:[#allocation3_spill] sm:$0xff] %v6518_v16  ;;  %5962 = vmatprep.mubr.msk.f32.mxu0 %vm2348_vm1, %v2215_v32  ;;  %v1474_v60 = vrot.slane %v707_v25, %v6342_v45  ;;  %v2132_v30 = vadd.f32 %v1642_v62, %v564_v53  ;;  %v999_v31 = vcombine.high %v983_v61, %v983_v61  ;;  %v2217_v42 = vmax.f32 %v2089_v7, 0.0  ;;  %v525_v62 = vld [vmem:[%s6354_s20 + $0x50] sm:$0xff] }
 0x107   : > { %v1650_v8 = vrot.slane %v1000_v59, %v6342_v45  ;;  %v2133_v28 = vadd.f32 %v1646_v15, %v565_v3  ;;  %v1654_v10 = vrot.slane %v983_v61, %v6342_v45  ;;  %v2131_v1 = vadd.f32 %v1638_v36, %v563_v57  ;;  %v567_v3 = vld [vmem:[%s6354_s20 + $0x1a0] sm:$0xff]  ;;  %v526_v36 = vld [vmem:[%s6354_s20 + $0x58] sm:$0xff] }
 0x108   : > { %v2090_v32 = vadd.f32 %v1474_v60, %v522_v44  ;;  %v6579_v16 = vrot.slane %v920_v34, %v6327_v29  ;;  %v950_v4 = vcombine.high %v6536_v27, %v6536_v27  ;;  %v1017_v25 = vcombine.high %v1009_v22, %v1009_v22 }
 0x109   : > { %5963 = vmatmul.mubr.msk.f32.gmra.mrb[20].mxu0 %vm2348_vm1, %v2216_v43  ;;  %v2260_v59 = vmax.f32 %v2132_v30, 0.0  ;;  %v1025_v15 = vrot.slane %v1009_v22, %v6327_v29  ;;  %v1001_v61 = vcombine.high %v997_v51, %v997_v51  ;;  %v2259_v20 = vmax.f32 %v2131_v1, 0.0 }
 0x10a   : > { %5965 = vmatprep.mubr.msk.f32.mxu0 %vm2348_vm1, %v2217_v42  ;;  %v2261_v53 = vmax.f32 %v2133_v28, 0.0  ;;  %v1658_v34 = vrot.slane %v997_v51, %v6342_v45  ;;  %v2218_v7 = vmax.f32 %v2090_v32, 0.0  ;;  %v8442_v57 = vrot.slane %v6347_v47, %v6342_v45  ;;  %v568_v51 = vld [vmem:[%s6354_s20 + $0x1a8] sm:$0xff]  ;;  %v571_v42 = vld [vmem:[%s6354_s20 + $0x1c0] sm:$0xff] }
 0x10b   : > { %v2134_v44 = vadd.f32 %v1650_v8, %v566_v26  ;;  %v1662_v60 = vrot.slane %v999_v31, %v6342_v45  ;;  %6028 = vmatprep.mubr.msk.f32.mxu1 %vm2348_vm1, %v2259_v20  ;;  %v2219_v22 = vmax.f32 %v6393_v9, 0.0  ;;  %v2093_v1 = vadd.f32 %v6381_v2, %v525_v62  ;;  %v527_v9 = vld [vmem:[%s6354_s20 + $0x60] sm:$0xff]  ;;  %v569_v2 = vld [vmem:[%s6354_s20 + $0x1b0] sm:$0xff] }
 0x10c   : > { %v2092_v43 = vadd.f32 %v8442_v57, %v524_v6  ;;  %v2135_v28 = vadd.f32 %v1654_v10, %v567_v3  ;;  %v951_v30 = vcombine.high %v6539_v41, %v6539_v41  ;;  %v8443_v47 = vcombine.high %v6336_v38, %v6336_v38  ;;  %6029 = vmatmul.mubr.msk.f32.vlgmr.msra.gmra.mrb[0].mxu1 %vm2348_vm1, %v2260_v59  ;;  %v528_v57 = vld [vmem:[%s6354_s20 + $0x68] sm:$0xff] }
 0x10d   : > { %v6605_v8 = vrot.slane %v1017_v25, %v6327_v29  ;;  %5966 = vmatmul.mubr.msk.f32.gmra.mrb[22].mxu0 %vm2348_vm1, %v2218_v7  ;;  %v1047_v10 = vcombine.high %v1025_v15, %v1025_v15  ;;  %v1670_v31 = vrot.slane %v1025_v15, %v6342_v45  ;;  %6031 = vmatprep.mubr.msk.f32.mxu1 %vm2348_vm1, %v2261_v53  ;;  %v2262_v26 = vmax.f32 %v2134_v44, 0.0 }
 0x10e   : > { %v1016_v6 = vrot.slane %v8443_v47, %v6327_v29  ;;  %5968 = vmatprep.mubr.msk.f32.mxu0 %vm2348_vm1, %v2219_v22  ;;  %v2094_v38 = vadd.f32 %v6400_v14, %v526_v36  ;;  %v2220_v32 = vmax.f32 %v2092_v43, 0.0  ;;  %v2136_v25 = vadd.f32 %v1658_v34, %v568_v51  ;;  %v570_v22 = vld [vmem:[%s6354_s20 + $0x1b8] sm:$0xff] }
 0x10f   : > { %v1666_v59 = vrot.slane %v1001_v61, %v6342_v45  ;;  %v2221_v62 = vmax.f32 %v2093_v1, 0.0  ;;  %v2263_v3 = vmax.f32 %v2135_v28, 0.0  ;;  %v8444_v20 = vrot.slane %v6357_v49, %v6342_v45  ;;  %v529_v61 = vld [vmem:[%s6354_s20 + $0x70] sm:$0xff] }
 0x110   : > { %v2137_v15 = vadd.f32 %v1662_v60, %v569_v2  ;;  %v1610_v53 = vrot.slane %v6539_v41, %v6342_v45  ;;  %v1018_v14 = vcombine.high %v1016_v6, %v1016_v6  ;;  %v6625_v36 = vrot.slane %v1016_v6, %v6327_v29  ;;  %6032 = vmatmul.mubr.msk.f32.gmra.mrb[2].mxu1 %vm2348_vm1, %v2262_v26 }
 0x111   : > { %v2095_v7 = vadd.f32 %v8444_v20, %v527_v9  ;;  %5969 = vmatmul.mubr.msk.f32.gmra.mrb[24].mxu0 %vm2348_vm1, %v2220_v32  ;;  %v1674_v49 = vrot.slane %v6605_v8, %v6342_v45  ;;  %v1678_v34 = vrot.slane %v1047_v10, %v6342_v45  ;;  %v2139_v43 = vadd.f32 %v1670_v31, %v571_v42  ;;  %v530_v31 = vld [vmem:[%s6354_s20 + $0x78] sm:$0xff]  ;;  %v572_v42 = vld [vmem:[%s6354_s20 + $0x1c8] sm:$0xff] }
 0x112   : > { %5971 = vmatprep.mubr.msk.f32.mxu0 %vm2348_vm1, %v2221_v62  ;;  %6034 = vmatprep.mubr.msk.f32.mxu1 %vm2348_vm1, %v2263_v3  ;;  %v2222_v44 = vmax.f32 %v2094_v38, 0.0  ;;  %v2264_v60 = vmax.f32 %v2136_v25, 0.0  ;;  %v8445_v1 = vrot.slane %v6361_v54, %v6342_v45  ;;  %v2138_v51 = vadd.f32 %v1666_v59, %v570_v22 }
 0x113   : > { %v8446_v47 = vcombine.high %v6361_v54, %v6361_v54  ;;  %v2223_v9 = vmax.f32 %v2095_v7, 0.0  ;;  %v2265_v2 = vmax.f32 %v2137_v15, 0.0  ;;  %v2097_v10 = vadd.f32 %v6409_v21, %v529_v61  ;;  %v573_v21 = vld [vmem:[%s6354_s20 + $0x1d0] sm:$0xff]  ;;  %v532_v61 = vld [vmem:[%s6354_s20 + $0x88] sm:$0xff] }
 0x114   : > { %v2096_v28 = vadd.f32 %v8445_v1, %v528_v57  ;;  %v1058_v38 = vrot.slane %v6349_v48, %v6327_v29  ;;  %v871_v32 = vcombine.high %v6560_v37, %v6560_v37  ;;  %v6651_v26 = vrot.slane %v6522_v0, %v6327_v29  ;;  %6035 = vmatmul.mubr.msk.f32.gmra.mrb[4].mxu1 %vm2348_vm1, %v2264_v60  ;;  %v574_v1 = vld [vmem:[%s6354_s20 + $0x1d8] sm:$0xff] }
 0x115   : > { %v1506_v6 = vrot.slane %v8446_v47, %v6342_v45  ;;  %v1049_v54 = vcombine.high %v6605_v8, %v6605_v8  ;;  %5972 = vmatmul.mubr.msk.f32.gmra.mrb[26].mxu0 %vm2348_vm1, %v2222_v44  ;;  %v6660_v25 = vrot.slane %v6560_v37, %v6327_v29  ;;  %v6663_v59 = vrot.slane %v1018_v14, %v6327_v29 }
 0x116   : > { %v1048_v62 = vcombine.high %v6625_v36, %v6625_v36  ;;  %5974 = vmatprep.mubr.msk.f32.mxu0 %vm2348_vm1, %v2223_v9  ;;  %6037 = vmatprep.mubr.msk.f32.mxu1 %vm2348_vm1, %v2265_v2  ;;  %v2267_v8 = vmax.f32 %v2139_v43, 0.0  ;;  %v2224_v3 = vmax.f32 %v2096_v28, 0.0  ;;  %v2266_v20 = vmax.f32 %v2138_v51, 0.0  ;;  %v533_v28 = vld [vmem:[%s6354_s20 + $0x90] sm:$0xff] }
 0x117   : > { %v2098_v7 = vadd.f32 %v1506_v6, %v530_v31  ;;  %v2140_v15 = vadd.f32 %v1674_v49, %v572_v42  ;;  %v2225_v57 = vmax.f32 %v2097_v10, 0.0  ;;  %v2141_v37 = vadd.f32 %v1678_v34, %v573_v21  ;;  %v534_v10 = vld [vmem:[%s6354_s20 + $0x98] sm:$0xff]  ;;  %v576_v21 = vld [vmem:[%s6354_s20 + $0x1e8] sm:$0xff] }
 0x118   : > { %v1051_v22 = vcombine.high %v6349_v48, %v6349_v48  ;;  %v1066_v14 = vcombine.high %v1058_v38, %v1058_v38  ;;  %v8447_v44 = vcombine.high %v6522_v0, %v6522_v0  ;;  %v1682_v43 = vrot.slane %v1049_v54, %v6342_v45  ;;  %6038 = vmatmul.mubr.msk.f32.gmra.mrb[6].mxu1 %vm2348_vm1, %v2266_v20 }
 0x119   : > { %v1686_v49 = vrot.slane %v6625_v36, %v6342_v45  ;;  %5975 = vmatmul.mubr.msk.f32.gmra.mrb[28].mxu0 %vm2348_vm1, %v2224_v3  ;;  %v1050_v48 = vcombine.high %v6663_v59, %v6663_v59  ;;  %v1690_v34 = vrot.slane %v6663_v59, %v6342_v45  ;;  %6040 = vmatprep.mubr.msk.f32.mxu1 %vm2348_vm1, %v2267_v8  ;;  %v575_v36 = vld [vmem:[%s6354_s20 + $0x1e0] sm:$0xff]  ;;  %v2226_v47 = vmax.f32 %v2098_v7, 0.0  ;;  %v577_v3 = vld [vmem:[%s6354_s20 + $0x1f0] sm:$0xff] }
 0x11a   : > { %v6676_v60 = vrot.slane %v8447_v44, %v6327_v29  ;;  %5977 = vmatprep.mubr.msk.f32.mxu0 %vm2348_vm1, %v2225_v57  ;;  %v1074_v0 = vrot.slane %v1058_v38, %v6327_v29  ;;  %v1694_v51 = vrot.slane %v1048_v62, %v6342_v45  ;;  %v2268_v6 = vmax.f32 %v2140_v15, 0.0  ;;  %v579_v15 = vld [vmem:[%s6354_s20 + $0x200] sm:$0xff] }
 0x11b   : > { %v8448_v9 = vrot.slane %v6441_v56, %v6342_v45  ;;  %v2227_v31 = vmax.f32 %v6511_v40, 0.0  ;;  %v2269_v42 = vmax.f32 %v2141_v37, 0.0  ;;  %v1065_v38 = vrot.slane %v1051_v22, %v6327_v29  ;;  %v535_v56 = vld [vmem:[%s6354_s20 + $0xa0] sm:$0xff] }
 0x11c   : > { %v1088_v54 = vrot.slane %v1066_v14, %v6327_v29  ;;  %6041 = vmatmul.mubr.msk.f32.gmra.mrb[8].mxu1 %vm2348_vm1, %v2268_v6  ;;  %v2142_v59 = vadd.f32 %v1682_v43, %v574_v1  ;;  %v2101_v62 = vadd.f32 %v6489_v39, %v533_v28  ;;  %v2143_v8 = vadd.f32 %v1686_v49, %v575_v36  ;;  %v536_v49 = vld [vmem:[%s6354_s20 + $0xa8] sm:$0xff]  ;;  %v578_v1 = vld [vmem:[%s6354_s20 + $0x1f8] sm:$0xff] }
 0x11d   : > { %v2100_v2 = vadd.f32 %v8448_v9, %v532_v61  ;;  %5978 = vmatmul.mubr.msk.f32.gmra.mrb[30].mxu0 %vm2348_vm1, %v2226_v47  ;;  %v6708_v40 = vrot.slane %v871_v32, %v6327_v29  ;;  %6043 = vmatprep.mubr.msk.f32.mxu1 %vm2348_vm1, %v2269_v42  ;;  %v1702_v20 = vrot.slane %v1074_v0, %v6342_v45  ;;  %v580_v6 = vld [vmem:[%s6354_s20 + $0x208] sm:$0xff] }
 0x11e   : > { %5980 = vmatprep.mubr.msk.f32.mxu0 %vm2348_vm1, %v2227_v31  ;;  %v2102_v7 = vadd.f32 %v6509_v17, %v534_v10  ;;  %v1096_v57 = vcombine.high %v1074_v0, %v1074_v0  ;;  %v2270_v37 = vmax.f32 %v2142_v59, 0.0  ;;  %v2144_v22 = vadd.f32 %v1690_v34, %v576_v21  ;;  %v537_v34 = vld [vmem:[%s6354_s20 + $0xb0] sm:$0xff] }
 0x11f   : > { %v2228_v39 = vmax.f32 %v2100_v2, 0.0  ;;  %v2229_v14 = vmax.f32 %v2101_v62, 0.0  ;;  %v2271_v61 = vmax.f32 %v2143_v8, 0.0  ;;  %v8449_v32 = vrot.slane %v6431_v50, %v6342_v45  ;;  %v538_v62 = vld [vmem:[%s6354_s20 + $0xb8] sm:$0xff] }
 0x120   : > { %v2145_v43 = vadd.f32 %v1694_v51, %v577_v3  ;;  %v1067_v28 = vcombine.high %v1065_v38, %v1065_v38  ;;  %v1706_v36 = vrot.slane %v1088_v54, %v6342_v45  ;;  %6044 = vmatmul.mubr.msk.f32.gmra.mrb[10].mxu1 %vm2348_vm1, %v2270_v37  ;;  %v1698_v17 = vrot.slane %v1050_v48, %v6342_v45  ;;  %v581_v3 = vld [vmem:[%s6354_s20 + $0x210] sm:$0xff] }
 0x121   : > { %v2103_v44 = vadd.f32 %v8449_v32, %v535_v56  ;;  %5981 = vmatmul.mubr.msk.f32.gmra.mrb[32].mxu0 %vm2348_vm1, %v2228_v39  ;;  %v1081_v0 = vrot.slane %v1065_v38, %v6327_v29  ;;  %v1098_v47 = vcombine.high %v1088_v54, %v1088_v54  ;;  %v2147_v50 = vadd.f32 %v1702_v20, %v579_v15 }
 0x122   : > { %5983 = vmatprep.mubr.msk.f32.mxu0 %vm2348_vm1, %v2229_v14  ;;  %6046 = vmatprep.mubr.msk.f32.mxu1 %vm2348_vm1, %v2271_v61  ;;  %v2230_v51 = vmax.f32 %v2102_v7, 0.0  ;;  %v2272_v9 = vmax.f32 %v2144_v22, 0.0  ;;  %v8450_v2 = vrot.slane %v6452_v5, %v6342_v45  ;;  %v2146_v31 = vadd.f32 %v1698_v17, %v578_v1  ;;  %v540_v14 = vld [vmem:[%s6354_s20 + $0xc8] sm:$0xff] }
 0x123   : > { %v8451_v48 = vcombine.high %v6452_v5, %v6452_v5  ;;  %v1710_v38 = vrot.slane %v1096_v57, %v6342_v45  ;;  %v2231_v54 = vmax.f32 %v2103_v44, 0.0  ;;  %v2273_v21 = vmax.f32 %v2145_v43, 0.0 }
 0x124   : > { %v2104_v10 = vadd.f32 %v8450_v2, %v536_v49  ;;  %v2105_v59 = vadd.f32 %v6498_v52, %v537_v34  ;;  %v900_v8 = vcombine.high %v6651_v26, %v6651_v26  ;;  %v1107_v56 = vrot.slane %v6344_v46, %v6327_v29  ;;  %6047 = vmatmul.mubr.msk.f32.gmra.mrb[12].mxu1 %vm2348_vm1, %v2272_v9  ;;  %v582_v49 = vld [vmem:[%s6354_s20 + $0x218] sm:$0xff]  ;;  %v541_v34 = vld [vmem:[%s6354_s20 + $0xd0] sm:$0xff] }
 0x125   : > { %v1538_v42 = vrot.slane %v8451_v48, %v6342_v45  ;;  %5984 = vmatmul.mubr.msk.f32.gmra.mrb[34].mxu0 %vm2348_vm1, %v2230_v51  ;;  %v2148_v5 = vadd.f32 %v1706_v36, %v580_v6  ;;  %v901_v20 = vcombine.high %v6660_v25, %v6660_v25  ;;  %v902_v52 = vcombine.high %v6676_v60, %v6676_v60 }
 0x126   : > { %v1095_v7 = vrot.slane %v1067_v28, %v6327_v29  ;;  %5986 = vmatprep.mubr.msk.f32.mxu0 %vm2348_vm1, %v2231_v54  ;;  %6049 = vmatprep.mubr.msk.f32.mxu1 %vm2348_vm1, %v2273_v21  ;;  %v2275_v15 = vmax.f32 %v2147_v50, 0.0  ;;  %v1714_v57 = vrot.slane %v1098_v47, %v6342_v45  ;;  %v2232_v39 = vmax.f32 %v2104_v10, 0.0  ;;  %v583_v47 = vld [vmem:[%s6354_s20 + $0x220] sm:$0xff]  ;;  %v542_v21 = vld [vmem:[%s6354_s20 + $0xd8] sm:$0xff] }
 0x127   : > { %v2274_v37 = vmax.f32 %v2146_v31, 0.0  ;;  %v2106_v22 = vadd.f32 %v1538_v42, %v538_v62  ;;  %v1097_v61 = vcombine.high %v1081_v0, %v1081_v0  ;;  %v1718_v32 = vrot.slane %v1081_v0, %v6342_v45 }
 0x128   : > { %v2233_v44 = vmax.f32 %v2105_v59, 0.0  ;;  %v2149_v43 = vadd.f32 %v1710_v38, %v581_v3  ;;  %v903_v1 = vcombine.high %v6708_v40, %v6708_v40  ;;  %v1100_v28 = vcombine.high %v6344_v46, %v6344_v46  ;;  %v584_v59 = vld [vmem:[%s6354_s20 + $0x228] sm:$0xff] }
 0x129   : > { %v1115_v36 = vcombine.high %v1107_v56, %v1107_v56  ;;  %5987 = vmatmul.mubr.msk.f32.gmra.mrb[36].mxu0 %vm2348_vm1, %v2232_v39  ;;  %6050 = vmatmul.mubr.msk.f32.gmra.mrb[14].mxu1 %vm2348_vm1, %v2274_v37  ;;  %v2276_v17 = vmax.f32 %v2148_v5, 0.0  ;;  %v1574_v0 = vrot.slane %v6651_v26, %v6342_v45  ;;  %v1123_v50 = vrot.slane %v1107_v56, %v6327_v29  ;;  %v543_v56 = vld [vmem:[%s6354_s20 + $0xe0] sm:$0xff]  ;;  %v585_v5 = vld [vmem:[%s6354_s20 + $0x230] sm:$0xff] }
 0x12a   : > { %5989 = vmatprep.mubr.msk.f32.mxu0 %vm2348_vm1, %v2233_v44  ;;  %6052 = vmatprep.mubr.msk.f32.mxu1 %vm2348_vm1, %v2275_v15  ;;  %v2235_v46 = vmax.f32 %v6461_v12, 0.0  ;;  %v8452_v51 = vrot.slane %v6422_v35, %v6342_v45  ;;  %v1099_v9 = vcombine.high %v1095_v7, %v1095_v7  ;;  %v1722_v2 = vrot.slane %v1095_v7, %v6342_v45 }
 0x12b   : > { %v2234_v10 = vmax.f32 %v2106_v22, 0.0  ;;  %v2150_v31 = vadd.f32 %v1714_v57, %v582_v49  ;;  %v1726_v48 = vrot.slane %v1097_v61, %v6342_v45  ;;  %v2277_v42 = vmax.f32 %v2149_v43, 0.0  ;;  %v544_v22 = vld [vmem:[%s6354_s20 + $0xe8] sm:$0xff] }
 0x12c   : > { %v2108_v6 = vadd.f32 %v8452_v51, %v540_v14  ;;  %v2109_v38 = vadd.f32 %v6459_v11, %v541_v34  ;;  %v2151_v54 = vadd.f32 %v1718_v32, %v583_v47  ;;  %v1578_v12 = vrot.slane %v6676_v60, %v6342_v45 }
 0x12d   : > { %v1114_v35 = vrot.slane %v1100_v28, %v6327_v29  ;;  %v1137_v62 = vrot.slane %v1115_v36, %v6327_v29  ;;  %5990 = vmatmul.mubr.msk.f32.gmra.mrb[38].mxu0 %vm2348_vm1, %v2234_v10  ;;  %6053 = vmatmul.mubr.msk.f32.gmra.mrb[16].mxu1 %vm2348_vm1, %v2276_v17  ;;  %v1590_v11 = vrot.slane %v6660_v25, %v6342_v45  ;;  %v2278_v57 = vmax.f32 %v2150_v31, 0.0  ;;  %v586_v28 = vld [vmem:[%s6354_s20 + $0x238] sm:$0xff]  ;;  %v587_v36 = vld [vmem:[%s6354_s20 + $0x240] sm:$0xff] }
 0x12e   : > { %v1145_v3 = vcombine.high %v1123_v50, %v1123_v50  ;;  %v1734_v7 = vrot.slane %v1123_v50, %v6342_v45  ;;  %5992 = vmatprep.mubr.msk.f32.mxu0 %vm2348_vm1, %v2235_v46  ;;  %6055 = vmatprep.mubr.msk.f32.mxu1 %vm2348_vm1, %v2277_v42  ;;  %v2236_v15 = vmax.f32 %v2108_v6, 0.0  ;;  %v2110_v39 = vadd.f32 %v6475_v23, %v542_v21  ;;  %v545_v23 = vld [vmem:[%s6354_s20 + $0xf0] sm:$0xff]  ;;  %v547_v50 = vld [vmem:[%s6354_s20 + $0x100] sm:$0xff] }
 0x12f   : > { %v2152_v37 = vadd.f32 %v1722_v2, %v584_v59  ;;  %v1730_v14 = vrot.slane %v1099_v9, %v6342_v45  ;;  %v2237_v61 = vmax.f32 %v2109_v38, 0.0  ;;  %v2279_v32 = vmax.f32 %v2151_v54, 0.0  ;;  %v546_v59 = vld [vmem:[%s6354_s20 + $0xf8] sm:$0xff] }
 0x130   : > { %v8453_v44 = vrot.slane %v6419_v33, %v6342_v45  ;;  %v2153_v49 = vadd.f32 %v1726_v48, %v585_v5  ;;  %v1116_v17 = vcombine.high %v1114_v35, %v1114_v35  ;;  %v6801_v34 = vrot.slane %v1114_v35, %v6327_v29  ;;  %v588_v35 = vld [vmem:[%s6354_s20 + $0x248] sm:$0xff] }
 0x131   : > { %v1147_v47 = vcombine.high %v1137_v62, %v1137_v62  ;;  %5993 = vmatmul.mubr.msk.f32.gmra.mrb[40].mxu0 %vm2348_vm1, %v2236_v15  ;;  %6056 = vmatmul.mubr.msk.f32.gmra.mrb[18].mxu1 %vm2348_vm1, %v2278_v57  ;;  %v1738_v46 = vrot.slane %v1137_v62, %v6342_v45  ;;  %v1742_v33 = vrot.slane %v1145_v3, %v6342_v45  ;;  %v2238_v9 = vmax.f32 %v2110_v39, 0.0  ;;  %v548_v57 = vld [vmem:[%s6354_s20 + $0x108] sm:$0xff] }
 0x132   : > { %v2111_v43 = vadd.f32 %v8453_v44, %v543_v56  ;;  %5995 = vmatprep.mubr.msk.f32.mxu0 %vm2348_vm1, %v2237_v61  ;;  %6058 = vmatprep.mubr.msk.f32.mxu1 %vm2348_vm1, %v2279_v32  ;;  %v8454_v51 = vrot.slane %v6438_v55, %v6342_v45  ;;  %v2280_v2 = vmax.f32 %v2152_v37, 0.0  ;;  %v2154_v10 = vadd.f32 %v1730_v14, %v586_v28  ;;  %v590_v61 = vld [vmem:[%s6354_s20 + $0x258] sm:$0xff]  ;;  %v591_v28 = vld [vmem:[%s6354_s20 + $0x260] sm:$0xff] }
 0x133   : > { %v8455_v31 = vcombine.high %v6438_v55, %v6438_v55  ;;  %v2155_v42 = vadd.f32 %v1734_v7, %v587_v36  ;;  %v2281_v54 = vmax.f32 %v2153_v49, 0.0  ;;  %v2113_v21 = vadd.f32 %v6478_v24, %v545_v23  ;;  %v589_v55 = vld [vmem:[%s6354_s20 + $0x250] sm:$0xff] }
 0x134   : > { %v2112_v6 = vadd.f32 %v8454_v51, %v544_v22  ;;  %v2239_v38 = vmax.f32 %v2111_v43, 0.0  ;;  %v1582_v62 = vrot.slane %v900_v8, %v6342_v45  ;;  %v2115_v56 = vadd.f32 %v1574_v0, %v547_v50  ;;  %v549_v49 = vld [vmem:[%s6354_s20 + $0x110] sm:$0xff] }
 0x135   : > { %v1570_v48 = vrot.slane %v8455_v31, %v6342_v45  ;;  %5996 = vmatmul.mubr.msk.f32.gmra.mrb[42].mxu0 %vm2348_vm1, %v2238_v9  ;;  %6059 = vmatmul.mubr.msk.f32.gmra.mrb[20].mxu1 %vm2348_vm1, %v2280_v2  ;;  %v1156_v24 = vrot.slane %v6374_v63, %v6327_v29  ;;  %v1144_v5 = vrot.slane %v1116_v17, %v6327_v29  ;;  %v2282_v0 = vmax.f32 %v2154_v10, 0.0  ;;  %v550_v9 = vld [vmem:[%s6354_s20 + $0x118] sm:$0xff]  ;;  %v592_v2 = vld [vmem:[%s6354_s20 + $0x268] sm:$0xff]  ;;  %v551_v31 = vld [vmem:[%s6354_s20 + $0x120] sm:$0xff] }
 0x136   : > { %v1146_v3 = vcombine.high %v6801_v34, %v6801_v34  ;;  %v1746_v8 = vrot.slane %v1147_v47, %v6342_v45  ;;  %5998 = vmatprep.mubr.msk.f32.mxu0 %vm2348_vm1, %v2239_v38  ;;  %6061 = vmatprep.mubr.msk.f32.mxu1 %vm2348_vm1, %v2281_v54  ;;  %v2240_v26 = vmax.f32 %v2112_v6, 0.0  ;;  %v2156_v15 = vadd.f32 %v1738_v46, %v588_v35 }
 0x137   : > { %v2114_v7 = vadd.f32 %v1570_v48, %v546_v59  ;;  %v1750_v39 = vrot.slane %v6801_v34, %v6342_v45  ;;  %v2241_v37 = vmax.f32 %v2113_v21, 0.0  ;;  %v2283_v22 = vmax.f32 %v2155_v42, 0.0  ;;  %v593_v48 = vld [vmem:[%s6354_s20 + $0x270] sm:$0xff]  ;;  %v595_v59 = vld [vmem:[%s6354_s20 + $0x280] sm:$0xff] }
 0x138   : > { %v2157_v14 = vadd.f32 %v1742_v33, %v589_v55  ;;  %v1586_v32 = vrot.slane %v902_v52, %v6342_v45  ;;  %v1149_v44 = vcombine.high %v6374_v63, %v6374_v63  ;;  %v1164_v43 = vcombine.high %v1156_v24, %v1156_v24  ;;  %v552_v55 = vld [vmem:[%s6354_s20 + $0x128] sm:$0xff] }
 0x139   : > { %5999 = vmatmul.mubr.msk.f32.gmra.mrb[44].mxu0 %vm2348_vm1, %v2240_v26  ;;  %6062 = vmatmul.mubr.msk.f32.gmra.mrb[22].mxu1 %vm2348_vm1, %v2282_v0  ;;  %v1148_v36 = vcombine.high %v1144_v5, %v1144_v5  ;;  %v2243_v17 = vmax.f32 %v2115_v56, 0.0  ;;  %v1172_v52 = vrot.slane %v1156_v24, %v6327_v29  ;;  %v2116_v34 = vadd.f32 %v1578_v12, %v548_v57  ;;  %v594_v26 = vld [vmem:[%s6354_s20 + $0x278] sm:$0xff]  ;;  %v553_v57 = vld [vmem:[%s6354_s20 + $0x130] sm:$0xff] }
 0x13a   : > { %6001 = vmatprep.mubr.msk.f32.mxu0 %vm2348_vm1, %v2241_v37  ;;  %6064 = vmatprep.mubr.msk.f32.mxu1 %vm2348_vm1, %v2283_v22  ;;  %v1754_v63 = vrot.slane %v1144_v5, %v6342_v45  ;;  %v2242_v47 = vmax.f32 %v2114_v7, 0.0  ;;  %v2284_v23 = vmax.f32 %v2156_v15, 0.0  ;;  %v2158_v50 = vadd.f32 %v1746_v8, %v590_v61  ;;  %v555_v22 = vld [vmem:[%s6354_s20 + $0x140] sm:$0xff] }
 0x13b   : > { %v1758_v46 = vrot.slane %v1146_v3, %v6342_v45  ;;  %v2285_v33 = vmax.f32 %v2157_v14, 0.0  ;;  %v2117_v51 = vadd.f32 %v1582_v62, %v549_v49  ;;  %v2159_v6 = vadd.f32 %v1750_v39, %v591_v28 }
 0x13c   : > { %v1594_v10 = vrot.slane %v6708_v40, %v6342_v45  ;;  %v1163_v60 = vrot.slane %v1149_v44, %v6327_v29  ;;  %v1186_v12 = vrot.slane %v1164_v43, %v6327_v29  ;;  %v1598_v42 = vrot.slane %v901_v20, %v6342_v45 }
 0x13d   : > { %6002 = vmatmul.mubr.msk.f32.gmra.mrb[46].mxu0 %vm2348_vm1, %v2242_v47  ;;  %6065 = vmatmul.mubr.msk.f32.gmra.mrb[24].mxu1 %vm2348_vm1, %v2284_v23  ;;  %v1194_v38 = vcombine.high %v1172_v52, %v1172_v52  ;;  %v1766_v54 = vrot.slane %v1172_v52, %v6342_v45  ;;  %v2244_v21 = vmax.f32 %v2116_v34, 0.0  ;;  %v2286_v35 = vmax.f32 %v2158_v50, 0.0 }
 0x13e   : > { %6004 = vmatprep.mubr.msk.f32.mxu0 %vm2348_vm1, %v2243_v17  ;;  %6067 = vmatprep.mubr.msk.f32.mxu1 %vm2348_vm1, %v2285_v33  ;;  %v2118_v62 = vadd.f32 %v1586_v32, %v550_v9  ;;  %v2160_v56 = vadd.f32 %v1754_v63, %v592_v2  ;;  %v1762_v24 = vrot.slane %v1148_v36, %v6342_v45  ;;  %v2245_v5 = vmax.f32 %v2117_v51, 0.0  ;;  %v554_v17 = vld [vmem:[%s6354_s20 + $0x138] sm:$0xff] }
 0x13f   : > { %v2287_v20 = vmax.f32 %v2159_v6, 0.0  ;;  %v2119_v3 = vadd.f32 %v1590_v11, %v551_v31  ;;  %v2161_v8 = vadd.f32 %v1758_v46, %v593_v48  ;;  %v1165_v0 = vcombine.high %v1163_v60, %v1163_v60  ;;  %v596_v11 = vld [vmem:[%s6354_s20 + $0x288] sm:$0xff]  ;;  %v598_v48 = vld [vmem:[%s6354_s20 + $0x298] sm:$0xff] }
 0x140   : > { %v6886_v7 = vrot.slane %v1163_v60, %v6327_v29  ;;  %v1770_v15 = vrot.slane %v1186_v12, %v6342_v45  ;;  %v1196_v39 = vcombine.high %v1186_v12, %v1186_v12  ;;  %v2163_v37 = vadd.f32 %v1766_v54, %v595_v59  ;;  %v557_v59 = vld [vmem:[%s6354_s20 + $0x150] sm:$0xff] }
 0x141   : > { %6005 = vmatmul.mubr.msk.f32.gmra.mrb[48].mxu0 %vm2348_vm1, %v2244_v21  ;;  %6068 = vmatmul.mubr.msk.f32.gmra.mrb[26].mxu1 %vm2348_vm1, %v2286_v35  ;;  %v2120_v25 = vadd.f32 %v1594_v10, %v552_v55  ;;  %v2246_v14 = vmax.f32 %v2118_v62, 0.0  ;;  %v2288_v61 = vmax.f32 %v2160_v56, 0.0  ;;  %v2162_v32 = vadd.f32 %v1762_v24, %v594_v26  ;;  %v556_v10 = vld [vmem:[%s6354_s20 + $0x148] sm:$0xff]  ;;  %v599_v35 = vld [vmem:[%s6354_s20 + $0x2a0] sm:$0xff] }
 0x142   : > { %6007 = vmatprep.mubr.msk.f32.mxu0 %vm2348_vm1, %v2245_v5  ;;  %6070 = vmatprep.mubr.msk.f32.mxu1 %vm2348_vm1, %v2287_v20  ;;  %v1602_v44 = vrot.slane %v903_v1, %v6342_v45  ;;  %v1774_v43 = vrot.slane %v1194_v38, %v6342_v45  ;;  %v2247_v49 = vmax.f32 %v2119_v3, 0.0  ;;  %v2289_v28 = vmax.f32 %v2161_v8, 0.0  ;;  %v597_v1 = vld [vmem:[%s6354_s20 + $0x290] sm:$0xff] }
 0x143   : > { %v2121_v36 = vadd.f32 %v1598_v42, %v553_v57  ;;  %v8456_v52 = vcombine.high %v6514_v18, %v6514_v18  ;;  %v1205_v63 = vrot.slane %v6366_v58, %v6327_v29  ;;  %v2164_v40 = vadd.f32 %v1770_v15, %v596_v11  ;;  %v600_v15 = vld [vmem:[%s6354_s20 + $0x2a8] sm:$0xff] }
 0x144   : > { %v1622_v47 = vrot.slane %v6536_v27, %v6342_v45  ;;  %v8457_v23 = vrot.slane %v6514_v18, %v6342_v45  ;;  %v1193_v46 = vrot.slane %v1165_v0, %v6327_v29  ;;  %v2291_v33 = vmax.f32 %v2163_v37, 0.0  ;;  %v601_v37 = vld [vmem:[%s6354_s20 + $0x2b0] sm:$0xff] }
 0x145   : > { %v1614_v34 = vrot.slane %v8456_v52, %v6342_v45  ;;  %6008 = vmatmul.mubr.msk.f32.gmra.mrb[50].mxu0 %vm2348_vm1, %v2246_v14  ;;  %6071 = vmatmul.mubr.msk.f32.gmra.mrb[28].mxu1 %vm2348_vm1, %v2288_v61  ;;  %v1778_v51 = vrot.slane %v1196_v39, %v6342_v45  ;;  %v2248_v6 = vmax.f32 %v2120_v25, 0.0  ;;  %v2290_v9 = vmax.f32 %v2162_v32, 0.0  ;;  %v559_v39 = vld [vmem:[%s6354_s20 + $0x160] sm:$0xff] }
 0x146   : > { %v2123_v50 = vadd.f32 %v8457_v23, %v555_v22  ;;  %6010 = vmatprep.mubr.msk.f32.mxu0 %vm2348_vm1, %v2247_v49  ;;  %6073 = vmatprep.mubr.msk.f32.mxu1 %vm2348_vm1, %v2289_v28  ;;  %v2122_v2 = vadd.f32 %v1602_v44, %v554_v17  ;;  %v1195_v60 = vcombine.high %v6886_v7, %v6886_v7  ;;  %v2249_v12 = vmax.f32 %v2121_v36, 0.0  ;;  %v560_v44 = vld [vmem:[%s6354_s20 + $0x168] sm:$0xff]  ;;  %v602_v36 = vld [vmem:[%s6354_s20 + $0x2b8] sm:$0xff]  ;;  %v603_v17 = vld [vmem:[%s6354_s20 + $0x2c0] sm:$0xff] }
 0x147   : > { %v1782_v18 = vrot.slane %v6886_v7, %v6342_v45  ;;  %v2165_v31 = vadd.f32 %v1774_v43, %v597_v1  ;;  %v952_v42 = vcombine.high %v6579_v16, %v6579_v16  ;;  %v1198_v38 = vcombine.high %v6366_v58, %v6366_v58  ;;  %v558_v7 = vld [vmem:[%s6354_s20 + $0x158] sm:$0xff] }
 0x148   : > { %v1213_v54 = vcombine.high %v1205_v63, %v1205_v63  ;;  %v2292_v21 = vmax.f32 %v2164_v40, 0.0  ;;  %v1618_v62 = vrot.slane %v951_v30, %v6342_v45  ;;  %v1221_v56 = vrot.slane %v1205_v63, %v6327_v29  ;;  %v561_v40 = vld [vmem:[%s6354_s20 + $0x170] sm:$0xff] }
 0x149   : > { %6011 = vmatmul.mubr.msk.f32.gmra.mrb[52].mxu0 %vm2348_vm1, %v2248_v6  ;;  %6074 = vmatmul.mubr.msk.f32.gmra.mrb[30].mxu1 %vm2348_vm1, %v2290_v9  ;;  %v2251_v58 = vmax.f32 %v2123_v50, 0.0  ;;  %v2124_v55 = vadd.f32 %v1610_v53, %v556_v10  ;;  %v1197_v24 = vcombine.high %v1193_v46, %v1193_v46  ;;  %v1786_v5 = vrot.slane %v1193_v46, %v6342_v45 }
 0x14a   : > { %6013 = vmatprep.mubr.msk.f32.mxu0 %vm2348_vm1, %v2249_v12  ;;  %6076 = vmatprep.mubr.msk.f32.mxu1 %vm2348_vm1, %v2291_v33  ;;  %v2250_v20 = vmax.f32 %v2122_v2, 0.0  ;;  %v2166_v3 = vadd.f32 %v1778_v51, %v598_v48  ;;  %v1790_v30 = vrot.slane %v1195_v60, %v6342_v45  ;;  %v2293_v8 = vmax.f32 %v2165_v31, 0.0  ;;  %v562_v60 = vld [vmem:[%s6354_s20 + $0x178] sm:$0xff]  ;;  %v605_v12 = vld [vmem:[%s6354_s20 + $0x2d0] sm:$0xff] }
 0x14b   : > { %v2125_v26 = vadd.f32 %v1614_v34, %v557_v59  ;;  %v2167_v0 = vadd.f32 %v1782_v18, %v599_v35  ;;  %v1626_v57 = vrot.slane %v6579_v16, %v6342_v45  ;;  %v1212_v41 = vrot.slane %v1198_v38, %v6327_v29  ;;  %v604_v18 = vld [vmem:[%s6354_s20 + $0x2c8] sm:$0xff] }
 0x14c   : > { %v1235_v53 = vrot.slane %v1213_v54, %v6327_v29  ;;  %v1630_v25 = vrot.slane %v950_v4, %v6342_v45  ;;  %v1243_v11 = vcombine.high %v1221_v56, %v1221_v56  ;;  %v1798_v16 = vrot.slane %v1221_v56, %v6342_v45 }
 0x14d   : > { %6014 = vmatmul.mubr.msk.f32.gmra.mrb[54].mxu0 %vm2348_vm1, %v2250_v20  ;;  %6077 = vmatmul.mubr.msk.f32.gmra.mrb[32].mxu1 %vm2348_vm1, %v2292_v21  ;;  %v2252_v22 = vmax.f32 %v2124_v55, 0.0  ;;  %v2294_v14 = vmax.f32 %v2166_v3, 0.0  ;;  %v2126_v61 = vadd.f32 %v1618_v62, %v558_v7  ;;  %v2168_v32 = vadd.f32 %v1786_v5, %v600_v15  ;;  %v607_v20 = vld [vmem:[%s6354_s20 + $0x2e0] sm:$0xff] }
 0x14e   : > { %6016 = vmatprep.mubr.msk.f32.mxu0 %vm2348_vm1, %v2251_v58  ;;  %6079 = vmatprep.mubr.msk.f32.mxu1 %vm2348_vm1, %v2293_v8  ;;  %v1794_v43 = vrot.slane %v1197_v24, %v6342_v45  ;;  %v2253_v49 = vmax.f32 %v2125_v26, 0.0  ;;  %v2295_v27 = vmax.f32 %v2167_v0, 0.0  ;;  %v2127_v28 = vadd.f32 %v1622_v47, %v559_v39  ;;  %v606_v24 = vld [vmem:[%s6354_s20 + $0x2d8] sm:$0xff]  ;;  %v608_v39 = vld [vmem:[%s6354_s20 + $0x2e8] sm:$0xff] }
 0x14f   : > { %v2169_v4 = vadd.f32 %v1790_v30, %v601_v37  ;;  %v1214_v52 = vcombine.high %v1212_v41, %v1212_v41  ;;  %v1228_v34 = vrot.slane %v1212_v41, %v6327_v29  ;;  %v1245_v63 = vcombine.high %v1235_v53, %v1235_v53 }
 0x150   : > { %v1802_v1 = vrot.slane %v1235_v53, %v6342_v45  ;;  %v1806_v23 = vrot.slane %v1243_v11, %v6342_v45  ;;  %v2128_v47 = vadd.f32 %v1626_v57, %v560_v44  ;;  %v2254_v50 = vmax.f32 %v2126_v61, 0.0 }
 0x151   : > { %6017 = vmatmul.mubr.msk.f32.gmra.mrb[56].mxu0 %vm2348_vm1, %v2252_v22  ;;  %6080 = vmatmul.mubr.msk.f32.gmra.mrb[34].mxu1 %vm2348_vm1, %v2294_v14  ;;  %v2296_v46 = vmax.f32 %v2168_v32, 0.0  ;;  %v2170_v33 = vadd.f32 %v1794_v43, %v602_v36  ;;  %v1634_v51 = vrot.slane %v952_v42, %v6342_v45  ;;  %v2171_v6 = vadd.f32 %v1798_v16, %v603_v17  ;;  %v611_v16 = vld [vmem:[%s6354_s20 + $0x300] sm:$0xff]  ;;  %v6191_v17 = vld [vmem:[%s6279_s9 + $0x10] sm:$0xff] }
 0x152   : > { %6019 = vmatprep.mubr.msk.f32.mxu0 %vm2348_vm1, %v2253_v49  ;;  %6082 = vmatprep.mubr.msk.f32.mxu1 %vm2348_vm1, %v2295_v27  ;;  %v2255_v9 = vmax.f32 %v2127_v28, 0.0  ;;  %v2297_v2 = vmax.f32 %v2169_v4, 0.0  ;;  %v2129_v10 = vadd.f32 %v1630_v25, %v561_v40  ;;  %v1254_v31 = vrot.slane %v6406_v19, %v6327_v29  ;;  %v609_v25 = vld [vmem:[%s6354_s20 + $0x2f0] sm:$0xff]  ;;  %v610_v27 = vld [vmem:[%s6354_s20 + $0x2f8] sm:$0xff]  ;;  %v6190_v4 = vld [vmem:[%s6279_s9 + $0x8] sm:$0xff] }
 0x153   : > { %v1242_v48 = vrot.slane %v1214_v52, %v6327_v29  ;;  %v1244_v38 = vcombine.high %v1228_v34, %v1228_v34  ;;  %v1810_v42 = vrot.slane %v1245_v63, %v6342_v45  ;;  %v2256_v54 = vmax.f32 %v2128_v47, 0.0  ;;  %v612_v52 = vld [vmem:[%s6354_s20 + $0x308] sm:$0xff] }
 0x154   : > { %v2298_v21 = vmax.f32 %v2170_v33, 0.0  ;;  %v2130_v59 = vadd.f32 %v1634_v51, %v562_v60  ;;  %v2172_v35 = vadd.f32 %v1802_v1, %v604_v18  ;;  %v1814_v62 = vrot.slane %v1228_v34, %v6342_v45  ;;  %v613_v51 = vld [vmem:[%s6354_s20 + $0x310] sm:$0xff] }
 0x155   : > { %6020 = vmatmul.mubr.msk.f32.gmra.mrb[58].mxu0 %vm2348_vm1, %v2254_v50  ;;  %6083 = vmatmul.mubr.msk.f32.gmra.mrb[36].mxu1 %vm2348_vm1, %v2296_v46  ;;  %v2257_v56 = vmax.f32 %v2129_v10, 0.0  ;;  %v2299_v58 = vmax.f32 %v2171_v6, 0.0  ;;  %v2173_v55 = vadd.f32 %v1806_v23, %v605_v12  ;;  %v1262_v5 = vcombine.high %v1254_v31, %v1254_v31  ;;  %v6192_v46 = vld [vmem:[%s6279_s9 + $0x18] sm:$0xff]  ;;  %v6193_v6 = vld [vmem:[%s6279_s9 + $0x20] sm:$0xff] }
 0x156   : > { %6022 = vmatprep.mubr.msk.f32.mxu0 %vm2348_vm1, %v2255_v9  ;;  %6085 = vmatprep.mubr.msk.f32.mxu1 %vm2348_vm1, %v2297_v2  ;;  %v1246_v3 = vcombine.high %v1242_v48, %v1242_v48  ;;  %v1818_v30 = vrot.slane %v1242_v48, %v6342_v45  ;;  %v1270_v8 = vrot.slane %v1254_v31, %v6327_v29  ;;  %v2258_v26 = vmax.f32 %v2130_v59, 0.0 }
 0x157   : > { %v2300_v0 = vmax.f32 %v2172_v35, 0.0  ;;  %v1247_v7 = vcombine.high %v6406_v19, %v6406_v19  ;;  %v2174_v15 = vadd.f32 %v1810_v42, %v606_v24  ;;  %v1822_v57 = vrot.slane %v1244_v38, %v6342_v45  ;;  %v6189_v19 = vld [vmem:[%s6279_s9] sm:$0xff]  ;;  %v614_v38 = vld [vmem:[%s6354_s20 + $0x318] sm:$0xff]  ;;  %v6194_v42 = vld [vmem:[%s6279_s9 + $0x28] sm:$0xff] }
 0x158   : > { %v2301_v41 = vmax.f32 %v2173_v55, 0.0  ;;  %v2175_v53 = vadd.f32 %v1814_v62, %v607_v20  ;;  %v1284_v37 = vrot.slane %v1262_v5, %v6327_v29  ;;  %v1830_v11 = vrot.slane %v1270_v8, %v6342_v45  ;;  %v6195_v35 = vld [vmem:[%s6279_s9 + $0x30] sm:$0xff] }
 0x159   : > { %6023 = vmatmul.mubr.msk.f32.gmra.mrb[60].mxu0 %vm2348_vm1, %v2256_v54  ;;  %6086 = vmatmul.mubr.msk.f32.gmra.mrb[38].mxu1 %vm2348_vm1, %v2298_v21  ;;  %v1261_v22 = vrot.slane %v1247_v7, %v6327_v29  ;;  %v2302_v14 = vmax.f32 %v2174_v15, 0.0  ;;  %v2176_v61 = vadd.f32 %v1818_v30, %v608_v39  ;;  %v1826_v32 = vrot.slane %v1246_v3, %v6342_v45  ;;  %v615_v21 = vld [vmem:[%s6354_s20 + $0x320] sm:$0xff]  ;;  %v616_v30 = vld [vmem:[%s6354_s20 + $0x328] sm:$0xff] }
 0x15a   : > { %6025 = vmatprep.mubr.msk.f32.mxu0 %vm2348_vm1, %v2257_v56  ;;  %6088 = vmatprep.mubr.msk.f32.mxu1 %vm2348_vm1, %v2299_v58  ;;  %v1292_v44 = vcombine.high %v1270_v8, %v1270_v8  ;;  %v2303_v43 = vmax.f32 %v2175_v53, 0.0  ;;  %v2177_v49 = vadd.f32 %v1822_v57, %v609_v25  ;;  %v1834_v28 = vrot.slane %v1284_v37, %v6342_v45  ;;  %v617_v8 = vld [vmem:[%s6354_s20 + $0x330] sm:$0xff] }
 0x15b   : > { %v2179_v36 = vadd.f32 %v1830_v11, %v611_v16  ;;  %v1263_v34 = vcombine.high %v1261_v22, %v1261_v22  ;;  %v1294_v63 = vcombine.high %v1284_v37, %v1284_v37  ;;  %v2304_v40 = vmax.f32 %v2176_v61, 0.0  ;;  %v618_v11 = vld [vmem:[%s6354_s20 + $0x338] sm:$0xff]  ;;  %v6198_v16 = vld [vmem:[%s6279_s9 + $0x48] sm:$0xff] }
 0x15c   : > { %v2178_v1 = vadd.f32 %v1826_v32, %v610_v27  ;;  %v1277_v23 = vrot.slane %v1261_v22, %v6327_v29  ;;  %v1838_v47 = vrot.slane %v1292_v44, %v6342_v45  ;;  %v2305_v50 = vmax.f32 %v2177_v49, 0.0 }
 0x15d   : > { %6026 = vmatmul.mubr.msk.f32.gmra.mrb[62].mxu0 %vm2348_vm1, %v2258_v26  ;;  %6089 = vmatmul.mubr.msk.f32.gmra.mrb[40].mxu1 %vm2348_vm1, %v2300_v0  ;;  %v2180_v33 = vadd.f32 %v1834_v28, %v612_v52  ;;  %v2307_v9 = vmax.f32 %v2179_v36, 0.0  ;;  %v1303_v2 = vrot.slane %v6397_v13, %v6327_v29  ;;  %v1291_v10 = vrot.slane %v1263_v34, %v6327_v29  ;;  %v6197_v0 = vld [vmem:[%s6279_s9 + $0x40] sm:$0xff]  ;;  %v620_v36 = vld [vmem:[%s6354_s20 + $0x348] sm:$0xff]  ;;  %v621_v52 = vld [vmem:[%s6354_s20 + $0x350] sm:$0xff] }
 0x15e   : > { %6091 = vmatprep.mubr.msk.f32.mxu1 %vm2348_vm1, %v2301_v41  ;;  %6150 = vmatprep.mubr.msk.f32.mxu0 %vm321_vm0, %v6189_v19  ;;  %v1842_v60 = vrot.slane %v1294_v63, %v6342_v45  ;;  %v2306_v18 = vmax.f32 %v2178_v1, 0.0  ;;  %v1293_v12 = vcombine.high %v1277_v23, %v1277_v23  ;;  %v1846_v31 = vrot.slane %v1277_v23, %v6342_v45  ;;  %v619_v19 = vld [vmem:[%s6354_s20 + $0x340] sm:$0xff]  ;;  %v8458_v34 = vld [vmem:[#allocation3_spill] sm:$0xff] }
 0x15f   : > { %v2181_v48 = vadd.f32 %v1838_v47, %v613_v51  ;;  %v2308_v54 = vmax.f32 %v2180_v33, 0.0  ;;  %v1296_v59 = vcombine.high %v6397_v13, %v6397_v13  ;;  %v1311_v62 = vcombine.high %v1303_v2, %v1303_v2  ;;  %v6196_v13 = vld [vmem:[%s6279_s9 + $0x38] sm:$0xff]  ;;  %v6201_v1 = vld [vmem:[%s6279_s9 + $0x60] sm:$0xff] }
 0x160   : > { %v1295_v56 = vcombine.high %v1291_v10, %v1291_v10  ;;  %v1850_v58 = vrot.slane %v1291_v10, %v6342_v45  ;;  %v2182_v55 = vadd.f32 %v1842_v60, %v614_v38  ;;  %v1319_v24 = vrot.slane %v1303_v2, %v6327_v29  ;;  %v6202_v2 = vld [vmem:[%s6279_s9 + $0x68] sm:$0xff]  ;;  %v623_v60 = vld [vmem:[%s6354_s20 + $0x360] sm:$0xff] }
 0x161   : > { %6092 = vmatmul.mubr.msk.f32.gmra.mrb[42].mxu1 %vm2348_vm1, %v2302_v14  ;;  %6151 = vmatmul.mubr.msk.f32.vlgmr.msra.gmra.mrb[64].mxu0 %vm321_vm0, %v6190_v4  ;;  %v1854_v5 = vrot.slane %v1293_v12, %v6342_v45  ;;  %v2309_v20 = vmax.f32 %v2181_v48, 0.0  ;;  %v2183_v3 = vadd.f32 %v1846_v31, %v615_v21  ;;  %v1310_v26 = vrot.slane %v1296_v59, %v6327_v29  ;;  %v6199_v14 = vld [vmem:[%s6279_s9 + $0x50] sm:$0xff] }
 0x162   : > { %6094 = vmatprep.mubr.msk.f32.mxu1 %vm2348_vm1, %v2303_v43  ;;  %6153 = vmatprep.mubr.msk.f32.mxu0 %vm321_vm0, %v6191_v17  ;;  %v1333_v7 = vrot.slane %v1311_v62, %v6327_v29  ;;  %v2310_v15 = vmax.f32 %v2182_v55, 0.0  ;;  %v2184_v57 = vadd.f32 %v1850_v58, %v616_v30  ;;  %v1858_v41 = vrot.slane %v1295_v56, %v6342_v45  ;;  %v6200_v17 = vld [vmem:[%s6279_s9 + $0x58] sm:$0xff]  ;;  %v6203_v31 = vld [vmem:[%s6279_s9 + $0x70] sm:$0xff]  ;;  %v624_v62 = vld [vmem:[%s6354_s20 + $0x368] sm:$0xff] }
 0x163   : > { %v1341_v53 = vcombine.high %v1319_v24, %v1319_v24  ;;  %v1862_v39 = vrot.slane %v1319_v24, %v6342_v45  ;;  %v2311_v37 = vmax.f32 %v2183_v3, 0.0  ;;  %v2185_v25 = vadd.f32 %v1854_v5, %v617_v8  ;;  %v625_v58 = vld [vmem:[%s6354_s20 + $0x370] sm:$0xff]  ;;  %v6204_v55 = vld [vmem:[%s6279_s9 + $0x78] sm:$0xff]  ;;  %v627_v5 = vld [vmem:[%s6354_s20 + $0x380] sm:$0xff]  ;;  %s7862_s9 = scalar_lea.vmem %s8437_s7, %s5593_s29 }
 0x164   : > { %v1312_v22 = vcombine.high %v1310_v26, %v1310_v26  ;;  %v1343_v61 = vcombine.high %v1333_v7, %v1333_v7  ;;  %v1866_v32 = vrot.slane %v1333_v7, %v6342_v45  ;;  %v2312_v44 = vmax.f32 %v2184_v57, 0.0  ;;  %v626_v7 = vld [vmem:[%s6354_s20 + $0x378] sm:$0xff] }
 0x165   : > { %6095 = vmatmul.mubr.msk.f32.gmra.mrb[44].mxu1 %vm2348_vm1, %v2304_v40  ;;  %6154 = vmatmul.mubr.msk.f32.gmra.mrb[66].mxu0 %vm321_vm0, %v6192_v46  ;;  %v2186_v43 = vadd.f32 %v1858_v41, %v618_v11  ;;  %v1326_v49 = vrot.slane %v1310_v26, %v6327_v29  ;;  %v1870_v27 = vrot.slane %v1341_v53, %v6342_v45  ;;  %v2313_v4 = vmax.f32 %v2185_v25, 0.0  ;;  %v628_v41 = vld [vmem:[%s6354_s20 + $0x388] sm:$0xff] }
 0x166   : > { %6097 = vmatprep.mubr.msk.f32.mxu1 %vm2348_vm1, %v2305_v50  ;;  %6156 = vmatprep.mubr.msk.f32.mxu0 %vm321_vm0, %v6193_v6  ;;  %v2187_v28 = vadd.f32 %v1862_v39, %v619_v19  ;;  %v1352_v63 = vrot.slane %v8458_v34, %v6327_v29  ;;  %v1340_v40 = vrot.slane %v1312_v22, %v6327_v29 }
 0x167   : > { %v1874_v23 = vrot.slane %v1343_v61, %v6342_v45  ;;  %v2314_v47 = vmax.f32 %v2186_v43, 0.0  ;;  %v2188_v50 = vadd.f32 %v1866_v32, %v620_v36  ;;  %v1342_v46 = vcombine.high %v1326_v49, %v1326_v49  ;;  %v8459_v32 = vld [vmem:[#allocation2_spill] sm:$0xff] }
 0x168   : > { %v1878_v33 = vrot.slane %v1326_v49, %v6342_v45  ;;  %v2315_v51 = vmax.f32 %v2187_v28, 0.0  ;;  %v2189_v6 = vadd.f32 %v1870_v27, %v621_v52  ;;  %v1360_v10 = vcombine.high %v1352_v63, %v1352_v63 }
 0x169   : > { %6098 = vmatmul.mubr.msk.f32.gmra.mrb[46].mxu1 %vm2348_vm1, %v2306_v18  ;;  %6157 = vmatmul.mubr.msk.f32.gmra.mrb[68].mxu0 %vm321_vm0, %v6194_v42  ;;  %v1344_v18 = vcombine.high %v1340_v40, %v1340_v40  ;;  %v1368_v12 = vrot.slane %v1352_v63, %v6327_v29  ;;  %v1882_v48 = vrot.slane %v1340_v40, %v6342_v45  ;;  %v2316_v38 = vmax.f32 %v2188_v50, 0.0 }
 0x16a   : > { %6100 = vmatprep.mubr.msk.f32.mxu1 %vm2348_vm1, %v2307_v9  ;;  %6159 = vmatprep.mubr.msk.f32.mxu0 %vm321_vm0, %v6195_v35  ;;  %v622_v9 = vld [vmem:[%s6354_s20 + $0x358] sm:$0xff]  ;;  %v1345_v42 = vcombine.high %v8458_v34, %v8458_v34  ;;  %v1886_v21 = vrot.slane %v1342_v46, %v6342_v45  ;;  %v2317_v59 = vmax.f32 %v2189_v6, 0.0  ;;  %v2191_v35 = vadd.f32 %v1878_v33, %v623_v60  ;;  %v631_v34 = vld [vmem:[%s6354_s20 + $0x3a0] sm:$0xff]  ;;  %v632_v6 = vld [vmem:[%s6354_s20 + $0x3a8] sm:$0xff] }
 0x16b   : > { %v1382_v56 = vrot.slane %v1360_v10, %v6327_v29  ;;  %v1894_v24 = vrot.slane %v1368_v12, %v6342_v45  ;;  %v2192_v30 = vadd.f32 %v1882_v48, %v624_v62  ;;  %v1390_v8 = vcombine.high %v1368_v12, %v1368_v12 }
 0x16c   : > { %v2319_v26 = vmax.f32 %v2191_v35, 0.0  ;;  %v1394_v63 = vcombine.high %v8459_v32, %v8459_v32 }
 0x16d   : > { %6101 = vmatmul.mubr.msk.f32.gmra.mrb[48].mxu1 %vm2348_vm1, %v2308_v54  ;;  %6160 = vmatmul.mubr.msk.f32.gmra.mrb[70].mxu0 %vm321_vm0, %v6196_v13  ;;  %v2190_v54 = vadd.f32 %v1874_v23, %v622_v9  ;;  %v1890_v13 = vrot.slane %v1344_v18, %v6342_v45  ;;  %v2195_v57 = vadd.f32 %v1894_v24, %v627_v5  ;;  %v633_v9 = vld [vmem:[%s6354_s20 + $0x3b0] sm:$0xff] }
 0x16e   : > { %6103 = vmatprep.mubr.msk.f32.mxu1 %vm2348_vm1, %v2309_v20  ;;  %6162 = vmatprep.mubr.msk.f32.mxu0 %vm321_vm0, %v6197_v0  ;;  %v1359_v20 = vrot.slane %v1345_v42, %v6327_v29  ;;  %v2193_v0 = vadd.f32 %v1886_v21, %v625_v58  ;;  %v1392_v39 = vcombine.high %v1382_v56, %v1382_v56  ;;  %v635_v21 = vld [vmem:[%s6354_s20 + $0x3c0] sm:$0xff] }
 0x16f   : > { %v2318_v3 = vmax.f32 %v2190_v54, 0.0  ;;  %v2194_v25 = vadd.f32 %v1890_v13, %v626_v7  ;;  %v1902_v19 = vrot.slane %v1390_v8, %v6342_v45  ;;  %v2323_v61 = vmax.f32 %v2195_v57, 0.0  ;;  %v634_v54 = vld [vmem:[%s6354_s20 + $0x3b8] sm:$0xff] }
 0x170   : > { %v1361_v53 = vcombine.high %v1359_v20, %v1359_v20  ;;  %v1375_v11 = vrot.slane %v1359_v20, %v6327_v29  ;;  %v1906_v49 = vrot.slane %v1392_v39, %v6342_v45  ;;  %v639_v39 = vld [vmem:[%s6354_s20 + $0x3e0] sm:$0xff] }
 0x171   : > { %6104 = vmatmul.mubr.msk.f32.gmra.mrb[50].mxu1 %vm2348_vm1, %v2310_v15  ;;  %6163 = vmatmul.mubr.msk.f32.gmra.mrb[72].mxu0 %vm321_vm0, %v6198_v16  ;;  %v1898_v15 = vrot.slane %v1382_v56, %v6342_v45  ;;  %v2321_v16 = vmax.f32 %v2193_v0, 0.0  ;;  %v2322_v27 = vmax.f32 %v2194_v25, 0.0 }
 0x172   : > { %6106 = vmatprep.mubr.msk.f32.mxu1 %vm2348_vm1, %v2311_v37  ;;  %6165 = vmatprep.mubr.msk.f32.mxu0 %vm321_vm0, %v6199_v14  ;;  %v2320_v37 = vmax.f32 %v2192_v30, 0.0  ;;  %v629_v14 = vld [vmem:[%s6354_s20 + $0x390] sm:$0xff]  ;;  %v1389_v43 = vrot.slane %v1361_v53, %v6327_v29  ;;  %v1391_v28 = vcombine.high %v1375_v11, %v1375_v11  ;;  %v638_v53 = vld [vmem:[%s6354_s20 + $0x3d8] sm:$0xff] }
 0x173   : > { %v2196_v22 = vadd.f32 %v1898_v15, %v628_v41  ;;  %v2197_v36 = vadd.f32 %v1902_v19, %v629_v14  ;;  %v637_v30 = vld [vmem:[%s6354_s20 + $0x3d0] sm:$0xff]  ;;  %v640_v14 = vld [vmem:[%s6354_s20 + $0x3e8] sm:$0xff] }
 0x174   : > { %v1914_v23 = vrot.slane %v1389_v43, %v6342_v45  ;;  %v1918_v46 = vrot.slane %v1391_v28, %v6342_v45  ;;  %v642_v28 = vld [vmem:[%s6354_s20 + $0x3f8] sm:$0xff] }
 0x175   : > { %6107 = vmatmul.mubr.msk.f32.gmra.mrb[52].mxu1 %vm2348_vm1, %v2312_v44  ;;  %6166 = vmatmul.mubr.msk.f32.gmra.mrb[74].mxu0 %vm321_vm0, %v6200_v17  ;;  %v1401_v44 = vrot.slane %v8459_v32, %v6327_v29  ;;  %v630_v17 = vld [vmem:[%s6354_s20 + $0x398] sm:$0xff]  ;;  %v2324_v52 = vmax.f32 %v2196_v22, 0.0  ;;  %v2325_v33 = vmax.f32 %v2197_v36, 0.0 }
 0x176   : > { %6109 = vmatprep.mubr.msk.f32.mxu1 %vm2348_vm1, %v2313_v4  ;;  %6168 = vmatprep.mubr.msk.f32.mxu0 %vm321_vm0, %v6201_v1  ;;  %v1910_v4 = vrot.slane %v1375_v11, %v6342_v45  ;;  %v1393_v1 = vcombine.high %v1389_v43, %v1389_v43  ;;  %v2200_v18 = vadd.f32 %v1914_v23, %v632_v6 }
 0x177   : > { %v1409_v40 = vcombine.high %v1401_v44, %v1401_v44  ;;  %v1417_v50 = vrot.slane %v1401_v44, %v6327_v29  ;;  %v2201_v42 = vadd.f32 %v1918_v46, %v633_v9 }
 0x178   : > { %v1922_v12 = vrot.slane %v1393_v1, %v6342_v45  ;;  %v2328_v56 = vmax.f32 %v2200_v18, 0.0 }
 0x179   : > { %6110 = vmatmul.mubr.msk.f32.gmra.mrb[54].mxu1 %vm2348_vm1, %v2314_v47  ;;  %6169 = vmatmul.mubr.msk.f32.gmra.mrb[76].mxu0 %vm321_vm0, %v6202_v2  ;;  %v2198_v47 = vadd.f32 %v1906_v49, %v630_v17  ;;  %v1408_v2 = vrot.slane %v1394_v63, %v6327_v29  ;;  %v1431_v10 = vrot.slane %v1409_v40, %v6327_v29  ;;  %v2329_v20 = vmax.f32 %v2201_v42, 0.0 }
 0x17a   : > { %6112 = vmatprep.mubr.msk.f32.mxu1 %vm2348_vm1, %v2315_v51  ;;  %6171 = vmatprep.mubr.msk.f32.mxu0 %vm321_vm0, %v6203_v31  ;;  %v2199_v51 = vadd.f32 %v1910_v4, %v631_v34  ;;  %v1439_v31 = vcombine.high %v1417_v50, %v1417_v50  ;;  %v1926_v48 = vrot.slane %v1417_v50, %v6342_v45 }
 0x17b   : > { %v2326_v60 = vmax.f32 %v2198_v47, 0.0  ;;  %v1441_v35 = vcombine.high %v1431_v10, %v1431_v10  ;;  %v1930_v62 = vrot.slane %v1431_v10, %v6342_v45  ;;  %v2202_v58 = vadd.f32 %v1922_v12, %v634_v54 }
 0x17c   : > { %v1934_v24 = vrot.slane %v1439_v31, %v6342_v45  ;;  %v2203_v5 = vadd.f32 %v1926_v48, %v635_v21 }
 0x17d   : > { %6113 = vmatmul.mubr.msk.f32.gmra.mrb[56].mxu1 %vm2348_vm1, %v2316_v38  ;;  %6172 = vmatmul.mubr.msk.f32.gmra.mrb[78].mxu0 %vm321_vm0, %v6204_v55  ;;  %v2327_v38 = vmax.f32 %v2199_v51, 0.0  ;;  %v1424_v55 = vrot.slane %v1408_v2, %v6327_v29  ;;  %v1938_v8 = vrot.slane %v1441_v35, %v6342_v45 }
 0x17e   : > { %6115 = vmatprep.mubr.msk.f32.mxu1 %vm2348_vm1, %v2317_v59  ;;  %v1410_v59 = vcombine.high %v1408_v2, %v1408_v2  ;;  %v2331_v57 = vmax.f32 %v2203_v5, 0.0  ;;  %v2205_v41 = vadd.f32 %v1934_v24, %v637_v30 }
 0x17f   : > { %v1440_v7 = vcombine.high %v1424_v55, %v1424_v55  ;;  %v1942_v15 = vrot.slane %v1424_v55, %v6342_v45  ;;  %v2206_v11 = vadd.f32 %v1938_v8, %v638_v53 }
 0x180   : > { %v1438_v13 = vrot.slane %v1410_v59, %v6327_v29 }
 0x181   : > { %6116 = vmatmul.mubr.msk.f32.gmra.mrb[58].mxu1 %vm2348_vm1, %v2318_v3  ;;  %v636_v3 = vld [vmem:[%s6354_s20 + $0x3c8] sm:$0xff]  ;;  %v1950_v19 = vrot.slane %v1440_v7, %v6342_v45  ;;  %v2207_v22 = vadd.f32 %v1942_v15, %v639_v39  ;;  %v2334_v32 = vmax.f32 %v2206_v11, 0.0 }
 0x182   : > { %6118 = vmatprep.mubr.msk.f32.mxu1 %vm2348_vm1, %v2319_v26  ;;  %v2330_v26 = vmax.f32 %v2202_v58, 0.0  ;;  %v2204_v0 = vadd.f32 %v1930_v62, %v636_v3  ;;  %v1946_v29 = vrot.slane %v1438_v13, %v6342_v45 }
 0x183   : > { %v2335_v49 = vmax.f32 %v2207_v22, 0.0 }
 0x184   : > { %v2332_v25 = vmax.f32 %v2204_v0, 0.0  ;;  %v2208_v44 = vadd.f32 %v1946_v29, %v640_v14 }
 0x185   : > { %6119 = vmatmul.mubr.msk.f32.gmra.mrb[60].mxu1 %vm2348_vm1, %v2320_v37  ;;  %v1442_v37 = vcombine.high %v1438_v13, %v1438_v13 }
 0x186   : > { %6121 = vmatprep.mubr.msk.f32.mxu1 %vm2348_vm1, %v2321_v16  ;;  %v2333_v16 = vmax.f32 %v2205_v41, 0.0  ;;  %v2336_v4 = vmax.f32 %v2208_v44, 0.0 }
 0x187   : > { %v1954_v43 = vrot.slane %v1442_v37, %v6342_v45  ;;  %v7173_v45 = vld [vmem:[%s8434_s4] ss:$0 sm:$0xff] }
 0x189   : > { %6122 = vmatmul.mubr.msk.f32.gmra.mrb[62].mxu1 %vm2348_vm1, %v2322_v27  ;;  %v2210_v36 = vadd.f32 %v1954_v43, %v642_v28 }
 0x18a   : > { %6124 = vmatprep.mubr.msk.f32.mxu1 %vm2348_vm1, %v2323_v61  ;;  %v641_v61 = vld [vmem:[%s6354_s20 + $0x3f0] sm:$0xff] }
 0x18b   : > { %v2209_v27 = vadd.f32 %v1950_v19, %v641_v61 }
 0x18d   : > { %6125 = vmatmul.mubr.msk.f32.gmra.mrb[64].mxu1 %vm2348_vm1, %v2324_v52  ;;  %v2337_v17 = vmax.f32 %v2209_v27, 0.0  ;;  %v2338_v52 = vmax.f32 %v2210_v36, 0.0 }
 0x18e   : > { %6127 = vmatprep.mubr.msk.f32.mxu1 %vm2348_vm1, %v2325_v33 }
 0x191   : > { %6128 = vmatmul.mubr.msk.f32.gmra.mrb[66].mxu1 %vm2348_vm1, %v2326_v60 }
 0x192   : > { %6130 = vmatprep.mubr.msk.f32.mxu1 %vm2348_vm1, %v2327_v38 }
 0x195   : > { %6131 = vmatmul.mubr.msk.f32.gmra.mrb[68].mxu1 %vm2348_vm1, %v2328_v56 }
 0x196   : > { %6133 = vmatprep.mubr.msk.f32.mxu1 %vm2348_vm1, %v2329_v20 }
 0x199   : > { %6134 = vmatmul.mubr.msk.f32.gmra.mrb[70].mxu1 %vm2348_vm1, %v2330_v26 }
 0x19a   : > { %6136 = vmatprep.mubr.msk.f32.mxu1 %vm2348_vm1, %v2331_v57 }
 0x19d   : > { %6137 = vmatmul.mubr.msk.f32.gmra.mrb[72].mxu1 %vm2348_vm1, %v2332_v25 }
 0x19e   : > { %6139 = vmatprep.mubr.msk.f32.mxu1 %vm2348_vm1, %v2333_v16 }
 0x1a1   : > { %6140 = vmatmul.mubr.msk.f32.gmra.mrb[74].mxu1 %vm2348_vm1, %v2334_v32 }
 0x1a2   : > { %6142 = vmatprep.mubr.msk.f32.mxu1 %vm2348_vm1, %v2335_v49 }
 0x1a5   : > { %6143 = vmatmul.mubr.msk.f32.gmra.mrb[76].mxu1 %vm2348_vm1, %v2336_v4 }
 0x1a6   : > { %6145 = vmatprep.mubr.msk.f32.mxu1 %vm2348_vm1, %v2337_v17 }
 0x1a9   : > { %6146 = vmatmul.mubr.msk.f32.gmra.mrb[78].mxu1 %vm2348_vm1, %v2338_v52 }
 0x1d0   : > { %v5958_v34 = vpop.f32.mrb[16].mxu0 }
 0x1d1   : > { %v2805_v63 = vadd.f32 %v5958_v34, %v7173_v45  ;;  %v2799_v40 = vpop.f32.mrb[17].mxu0 }
 0x1d2   : > { %v2800_v1 = vadd.f32 %v7173_v45, %v2799_v40 }
 0x1d3   : > { %v3439_v23 = vmax.f32 %v2805_v63, 0.0 }
 0x1d4   : > { %v3438_v47 = vmax.f32 %v2800_v1, 0.0 }
 0x1d5   : > { %v3574_v50 = vsel %vm3566_vm2, %v3439_v23, 0.0 }
 0x1d6   : > { %v3575_v46 = vrot.slane %v3574_v50, 4  ;;  %v3567_v33 = vsel %vm3566_vm2, %v3438_v47, 0.0 }
 0x1d7   : > { %v3568_v51 = vrot.slane %v3567_v33, 4 }
 0x1d8   : > { %v3576_v6 = vadd.f32 %v3575_v46, %v3574_v50  ;;  %v5961_v60 = vpop.f32.mrb[18].mxu0 }
 0x1d9   : > { %v3569_v9 = vadd.f32 %v3568_v51, %v3567_v33  ;;  %v2815_v12 = vadd.f32 %v5961_v60, %v7173_v45  ;;  %v2809_v31 = vpop.f32.mrb[19].mxu0 }
 0x1da   : > { %v3577_v2 = vrot.slane %v3576_v6, 2  ;;  %v2810_v48 = vadd.f32 %v7173_v45, %v2809_v31 }
 0x1db   : > { %v3570_v10 = vrot.slane %v3569_v9, 2  ;;  %v3441_v38 = vmax.f32 %v2815_v12, 0.0 }
 0x1dc   : > { %v3578_v18 = vadd.f32 %v3577_v2, %v3576_v6  ;;  %v3440_v21 = vmax.f32 %v2810_v48, 0.0  ;;  %v5964_v59 = vpop.f32.mrb[20].mxu0 }
 0x1dd   : > { %v3571_v54 = vadd.f32 %v3570_v10, %v3569_v9  ;;  %v3588_v35 = vsel %vm3566_vm2, %v3441_v38, 0.0  ;;  %v2825_v62 = vadd.f32 %v5964_v59, %v7173_v45  ;;  %v2819_v56 = vpop.f32.mrb[21].mxu0 }
 0x1de   : > { %v3579_v42 = vrot.slane %v3578_v18, 1  ;;  %v3589_v58 = vrot.slane %v3588_v35, 4  ;;  %v3581_v55 = vsel %vm3566_vm2, %v3440_v21, 0.0  ;;  %v2820_v24 = vadd.f32 %v7173_v45, %v2819_v56 }
 0x1df   : > { %v3582_v5 = vrot.slane %v3581_v55, 4  ;;  %v3443_v20 = vmax.f32 %v2825_v62, 0.0  ;;  %v3572_v30 = vrot.slane %v3571_v54, 1  ;;  %v6030_v0 = vpop.f32.mrb[0].mxu1 }
 0x1e0   : > { %v7185_v3 = vadd.f32 %v3579_v42, %v3578_v18  ;;  %v3590_v13 = vadd.f32 %v3589_v58, %v3588_v35  ;;  %v3442_v8 = vmax.f32 %v2820_v24, 0.0  ;;  %v5967_v26 = vpop.f32.mrb[22].mxu0  ;;  %v3045_v41 = vadd.f32 %v6030_v0, %v7173_v45  ;;  %v3039_v39 = vpop.f32.mrb[1].mxu1 }
 0x1e1   : > { %v3583_v7 = vadd.f32 %v3582_v5, %v3581_v55  ;;  %v3602_v15 = vsel %vm3566_vm2, %v3443_v20, 0.0  ;;  %v2835_v57 = vadd.f32 %v5967_v26, %v7173_v45  ;;  %v2829_v53 = vpop.f32.mrb[23].mxu0  ;;  %v3040_v43 = vadd.f32 %v7173_v45, %v3039_v39 }
 0x1e2   : > { %8460 = vst [vmem:[#allocation3_spill] sm:$0xff] %v7185_v3  ;;  %v3591_v37 = vrot.slane %v3590_v13, 2  ;;  %v3603_v29 = vrot.slane %v3602_v15, 4  ;;  %v3595_v25 = vsel %vm3566_vm2, %v3442_v8, 0.0  ;;  %v2830_v11 = vadd.f32 %v7173_v45, %v2829_v53 }
 0x1e3   : > { %v3584_v19 = vrot.slane %v3583_v7, 2  ;;  %v3596_v16 = vrot.slane %v3595_v25, 4  ;;  %v3445_v22 = vmax.f32 %v2835_v57, 0.0  ;;  %v3487_v14 = vmax.f32 %v3045_v41, 0.0  ;;  %v6033_v27 = vpop.f32.mrb[2].mxu1 }
 0x1e4   : > { %v3592_v61 = vadd.f32 %v3591_v37, %v3590_v13  ;;  %v3604_v32 = vadd.f32 %v3603_v29, %v3602_v15  ;;  %v3444_v44 = vmax.f32 %v2830_v11, 0.0  ;;  %v5970_v49 = vpop.f32.mrb[24].mxu0  ;;  %v3049_v34 = vpop.f32.mrb[3].mxu1  ;;  %v3486_v33 = vmax.f32 %v3040_v43, 0.0 }
 0x1e5   : > { %v3585_v28 = vadd.f32 %v3584_v19, %v3583_v7  ;;  %v3597_v4 = vadd.f32 %v3596_v16, %v3595_v25  ;;  %v3616_v36 = vsel %vm3566_vm2, %v3445_v22, 0.0  ;;  %v3910_v17 = vsel %vm3566_vm2, %v3487_v14, 0.0  ;;  %v2839_v52 = vpop.f32.mrb[25].mxu0 }
 0x1e6   : > { %v3593_v63 = vrot.slane %v3592_v61, 1  ;;  %v3605_v40 = vrot.slane %v3604_v32, 2  ;;  %v3617_v1 = vrot.slane %v3616_v36, 4  ;;  %v3911_v23 = vrot.slane %v3910_v17, 4 }
 0x1e7   : > { %v3586_v47 = vrot.slane %v3585_v28, 1  ;;  %v3598_v50 = vrot.slane %v3597_v4, 2  ;;  %v3609_v46 = vsel %vm3566_vm2, %v3444_v44, 0.0  ;;  %v7196_v51 = vadd.f32 %v3572_v30, %v3571_v54  ;;  %v6036_v60 = vpop.f32.mrb[4].mxu1 }
 0x1e8   : > { %v3606_v6 = vadd.f32 %v3605_v40, %v3604_v32  ;;  %v3618_v9 = vadd.f32 %v3617_v1, %v3616_v36  ;;  %v3912_v2 = vadd.f32 %v3911_v23, %v3910_v17  ;;  %v5973_v10 = vpop.f32.mrb[26].mxu0  ;;  %v7198_v18 = vadd.f32 %v3593_v63, %v3592_v61  ;;  %v7201_v42 = vpop.f32.mrb[5].mxu1 }
 0x1e9   : > { %8461 = vst [vmem:[#allocation2_spill] sm:$0xff] %v7196_v51  ;;  %v3599_v12 = vadd.f32 %v3598_v50, %v3597_v4  ;;  %v3610_v31 = vrot.slane %v3609_v46, 4  ;;  %v3903_v48 = vsel %vm3566_vm2, %v3486_v33, 0.0  ;;  %v2849_v38 = vpop.f32.mrb[27].mxu0  ;;  %v7203_v54 = vadd.f32 %v3586_v47, %v3585_v28 }
 0x1ea   : > { %8462 = vst [vmem:[#allocation4_spill] sm:$0xff] %v7198_v18  ;;  %v3607_v21 = vrot.slane %v3606_v6, 1  ;;  %v3619_v59 = vrot.slane %v3618_v9, 2  ;;  %v3913_v35 = vrot.slane %v3912_v2, 2  ;;  %v3904_v62 = vrot.slane %v3903_v48, 4 }
 0x1eb   : > { %8463 = vst [vmem:[#allocation5_spill] sm:$0xff] %v7203_v54  ;;  %v3611_v56 = vadd.f32 %v3610_v31, %v3609_v46  ;;  %v2845_v58 = vadd.f32 %v5970_v49, %v7173_v45  ;;  %v3055_v55 = vadd.f32 %v6033_v27, %v7173_v45  ;;  %v3600_v24 = vrot.slane %v3599_v12, 1  ;;  %v7209_v8 = vpop.f32.mrb[6].mxu1 }
 0x1ec   : > { %v3620_v5 = vadd.f32 %v3619_v59, %v3618_v9  ;;  %v3914_v20 = vadd.f32 %v3913_v35, %v3912_v2  ;;  %v3905_v30 = vadd.f32 %v3904_v62, %v3903_v48  ;;  %v7207_v13 = vpop.f32.mrb[28].mxu0  ;;  %v7211_v26 = vadd.f32 %v3607_v21, %v3606_v6  ;;  %v7215_v41 = vpop.f32.mrb[7].mxu1 }
 0x1ed   : > { %v3612_v0 = vrot.slane %v3611_v56, 2  ;;  %v3447_v7 = vmax.f32 %v2845_v58, 0.0  ;;  %v3489_v15 = vmax.f32 %v3055_v55, 0.0  ;;  %v7213_v57 = vpop.f32.mrb[29].mxu0  ;;  %v2840_v29 = vadd.f32 %v7173_v45, %v2839_v52 }
 0x1ee   : > { %8464 = vst [vmem:[#allocation6_spill] sm:$0xff] %v7211_v26  ;;  %v3621_v53 = vrot.slane %v3620_v5, 1  ;;  %v3915_v39 = vrot.slane %v3914_v20, 1  ;;  %v3906_v37 = vrot.slane %v3905_v30, 2  ;;  %v3050_v16 = vadd.f32 %v7173_v45, %v3049_v34 }
 0x1ef   : > { %v3613_v25 = vadd.f32 %v3612_v0, %v3611_v56  ;;  %v3630_v11 = vsel %vm3566_vm2, %v3447_v7, 0.0  ;;  %v3924_v19 = vsel %vm3566_vm2, %v3489_v15, 0.0  ;;  %v7221_v22 = vadd.f32 %v3600_v24, %v3599_v12  ;;  %v7227_v43 = vpop.f32.mrb[8].mxu1 }
 0x1f0   : > { %v7223_v14 = vadd.f32 %v3621_v53, %v3620_v5  ;;  %v3907_v61 = vadd.f32 %v3906_v37, %v3905_v30  ;;  %v3631_v32 = vrot.slane %v3630_v11, 4  ;;  %v7225_v44 = vpop.f32.mrb[30].mxu0  ;;  %v3925_v27 = vrot.slane %v3924_v19, 4  ;;  %v7231_v17 = vpop.f32.mrb[9].mxu1 }
 0x1f1   : > { %8465 = vst [vmem:[#allocation7_spill] sm:$0xff] %v7221_v22  ;;  %v3614_v49 = vrot.slane %v3613_v25, 1  ;;  %v3446_v28 = vmax.f32 %v2840_v29, 0.0  ;;  %v3488_v4 = vmax.f32 %v3050_v16, 0.0  ;;  %v7229_v36 = vpop.f32.mrb[31].mxu0  ;;  %v7233_v52 = vadd.f32 %v3915_v39, %v3914_v20 }
 0x1f2   : > { %8466 = vst [vmem:[#allocation8_spill] sm:$0xff] %v7223_v14  ;;  %v3632_v34 = vadd.f32 %v3631_v32, %v3630_v11  ;;  %v2855_v63 = vadd.f32 %v5973_v10, %v7173_v45  ;;  %v3065_v40 = vadd.f32 %v6036_v60, %v7173_v45  ;;  %v3908_v1 = vrot.slane %v3907_v61, 1 }
 0x1f3   : > { %8467 = vst [vmem:[#allocation9_spill] sm:$0xff] %v7233_v52  ;;  %v3926_v23 = vadd.f32 %v3925_v27, %v3924_v19  ;;  %v3623_v47 = vsel %vm3566_vm2, %v3446_v28, 0.0  ;;  %v3917_v50 = vsel %vm3566_vm2, %v3488_v4, 0.0  ;;  %v7239_v46 = vadd.f32 %v3614_v49, %v3613_v25  ;;  %v7243_v12 = vpop.f32.mrb[10].mxu1 }
 0x1f4   : > { %v3633_v33 = vrot.slane %v3632_v34, 2  ;;  %v3624_v6 = vrot.slane %v3623_v47, 4  ;;  %v3918_v9 = vrot.slane %v3917_v50, 4  ;;  %v7241_v2 = vpop.f32.mrb[32].mxu0  ;;  %v3449_v48 = vmax.f32 %v2855_v63, 0.0  ;;  %v7248_v59 = vpop.f32.mrb[11].mxu1 }
 0x1f5   : > { %8468 = vst [vmem:[#allocation10_spill] sm:$0xff] %v7239_v46  ;;  %v3927_v31 = vrot.slane %v3926_v23, 2  ;;  %v3491_v10 = vmax.f32 %v3065_v40, 0.0  ;;  %v2850_v60 = vadd.f32 %v7173_v45, %v2849_v38  ;;  %v7246_v21 = vpop.f32.mrb[33].mxu0  ;;  %v3060_v58 = vadd.f32 %v7173_v45, %v7201_v42 }
 0x1f6   : > { %v3634_v35 = vadd.f32 %v3633_v33, %v3632_v34  ;;  %v3625_v62 = vadd.f32 %v3624_v6, %v3623_v47  ;;  %v3919_v56 = vadd.f32 %v3918_v9, %v3917_v50  ;;  %v3644_v24 = vsel %vm3566_vm2, %v3449_v48, 0.0 }
 0x1f7   : > { %v3928_v55 = vadd.f32 %v3927_v31, %v3926_v23  ;;  %v3938_v5 = vsel %vm3566_vm2, %v3491_v10, 0.0  ;;  %v3448_v20 = vmax.f32 %v2850_v60, 0.0  ;;  %v3645_v38 = vrot.slane %v3644_v24, 4  ;;  %v7256_v53 = vpop.f32.mrb[12].mxu1 }
 0x1f8   : > { %v3635_v30 = vrot.slane %v3634_v35, 1  ;;  %v3626_v0 = vrot.slane %v3625_v62, 2  ;;  %v3920_v7 = vrot.slane %v3919_v56, 2  ;;  %v7254_v15 = vpop.f32.mrb[34].mxu0  ;;  %v3939_v37 = vrot.slane %v3938_v5, 4  ;;  %v7261_v11 = vpop.f32.mrb[13].mxu1 }
 0x1f9   : > { %v3929_v39 = vrot.slane %v3928_v55, 1  ;;  %v3637_v29 = vsel %vm3566_vm2, %v3448_v20, 0.0  ;;  %v3490_v25 = vmax.f32 %v3060_v58, 0.0  ;;  %v7259_v42 = vpop.f32.mrb[35].mxu0  ;;  %v7263_v19 = vadd.f32 %v3908_v1, %v3907_v61 }
 0x1fa   : > { %v3627_v16 = vadd.f32 %v3626_v0, %v3625_v62  ;;  %v3921_v32 = vadd.f32 %v3920_v7, %v3919_v56  ;;  %v3646_v49 = vadd.f32 %v3645_v38, %v3644_v24  ;;  %v7265_v27 = vadd.f32 %v3635_v30, %v3634_v35 }
 0x1fb   : > { %8469 = vst [vmem:[#allocation11_spill] sm:$0xff] %v7263_v19  ;;  %v3940_v28 = vadd.f32 %v3939_v37, %v3938_v5  ;;  %v3638_v4 = vrot.slane %v3637_v29, 4  ;;  %v3931_v34 = vsel %vm3566_vm2, %v3490_v25, 0.0  ;;  %v7268_v63 = vadd.f32 %v3929_v39, %v3928_v55 }
 0x1fc   : > { %8470 = vst [vmem:[#allocation12_spill] sm:$0xff] %v7265_v27  ;;  %v3628_v40 = vrot.slane %v3627_v16, 1  ;;  %v3647_v23 = vrot.slane %v3646_v49, 2  ;;  %v3932_v47 = vrot.slane %v3931_v34, 4  ;;  %v7270_v50 = vpop.f32.mrb[36].mxu0  ;;  %v7272_v33 = vpop.f32.mrb[14].mxu1  ;;  %v2865_v6 = vadd.f32 %v7207_v13, %v7173_v45 }
 0x1fd   : > { %8471 = vst [vmem:[#allocation13_spill] sm:$0xff] %v7268_v63  ;;  %v3941_v61 = vrot.slane %v3940_v28, 2  ;;  %v3639_v1 = vadd.f32 %v3638_v4, %v3637_v29  ;;  %v3075_v9 = vadd.f32 %v7209_v8, %v7173_v45  ;;  %v7278_v31 = vpop.f32.mrb[37].mxu0  ;;  %v7280_v48 = vpop.f32.mrb[15].mxu1  ;;  %v3922_v60 = vrot.slane %v3921_v32, 1 }
 0x1fe   : > { %v7282_v10 = vadd.f32 %v3628_v40, %v3627_v16  ;;  %v3648_v35 = vadd.f32 %v3647_v23, %v3646_v49  ;;  %v3933_v62 = vadd.f32 %v3932_v47, %v3931_v34  ;;  %v3451_v55 = vmax.f32 %v2865_v6, 0.0 }
 0x1ff   : > { %v3942_v56 = vadd.f32 %v3941_v61, %v3940_v28  ;;  %v3640_v58 = vrot.slane %v3639_v1, 2  ;;  %v3493_v24 = vmax.f32 %v3075_v9, 0.0  ;;  %v2860_v13 = vadd.f32 %v7173_v45, %v7213_v57 }
 0x200   : > { %8472 = vst [vmem:[#allocation14_spill] sm:$0xff] %v7282_v10  ;;  %v3649_v5 = vrot.slane %v3648_v35, 1  ;;  %v3934_v20 = vrot.slane %v3933_v62, 2  ;;  %v3070_v8 = vadd.f32 %v7173_v45, %v7215_v41  ;;  %v7288_v30 = vpop.f32.mrb[38].mxu0  ;;  %v7290_v0 = vpop.f32.mrb[16].mxu1  ;;  %v3658_v39 = vsel %vm3566_vm2, %v3451_v55, 0.0 }
 0x201   : > { %v3943_v7 = vrot.slane %v3942_v56, 1  ;;  %v3641_v38 = vadd.f32 %v3640_v58, %v3639_v1  ;;  %v3952_v37 = vsel %vm3566_vm2, %v3493_v24, 0.0  ;;  %v7294_v29 = vpop.f32.mrb[39].mxu0  ;;  %v7296_v25 = vpop.f32.mrb[17].mxu1  ;;  %v7298_v16 = vadd.f32 %v3922_v60, %v3921_v32 }
 0x202   : > { %v3935_v57 = vadd.f32 %v3934_v20, %v3933_v62  ;;  %v3659_v49 = vrot.slane %v3658_v39, 4  ;;  %v3953_v28 = vrot.slane %v3952_v37, 4  ;;  %v7300_v41 = vadd.f32 %v3649_v5, %v3648_v35 }
 0x203   : > { %8473 = vst [vmem:[#allocation15_spill] sm:$0xff] %v7298_v16  ;;  %v3642_v4 = vrot.slane %v3641_v38, 1  ;;  %v3450_v34 = vmax.f32 %v2860_v13, 0.0  ;;  %v3492_v40 = vmax.f32 %v3070_v8, 0.0  ;;  %v7302_v23 = vadd.f32 %v3943_v7, %v3942_v56 }
 0x204   : > { %8474 = vst [vmem:[#allocation16_spill] sm:$0xff] %v7300_v41  ;;  %v3660_v47 = vadd.f32 %v3659_v49, %v3658_v39  ;;  %v3954_v61 = vadd.f32 %v3953_v28, %v3952_v37  ;;  %v2875_v1 = vadd.f32 %v7225_v44, %v7173_v45  ;;  %v7306_v6 = vpop.f32.mrb[40].mxu0  ;;  %v7308_v9 = vpop.f32.mrb[18].mxu1  ;;  %v3936_v32 = vrot.slane %v3935_v57, 1 }
 0x205   : > { %8475 = vst [vmem:[#allocation17_spill] sm:$0xff] %v7302_v23  ;;  %v3651_v60 = vsel %vm3566_vm2, %v3450_v34, 0.0  ;;  %v3945_v35 = vsel %vm3566_vm2, %v3492_v40, 0.0  ;;  %v3085_v62 = vadd.f32 %v7227_v43, %v7173_v45  ;;  %v7314_v58 = vpop.f32.mrb[41].mxu0  ;;  %v7316_v56 = vpop.f32.mrb[19].mxu1  ;;  %v7318_v55 = vadd.f32 %v3642_v4, %v3641_v38 }
 0x206   : > { %v3661_v24 = vrot.slane %v3660_v47, 2  ;;  %v3955_v44 = vrot.slane %v3954_v61, 2  ;;  %v3652_v5 = vrot.slane %v3651_v60, 4  ;;  %v3946_v20 = vrot.slane %v3945_v35, 4 }
 0x207   : > { %8476 = vst [vmem:[#allocation18_spill] sm:$0xff] %v7318_v55  ;;  %v3453_v13 = vmax.f32 %v2875_v1, 0.0  ;;  %v3495_v8 = vmax.f32 %v3085_v62, 0.0  ;;  %v2870_v7 = vadd.f32 %v7173_v45, %v7229_v36  ;;  %v3080_v43 = vadd.f32 %v7173_v45, %v7231_v17 }
 0x208   : > { %v3662_v39 = vadd.f32 %v3661_v24, %v3660_v47  ;;  %v3956_v37 = vadd.f32 %v3955_v44, %v3954_v61  ;;  %v3653_v49 = vadd.f32 %v3652_v5, %v3651_v60  ;;  %v7324_v28 = vpop.f32.mrb[42].mxu0  ;;  %v7326_v34 = vpop.f32.mrb[20].mxu1  ;;  %v3947_v38 = vadd.f32 %v3946_v20, %v3945_v35 }
 0x209   : > { %v3672_v4 = vsel %vm3566_vm2, %v3453_v13, 0.0  ;;  %v3966_v40 = vsel %vm3566_vm2, %v3495_v8, 0.0  ;;  %v3452_v1 = vmax.f32 %v2870_v7, 0.0  ;;  %v7330_v62 = vpop.f32.mrb[43].mxu0  ;;  %v7332_v23 = vpop.f32.mrb[21].mxu1  ;;  %v3494_v5 = vmax.f32 %v3080_v43, 0.0 }
 0x20a   : > { %v3663_v36 = vrot.slane %v3662_v39, 1  ;;  %v3957_v47 = vrot.slane %v3956_v37, 1  ;;  %v3654_v61 = vrot.slane %v3653_v49, 2  ;;  %v3673_v60 = vrot.slane %v3672_v4, 4 }
 0x20b   : > { %v3948_v24 = vrot.slane %v3947_v38, 2  ;;  %v3967_v17 = vrot.slane %v3966_v40, 4  ;;  %v3665_v44 = vsel %vm3566_vm2, %v3452_v1, 0.0  ;;  %v7335_v63 = vadd.f32 %v3936_v32, %v3935_v57 }
 0x20c   : > { %v7337_v35 = vadd.f32 %v3663_v36, %v3662_v39  ;;  %v3655_v20 = vadd.f32 %v3654_v61, %v3653_v49  ;;  %v3674_v13 = vadd.f32 %v3673_v60, %v3672_v4  ;;  %v7339_v8 = vpop.f32.mrb[44].mxu0  ;;  %v7341_v7 = vpop.f32.mrb[22].mxu1  ;;  %v3666_v19 = vrot.slane %v3665_v44, 4 }
 0x20d   : > { %8477 = vst [vmem:[#allocation19_spill] sm:$0xff] %v7335_v63  ;;  %v3949_v16 = vadd.f32 %v3948_v24, %v3947_v38  ;;  %v3968_v52 = vadd.f32 %v3967_v17, %v3966_v40  ;;  %v3959_v14 = vsel %vm3566_vm2, %v3494_v5, 0.0  ;;  %v7344_v46 = vpop.f32.mrb[45].mxu0  ;;  %v7346_v26 = vpop.f32.mrb[23].mxu1  ;;  %v2885_v39 = vadd.f32 %v7241_v2, %v7173_v45 }
 0x20e   : > { %8478 = vst [vmem:[#allocation20_spill] sm:$0xff] %v7337_v35  ;;  %v3656_v43 = vrot.slane %v3655_v20, 1  ;;  %v3675_v57 = vrot.slane %v3674_v13, 2  ;;  %v3960_v32 = vrot.slane %v3959_v14, 4  ;;  %v7350_v49 = vadd.f32 %v3957_v47, %v3956_v37 }
 0x20f   : > { %v3969_v4 = vrot.slane %v3968_v52, 2  ;;  %v3667_v1 = vadd.f32 %v3666_v19, %v3665_v44  ;;  %v3095_v38 = vadd.f32 %v7243_v12, %v7173_v45  ;;  %v3950_v40 = vrot.slane %v3949_v16, 1 }
 0x210   : > { %8479 = vst [vmem:[#allocation21_spill] sm:$0xff] %v7350_v49  ;;  %v3676_v36 = vadd.f32 %v3675_v57, %v3674_v13  ;;  %v3961_v61 = vadd.f32 %v3960_v32, %v3959_v14  ;;  %v3455_v60 = vmax.f32 %v2885_v39, 0.0  ;;  %v7354_v24 = vpop.f32.mrb[46].mxu0  ;;  %v7356_v17 = vpop.f32.mrb[24].mxu1  ;;  %v7358_v5 = vadd.f32 %v3656_v43, %v3655_v20 }
 0x211   : > { %v3970_v63 = vadd.f32 %v3969_v4, %v3968_v52  ;;  %v3668_v22 = vrot.slane %v3667_v1, 2  ;;  %v3497_v2 = vmax.f32 %v3095_v38, 0.0  ;;  %v7360_v37 = vpop.f32.mrb[47].mxu0  ;;  %v7362_v47 = vpop.f32.mrb[25].mxu1  ;;  %v2880_v14 = vadd.f32 %v7173_v45, %v7246_v21 }
 0x212   : > { %8480 = vst [vmem:[#allocation22_spill] sm:$0xff] %v7358_v5  ;;  %v3677_v19 = vrot.slane %v3676_v36, 1  ;;  %v3962_v44 = vrot.slane %v3961_v61, 2  ;;  %v3686_v12 = vsel %vm3566_vm2, %v3455_v60, 0.0  ;;  %v7368_v43 = vadd.f32 %v3950_v40, %v3949_v16 }
 0x213   : > { %v3971_v13 = vrot.slane %v3970_v63, 1  ;;  %v3669_v57 = vadd.f32 %v3668_v22, %v3667_v1  ;;  %v3687_v32 = vrot.slane %v3686_v12, 4  ;;  %v3980_v20 = vsel %vm3566_vm2, %v3497_v2, 0.0 }
 0x214   : > { %8481 = vst [vmem:[#allocation23_spill] sm:$0xff] %v7368_v43  ;;  %v3963_v52 = vadd.f32 %v3962_v44, %v3961_v61  ;;  %v3981_v39 = vrot.slane %v3980_v20, 4  ;;  %v3454_v4 = vmax.f32 %v2880_v14, 0.0  ;;  %v7370_v38 = vpop.f32.mrb[48].mxu0  ;;  %v7372_v49 = vpop.f32.mrb[26].mxu1  ;;  %v7374_v18 = vadd.f32 %v3677_v19, %v3676_v36 }
 0x215   : > { %v3670_v60 = vrot.slane %v3669_v57, 1  ;;  %v3688_v54 = vadd.f32 %v3687_v32, %v3686_v12  ;;  %v3090_v21 = vadd.f32 %v7173_v45, %v7248_v59  ;;  %v7378_v22 = vpop.f32.mrb[49].mxu0  ;;  %v7380_v1 = vpop.f32.mrb[27].mxu1  ;;  %v7382_v16 = vadd.f32 %v3971_v13, %v3970_v63 }
 0x216   : > { %8482 = vst [vmem:[#allocation24_spill] sm:$0xff] %v7374_v18  ;;  %v3982_v40 = vadd.f32 %v3981_v39, %v3980_v20  ;;  %v3679_v61 = vsel %vm3566_vm2, %v3454_v4, 0.0  ;;  %v2895_v2 = vadd.f32 %v7254_v15, %v7173_v45  ;;  %v3964_v44 = vrot.slane %v3963_v52, 1 }
 0x217   : > { %8483 = vst [vmem:[#allocation25_spill] sm:$0xff] %v7382_v16  ;;  %v3689_v36 = vrot.slane %v3688_v54, 2  ;;  %v3680_v19 = vrot.slane %v3679_v61, 4  ;;  %v3496_v14 = vmax.f32 %v3090_v21, 0.0  ;;  %v7387_v12 = vadd.f32 %v3670_v60, %v3669_v57 }
 0x218   : > { %v3983_v32 = vrot.slane %v3982_v40, 2  ;;  %v3457_v59 = vmax.f32 %v2895_v2, 0.0  ;;  %v3105_v43 = vadd.f32 %v7256_v53, %v7173_v45  ;;  %v7391_v3 = vpop.f32.mrb[50].mxu0  ;;  %v7393_v63 = vpop.f32.mrb[28].mxu1  ;;  %v2890_v15 = vadd.f32 %v7173_v45, %v7259_v42 }
 0x219   : > { %8484 = vst [vmem:[#allocation26_spill] sm:$0xff] %v7387_v12  ;;  %v3690_v13 = vadd.f32 %v3689_v36, %v3688_v54  ;;  %v3681_v20 = vadd.f32 %v3680_v19, %v3679_v61  ;;  %v3973_v39 = vsel %vm3566_vm2, %v3496_v14, 0.0  ;;  %v7398_v4 = vpop.f32.mrb[51].mxu0  ;;  %v7400_v57 = vpop.f32.mrb[29].mxu1  ;;  %v7403_v54 = vadd.f32 %v3964_v44, %v3963_v52 }
 0x21a   : > { %v3984_v60 = vadd.f32 %v3983_v32, %v3982_v40  ;;  %v3974_v21 = vrot.slane %v3973_v39, 4  ;;  %v3700_v2 = vsel %vm3566_vm2, %v3457_v59, 0.0  ;;  %v3499_v53 = vmax.f32 %v3105_v43, 0.0 }
 0x21b   : > { %v3691_v16 = vrot.slane %v3690_v13, 1  ;;  %v3682_v51 = vrot.slane %v3681_v20, 2  ;;  %v3701_v18 = vrot.slane %v3700_v2, 4  ;;  %v3456_v12 = vmax.f32 %v2890_v15, 0.0  ;;  %8485 = vst [vmem:[#allocation27_spill] sm:$0xff] %v7403_v54 }
 0x21c   : > { %v3975_v61 = vadd.f32 %v3974_v21, %v3973_v39  ;;  %v3994_v36 = vsel %vm3566_vm2, %v3499_v53, 0.0  ;;  %v3100_v42 = vadd.f32 %v7173_v45, %v7261_v11  ;;  %v7408_v19 = vpop.f32.mrb[52].mxu0  ;;  %v7410_v14 = vpop.f32.mrb[30].mxu1  ;;  %v3985_v40 = vrot.slane %v3984_v60, 1 }
 0x21d   : > { %v3683_v32 = vadd.f32 %v3682_v51, %v3681_v20  ;;  %v3702_v59 = vadd.f32 %v3701_v18, %v3700_v2  ;;  %v3995_v43 = vrot.slane %v3994_v36, 4  ;;  %v7412_v35 = vpop.f32.mrb[53].mxu0  ;;  %v7414_v5 = vpop.f32.mrb[31].mxu1  ;;  %v7416_v52 = vadd.f32 %v3691_v16, %v3690_v13 }
 0x21e   : > { %v3976_v44 = vrot.slane %v3975_v61, 2  ;;  %v3693_v39 = vsel %vm3566_vm2, %v3456_v12, 0.0  ;;  %v3498_v15 = vmax.f32 %v3100_v42, 0.0  ;;  %v2905_v51 = vadd.f32 %v7270_v50, %v7173_v45 }
 0x21f   : > { %8486 = vst [vmem:[#allocation28_spill] sm:$0xff] %v7416_v52  ;;  %v3684_v21 = vrot.slane %v3683_v32, 1  ;;  %v3703_v11 = vrot.slane %v3702_v59, 2  ;;  %v3996_v53 = vadd.f32 %v3995_v43, %v3994_v36  ;;  %v3694_v54 = vrot.slane %v3693_v39, 4 }
 0x220   : > { %v3977_v41 = vadd.f32 %v3976_v44, %v3975_v61  ;;  %v3987_v55 = vsel %vm3566_vm2, %v3498_v15, 0.0  ;;  %v3115_v18 = vadd.f32 %v7272_v33, %v7173_v45  ;;  %v7424_v20 = vpop.f32.mrb[54].mxu0  ;;  %v7426_v16 = vpop.f32.mrb[32].mxu1  ;;  %v7428_v13 = vadd.f32 %v3985_v40, %v3984_v60 }
 0x221   : > { %8487 = vst [vmem:[#allocation29_spill] sm:$0xff] %v7426_v16  ;;  %v3704_v12 = vadd.f32 %v3703_v11, %v3702_v59  ;;  %v3997_v2 = vrot.slane %v3996_v53, 2  ;;  %v3695_v42 = vadd.f32 %v3694_v54, %v3693_v39  ;;  %v7430_v36 = vpop.f32.mrb[55].mxu0  ;;  %v7432_v61 = vpop.f32.mrb[33].mxu1  ;;  %v3988_v44 = vrot.slane %v3987_v55, 4 }
 0x222   : > { %8488 = vst [vmem:[#allocation30_spill] sm:$0xff] %v7428_v13  ;;  %v3978_v43 = vrot.slane %v3977_v41, 1  ;;  %v3459_v15 = vmax.f32 %v2905_v51, 0.0  ;;  %v3501_v50 = vmax.f32 %v3115_v18, 0.0  ;;  %v2900_v10 = vadd.f32 %v7173_v45, %v7278_v31 }
 0x223   : > { %v3705_v52 = vrot.slane %v3704_v12, 1  ;;  %v3998_v27 = vadd.f32 %v3997_v2, %v3996_v53  ;;  %v3696_v33 = vrot.slane %v3695_v42, 2  ;;  %v7436_v16 = vadd.f32 %v3684_v21, %v3683_v32 }
 0x224   : > { %v3989_v60 = vadd.f32 %v3988_v44, %v3987_v55  ;;  %v3714_v40 = vsel %vm3566_vm2, %v3459_v15, 0.0  ;;  %v4008_v54 = vsel %vm3566_vm2, %v3501_v50, 0.0  ;;  %v7440_v59 = vpop.f32.mrb[56].mxu0  ;;  %v7442_v39 = vpop.f32.mrb[34].mxu1  ;;  %v7444_v11 = vadd.f32 %v3978_v43, %v3977_v41 }
 0x225   : > { %8489 = vst [vmem:[#allocation31_spill] sm:$0xff] %v7436_v16  ;;  %v3999_v51 = vrot.slane %v3998_v27, 1  ;;  %v3697_v18 = vadd.f32 %v3696_v33, %v3695_v42  ;;  %v3715_v53 = vrot.slane %v3714_v40, 4  ;;  %v7446_v2 = vpop.f32.mrb[57].mxu0  ;;  %v7448_v13 = vpop.f32.mrb[35].mxu1  ;;  %v4009_v32 = vrot.slane %v4008_v54, 4 }
 0x226   : > { %8490 = vst [vmem:[#allocation32_spill] sm:$0xff] %v7444_v11  ;;  %8491 = vst [vmem:[#allocation33_spill] sm:$0xff] %v7446_v2  ;;  %v3990_v31 = vrot.slane %v3989_v60, 2  ;;  %v3458_v55 = vmax.f32 %v2900_v10, 0.0  ;;  %v3110_v21 = vadd.f32 %v7173_v45, %v7280_v48  ;;  %v7452_v44 = vadd.f32 %v3705_v52, %v3704_v12 }
 0x227   : > { %8492 = vst [vmem:[#allocation34_spill] sm:$0xff] %v7448_v13  ;;  %v3698_v15 = vrot.slane %v3697_v18, 1  ;;  %v3716_v50 = vadd.f32 %v3715_v53, %v3714_v40  ;;  %v2915_v41 = vadd.f32 %v7288_v30, %v7173_v45  ;;  %v4010_v42 = vadd.f32 %v4009_v32, %v4008_v54 }
 0x228   : > { %8493 = vst [vmem:[#allocation35_spill] sm:$0xff] %v7452_v44  ;;  %v3991_v43 = vadd.f32 %v3990_v31, %v3989_v60  ;;  %v3707_v33 = vsel %vm3566_vm2, %v3458_v55, 0.0  ;;  %v3500_v11 = vmax.f32 %v3110_v21, 0.0  ;;  %v7457_v16 = vpop.f32.mrb[58].mxu0  ;;  %v7459_v13 = vpop.f32.mrb[36].mxu1  ;;  %v7461_v10 = vadd.f32 %v3999_v51, %v3998_v27 }
 0x229   : > { %8494 = vst [vmem:[#allocation36_spill] sm:$0xff] %v7459_v13  ;;  %v3717_v2 = vrot.slane %v3716_v50, 2  ;;  %v3708_v48 = vrot.slane %v3707_v33, 4  ;;  %v3461_v52 = vmax.f32 %v2915_v41, 0.0  ;;  %v7463_v12 = vpop.f32.mrb[59].mxu0  ;;  %v7465_v40 = vpop.f32.mrb[37].mxu1  ;;  %v3125_v54 = vadd.f32 %v7290_v0, %v7173_v45 }
 0x22a   : > { %8495 = vst [vmem:[#allocation37_spill] sm:$0xff] %v7461_v10  ;;  %8496 = vst [vmem:[#allocation38_spill] sm:$0xff] %v7463_v12  ;;  %v3992_v53 = vrot.slane %v3991_v43, 1  ;;  %v4011_v30 = vrot.slane %v4010_v42, 2  ;;  %v4001_v60 = vsel %vm3566_vm2, %v3500_v11, 0.0  ;;  %v7471_v51 = vadd.f32 %v3698_v15, %v3697_v18 }
 0x22b   : > { %8497 = vst [vmem:[#allocation39_spill] sm:$0xff] %v7465_v40  ;;  %v3718_v31 = vadd.f32 %v3717_v2, %v3716_v50  ;;  %v3709_v32 = vadd.f32 %v3708_v48, %v3707_v33  ;;  %v4002_v55 = vrot.slane %v4001_v60, 4  ;;  %v3728_v27 = vsel %vm3566_vm2, %v3461_v52, 0.0 }
 0x22c   : > { %8498 = vst [vmem:[#allocation40_spill] sm:$0xff] %v7471_v51  ;;  %v4012_v21 = vadd.f32 %v4011_v30, %v4010_v42  ;;  %v3729_v41 = vrot.slane %v3728_v27, 4  ;;  %v3503_v10 = vmax.f32 %v3125_v54, 0.0  ;;  %v7473_v44 = vpop.f32.mrb[60].mxu0  ;;  %v7475_v40 = vpop.f32.mrb[38].mxu1  ;;  %v2910_v0 = vadd.f32 %v7173_v45, %v7294_v29 }
 0x22d   : > { %v3719_v12 = vrot.slane %v3718_v31, 1  ;;  %v3710_v13 = vrot.slane %v3709_v32, 2  ;;  %v4003_v11 = vadd.f32 %v4002_v55, %v4001_v60  ;;  %v7479_v2 = vpop.f32.mrb[61].mxu0  ;;  %v7481_v50 = vpop.f32.mrb[39].mxu1  ;;  %v7483_v33 = vadd.f32 %v3992_v53, %v3991_v43 }
 0x22e   : > { %8499 = vst [vmem:[#allocation41_spill] sm:$0xff] %v7479_v2  ;;  %8500 = vst [vmem:[#allocation42_spill] sm:$0xff] %v7481_v50  ;;  %v3730_v18 = vadd.f32 %v3729_v41, %v3728_v27  ;;  %v4022_v15 = vsel %vm3566_vm2, %v3503_v10, 0.0  ;;  %v3120_v42 = vadd.f32 %v7173_v45, %v7296_v25  ;;  %v4013_v48 = vrot.slane %v4012_v21, 1 }
 0x22f   : > { %8501 = vst [vmem:[#allocation43_spill] sm:$0xff] %v7483_v33  ;;  %v3711_v52 = vadd.f32 %v3710_v13, %v3709_v32  ;;  %v4004_v30 = vrot.slane %v4003_v11, 2  ;;  %v4023_v54 = vrot.slane %v4022_v15, 4  ;;  %v7488_v60 = vadd.f32 %v3719_v12, %v3718_v31 }
 0x230   : > { %v3731_v55 = vrot.slane %v3730_v18, 2  ;;  %v3460_v29 = vmax.f32 %v2910_v0, 0.0  ;;  %v3502_v51 = vmax.f32 %v3120_v42, 0.0  ;;  %v7490_v2 = vpop.f32.mrb[62].mxu0  ;;  %v7492_v50 = vpop.f32.mrb[40].mxu1  ;;  %v2925_v10 = vadd.f32 %v7306_v6, %v7173_v45 }
 0x231   : > { %8502 = vst [vmem:[#allocation44_spill] sm:$0xff] %v7488_v60  ;;  %v3712_v43 = vrot.slane %v3711_v52, 1  ;;  %v4005_v53 = vadd.f32 %v4004_v30, %v4003_v11  ;;  %v4024_v27 = vadd.f32 %v4023_v54, %v4022_v15  ;;  %v7496_v25 = vpop.f32.mrb[63].mxu0  ;;  %v7498_v13 = vpop.f32.mrb[41].mxu1  ;;  %v3135_v41 = vadd.f32 %v7308_v9, %v7173_v45 }
 0x232   : > { %8503 = vst [vmem:[#allocation45_spill] sm:$0xff] %v7498_v13  ;;  %v3732_v32 = vadd.f32 %v3731_v55, %v3730_v18  ;;  %v3721_v12 = vsel %vm3566_vm2, %v3460_v29, 0.0  ;;  %v4015_v31 = vsel %vm3566_vm2, %v3502_v51, 0.0  ;;  %v7504_v0 = vadd.f32 %v4013_v48, %v4012_v21 }
 0x233   : > { %v4006_v42 = vrot.slane %v4005_v53, 1  ;;  %v4025_v11 = vrot.slane %v4024_v27, 2  ;;  %v3722_v15 = vrot.slane %v3721_v12, 4  ;;  %v4016_v54 = vrot.slane %v4015_v31, 4 }
 0x234   : > { %8504 = vst [vmem:[#allocation46_spill] sm:$0xff] %v7504_v0  ;;  %v3733_v30 = vrot.slane %v3732_v32, 1  ;;  %v3463_v6 = vmax.f32 %v2925_v10, 0.0  ;;  %v3505_v33 = vmax.f32 %v3135_v41, 0.0  ;;  %v7506_v60 = vpop.f32.mrb[42].mxu1  ;;  %v7508_v13 = vpop.f32.mrb[64].mxu0  ;;  %v7510_v18 = vadd.f32 %v3712_v43, %v3711_v52 }
 0x235   : > { %8505 = vst [vmem:[#allocation47_spill] sm:$0xff] %v7506_v60  ;;  %v4026_v55 = vadd.f32 %v4025_v11, %v4024_v27  ;;  %v3723_v51 = vadd.f32 %v3722_v15, %v3721_v12  ;;  %v2920_v9 = vadd.f32 %v7173_v45, %v7314_v58  ;;  %v7514_v21 = vpop.f32.mrb[43].mxu1  ;;  %v7516_v48 = vpop.f32.mrb[65].mxu0  ;;  %v7518_v29 = vadd.f32 %v4006_v42, %v4005_v53 }
 0x236   : > { %8506 = vst [vmem:[#allocation48_spill] sm:$0xff] %v7510_v18  ;;  %8507 = vst [vmem:[#allocation49_spill] sm:$0xff] %v7514_v21  ;;  %v4017_v0 = vadd.f32 %v4016_v54, %v4015_v31  ;;  %v3742_v10 = vsel %vm3566_vm2, %v3463_v6, 0.0  ;;  %v4036_v41 = vsel %vm3566_vm2, %v3505_v33, 0.0  ;;  %v7522_v60 = vadd.f32 %v3733_v30, %v3732_v32 }
 0x237   : > { %8508 = vst [vmem:[#allocation50_spill] sm:$0xff] %v7516_v48  ;;  %8509 = vst [vmem:[#allocation51_spill] sm:$0xff] %v7518_v29  ;;  %v3724_v52 = vrot.slane %v3723_v51, 2  ;;  %v3743_v43 = vrot.slane %v3742_v10, 4  ;;  %v4037_v27 = vrot.slane %v4036_v41, 4  ;;  %v3462_v11 = vmax.f32 %v2920_v9, 0.0 }
 0x238   : > { %8510 = vst [vmem:[#allocation52_spill] sm:$0xff] %v7522_v60  ;;  %v4018_v12 = vrot.slane %v4017_v0, 2  ;;  %v3130_v58 = vadd.f32 %v7173_v45, %v7316_v56  ;;  %v2935_v15 = vadd.f32 %v7324_v28, %v7173_v45  ;;  %v7528_v53 = vpop.f32.mrb[44].mxu1  ;;  %v4027_v31 = vrot.slane %v4026_v55, 1  ;;  %v7530_v33 = vpop.f32.mrb[66].mxu0 }
 0x239   : > { %8511 = vst [vmem:[#allocation53_spill] sm:$0xff] %v7528_v53  ;;  %v3725_v42 = vadd.f32 %v3724_v52, %v3723_v51  ;;  %v3744_v54 = vadd.f32 %v3743_v43, %v3742_v10  ;;  %v4038_v6 = vadd.f32 %v4037_v27, %v4036_v41  ;;  %8512 = vst [vmem:[#allocation54_spill] sm:$0xff] %v7530_v33  ;;  %v3735_v30 = vsel %vm3566_vm2, %v3462_v11, 0.0 }
 0x23a   : > { %v4019_v32 = vadd.f32 %v4018_v12, %v4017_v0  ;;  %v3504_v29 = vmax.f32 %v3130_v58, 0.0  ;;  %v3465_v60 = vmax.f32 %v2935_v15, 0.0  ;;  %v3736_v56 = vrot.slane %v3735_v30, 4  ;;  %v7541_v58 = vpop.f32.mrb[45].mxu1 }
 0x23b   : > { %v3726_v9 = vrot.slane %v3725_v42, 1  ;;  %v3745_v18 = vrot.slane %v3744_v54, 2  ;;  %v4039_v48 = vrot.slane %v4038_v6, 2  ;;  %v3145_v51 = vadd.f32 %v7326_v34, %v7173_v45 }
 0x23c   : > { %v4020_v21 = vrot.slane %v4019_v32, 1  ;;  %v4029_v28 = vsel %vm3566_vm2, %v3504_v29, 0.0  ;;  %v3756_v53 = vsel %vm3566_vm2, %v3465_v60, 0.0  ;;  %v7537_v10 = vadd.f32 %v4027_v31, %v4026_v55 }
 0x23d   : > { %v3746_v41 = vadd.f32 %v3745_v18, %v3744_v54  ;;  %v4040_v0 = vadd.f32 %v4039_v48, %v4038_v6  ;;  %v3737_v52 = vadd.f32 %v3736_v56, %v3735_v30  ;;  %v7539_v43 = vadd.f32 %v3726_v9, %v3725_v42  ;;  %v7551_v48 = vld [vmem:[%s8434_s4] ss:$0 sm:$0xff] }
 0x23e   : > { %8513 = vst [vmem:[#allocation55_spill] sm:$0xff] %v7537_v10  ;;  %v4030_v27 = vrot.slane %v4029_v28, 4  ;;  %v3757_v12 = vrot.slane %v3756_v53, 4  ;;  %v3507_v11 = vmax.f32 %v3145_v51, 0.0  ;;  %v7543_v15 = vadd.f32 %v4020_v21, %v4019_v32 }
 0x23f   : > { %v3747_v29 = vrot.slane %v3746_v41, 1  ;;  %v3738_v33 = vrot.slane %v3737_v52, 2  ;;  %v2930_v60 = vadd.f32 %v7173_v45, %v7330_v62  ;;  %v3140_v31 = vadd.f32 %v7551_v48, %v7332_v23 }
 0x240   : > { %8514 = vst [vmem:[#allocation56_spill] sm:$0xff] %v7543_v15  ;;  %v4031_v34 = vadd.f32 %v4030_v27, %v4029_v28  ;;  %v3758_v55 = vadd.f32 %v3757_v12, %v3756_v53  ;;  %v4050_v18 = vsel %vm3566_vm2, %v3507_v11, 0.0  ;;  %v4041_v21 = vrot.slane %v4040_v0, 1 }
 0x241   : > { %v7555_v42 = vadd.f32 %v3747_v29, %v3746_v41  ;;  %v3739_v54 = vadd.f32 %v3738_v33, %v3737_v52  ;;  %v4051_v6 = vrot.slane %v4050_v18, 4  ;;  %v3464_v45 = vmax.f32 %v2930_v60, 0.0  ;;  %v7563_v33 = vpop.f32.mrb[67].mxu0 }
 0x242   : > { %v4032_v32 = vrot.slane %v4031_v34, 2  ;;  %v3759_v30 = vrot.slane %v3758_v55, 2  ;;  %v3506_v62 = vmax.f32 %v3140_v31, 0.0  ;;  %v2945_v56 = vadd.f32 %v7551_v48, %v7339_v8 }
 0x243   : > { %v3740_v53 = vrot.slane %v3739_v54, 1  ;;  %v4052_v9 = vadd.f32 %v4051_v6, %v4050_v18  ;;  %v3155_v28 = vadd.f32 %v7551_v48, %v7341_v7  ;;  %v3749_v23 = vsel %vm3566_vm2, %v3464_v45, 0.0 }
 0x244   : > { %v4033_v51 = vadd.f32 %v4032_v32, %v4031_v34  ;;  %v3760_v27 = vadd.f32 %v3759_v30, %v3758_v55  ;;  %v4043_v41 = vsel %vm3566_vm2, %v3506_v62, 0.0  ;;  %v7565_v52 = vadd.f32 %v4041_v21, %v4040_v0 }
 0x245   : > { %v4053_v12 = vrot.slane %v4052_v9, 2  ;;  %v3750_v11 = vrot.slane %v3749_v23, 4  ;;  %v4044_v29 = vrot.slane %v4043_v41, 4  ;;  %v3467_v31 = vmax.f32 %v2945_v56, 0.0 }
 0x246   : > { %8515 = vst [vmem:[#allocation57_spill] sm:$0xff] %v7565_v52  ;;  %v4034_v60 = vrot.slane %v4033_v51, 1  ;;  %v3761_v18 = vrot.slane %v3760_v27, 1  ;;  %v3509_v8 = vmax.f32 %v3155_v28, 0.0  ;;  %v2940_v34 = vadd.f32 %v7551_v48, %v7344_v46 }
 0x247   : > { %v4054_v6 = vadd.f32 %v4053_v12, %v4052_v9  ;;  %v3751_v10 = vadd.f32 %v3750_v11, %v3749_v23  ;;  %v4045_v7 = vadd.f32 %v4044_v29, %v4043_v41  ;;  %v7569_v55 = vadd.f32 %v3740_v53, %v3739_v54 }
 0x248   : > { %v7571_v32 = vadd.f32 %v4034_v60, %v4033_v51  ;;  %v3770_v0 = vsel %vm3566_vm2, %v3467_v31, 0.0  ;;  %v4064_v21 = vsel %vm3566_vm2, %v3509_v8, 0.0  ;;  %v7575_v30 = vadd.f32 %v3761_v18, %v3760_v27  ;;  %v7582_v60 = vpop.f32.mrb[46].mxu1 }
 0x249   : > { %v3752_v45 = vrot.slane %v3751_v10, 2  ;;  %v4046_v62 = vrot.slane %v4045_v7, 2  ;;  %v3771_v56 = vrot.slane %v3770_v0, 4  ;;  %v4065_v28 = vrot.slane %v4064_v21, 4 }
 0x24a   : > { %8516 = vst [vmem:[#allocation58_spill] sm:$0xff] %v7571_v32  ;;  %v3466_v9 = vmax.f32 %v2940_v34, 0.0  ;;  %v3150_v23 = vadd.f32 %v7551_v48, %v7346_v26  ;;  %v2955_v46 = vadd.f32 %v7551_v48, %v7354_v24  ;;  %v4055_v54 = vrot.slane %v4054_v6, 1  ;;  %v7596_v32 = vpop.f32.mrb[68].mxu0 }
 0x24b   : > { %v3753_v53 = vadd.f32 %v3752_v45, %v3751_v10  ;;  %v4047_v51 = vadd.f32 %v4046_v62, %v4045_v7  ;;  %v3772_v41 = vadd.f32 %v3771_v56, %v3770_v0  ;;  %v4066_v12 = vadd.f32 %v4065_v28, %v4064_v21 }
 0x24c   : > { %v3763_v11 = vsel %vm3566_vm2, %v3466_v9, 0.0  ;;  %v3508_v27 = vmax.f32 %v3150_v23, 0.0  ;;  %v3469_v29 = vmax.f32 %v2955_v46, 0.0  ;;  %v3165_v10 = vadd.f32 %v7551_v48, %v7356_v17 }
 0x24d   : > { %v3754_v18 = vrot.slane %v3753_v53, 1  ;;  %v4048_v31 = vrot.slane %v4047_v51, 1  ;;  %v3773_v8 = vrot.slane %v3772_v41, 2  ;;  %v3764_v34 = vrot.slane %v3763_v11, 4 }
 0x24e   : > { %v4067_v52 = vrot.slane %v4066_v12, 2  ;;  %v4057_v26 = vsel %vm3566_vm2, %v3508_v27, 0.0  ;;  %v3784_v24 = vsel %vm3566_vm2, %v3469_v29, 0.0  ;;  %v7588_v7 = vadd.f32 %v4055_v54, %v4054_v6 }
 0x24f   : > { %v7590_v0 = vadd.f32 %v3754_v18, %v3753_v53  ;;  %v3774_v21 = vadd.f32 %v3773_v8, %v3772_v41  ;;  %v3765_v45 = vadd.f32 %v3764_v34, %v3763_v11  ;;  %v4058_v56 = vrot.slane %v4057_v26, 4 }
 0x250   : > { %8517 = vst [vmem:[#allocation59_spill] sm:$0xff] %v7588_v7  ;;  %v4068_v62 = vadd.f32 %v4067_v52, %v4066_v12  ;;  %v3785_v28 = vrot.slane %v3784_v24, 4  ;;  %v3511_v9 = vmax.f32 %v3165_v10, 0.0  ;;  %v2950_v27 = vadd.f32 %v7551_v48, %v7360_v37 }
 0x251   : > { %v3775_v23 = vrot.slane %v3774_v21, 1  ;;  %v3766_v46 = vrot.slane %v3765_v45, 2  ;;  %v3160_v29 = vadd.f32 %v7551_v48, %v7362_v47  ;;  %v7598_v17 = vadd.f32 %v4048_v31, %v4047_v51 }
 0x252   : > { %v4059_v6 = vadd.f32 %v4058_v56, %v4057_v26  ;;  %v3786_v54 = vadd.f32 %v3785_v28, %v3784_v24  ;;  %v4078_v53 = vsel %vm3566_vm2, %v3511_v9, 0.0  ;;  %v4069_v52 = vrot.slane %v4068_v62, 1 }
 0x253   : > { %8518 = vst [vmem:[#allocation60_spill] sm:$0xff] %v7598_v17  ;;  %v3767_v41 = vadd.f32 %v3766_v46, %v3765_v45  ;;  %v4079_v12 = vrot.slane %v4078_v53, 4  ;;  %v3468_v11 = vmax.f32 %v2950_v27, 0.0  ;;  %v7601_v18 = vadd.f32 %v3775_v23, %v3774_v21  ;;  %v7607_v45 = vpop.f32.mrb[47].mxu1 }
 0x254   : > { %v4060_v8 = vrot.slane %v4059_v6, 2  ;;  %v3787_v34 = vrot.slane %v3786_v54, 2  ;;  %v3510_v37 = vmax.f32 %v3160_v29, 0.0  ;;  %v2965_v51 = vadd.f32 %v7551_v48, %v7370_v38 }
 0x255   : > { %v3768_v10 = vrot.slane %v3767_v41, 1  ;;  %v4080_v7 = vadd.f32 %v4079_v12, %v4078_v53  ;;  %v3777_v47 = vsel %vm3566_vm2, %v3468_v11, 0.0  ;;  %v7609_v28 = vadd.f32 %v4069_v52, %v4068_v62 }
 0x256   : > { %v4061_v31 = vadd.f32 %v4060_v8, %v4059_v6  ;;  %v3788_v26 = vadd.f32 %v3787_v34, %v3786_v54  ;;  %v3778_v24 = vrot.slane %v3777_v47, 4  ;;  %v4071_v56 = vsel %vm3566_vm2, %v3510_v37, 0.0 }
 0x257   : > { %8519 = vst [vmem:[#allocation61_spill] sm:$0xff] %v7609_v28  ;;  %v4081_v21 = vrot.slane %v4080_v7, 2  ;;  %v4072_v9 = vrot.slane %v4071_v56, 4  ;;  %v3471_v23 = vmax.f32 %v2965_v51, 0.0  ;;  %v3175_v53 = vadd.f32 %v7551_v48, %v7372_v49 }
 0x258   : > { %v4062_v46 = vrot.slane %v4061_v31, 1  ;;  %v3789_v27 = vrot.slane %v3788_v26, 1  ;;  %v3779_v29 = vadd.f32 %v3778_v24, %v3777_v47  ;;  %v2960_v54 = vadd.f32 %v7551_v48, %v7378_v22 }
 0x259   : > { %v4082_v12 = vadd.f32 %v4081_v21, %v4080_v7  ;;  %v4073_v38 = vadd.f32 %v4072_v9, %v4071_v56  ;;  %v3798_v6 = vsel %vm3566_vm2, %v3471_v23, 0.0  ;;  %v7616_v11 = vadd.f32 %v3768_v10, %v3767_v41  ;;  %v7624_v56 = vpop.f32.mrb[69].mxu0 }
 0x25a   : > { %v7618_v62 = vadd.f32 %v4062_v46, %v4061_v31  ;;  %v3780_v52 = vrot.slane %v3779_v29, 2  ;;  %v3799_v8 = vrot.slane %v3798_v6, 4  ;;  %v3513_v51 = vmax.f32 %v3175_v53, 0.0 }
 0x25b   : > { %v4083_v34 = vrot.slane %v4082_v12, 1  ;;  %v4074_v37 = vrot.slane %v4073_v38, 2  ;;  %v3470_v47 = vmax.f32 %v2960_v54, 0.0  ;;  %v3170_v49 = vadd.f32 %v7551_v48, %v7380_v1 }
 0x25c   : > { %8520 = vst [vmem:[#allocation62_spill] sm:$0xff] %v7618_v62  ;;  %v3781_v24 = vadd.f32 %v3780_v52, %v3779_v29  ;;  %v3800_v28 = vadd.f32 %v3799_v8, %v3798_v6  ;;  %v2975_v7 = vadd.f32 %v7551_v48, %v7391_v3  ;;  %v7626_v22 = vadd.f32 %v3789_v27, %v3788_v26 }
 0x25d   : > { %v4075_v41 = vadd.f32 %v4074_v37, %v4073_v38  ;;  %v4092_v10 = vsel %vm3566_vm2, %v3513_v51, 0.0  ;;  %v3791_v31 = vsel %vm3566_vm2, %v3470_v47, 0.0  ;;  %v7630_v29 = vadd.f32 %v4083_v34, %v4082_v12 }
 0x25e   : > { %v3782_v21 = vrot.slane %v3781_v24, 1  ;;  %v3801_v9 = vrot.slane %v3800_v28, 2  ;;  %v4093_v23 = vrot.slane %v4092_v10, 4  ;;  %v3792_v46 = vrot.slane %v3791_v31, 4 }
 0x25f   : > { %8521 = vst [vmem:[#allocation63_spill] sm:$0xff] %v7630_v29  ;;  %v3512_v53 = vmax.f32 %v3170_v49, 0.0  ;;  %v3473_v1 = vmax.f32 %v2975_v7, 0.0  ;;  %v3185_v3 = vadd.f32 %v7551_v48, %v7393_v63  ;;  %v4076_v6 = vrot.slane %v4075_v41, 1 }
 0x260   : > { %v3802_v54 = vadd.f32 %v3801_v9, %v3800_v28  ;;  %v4094_v26 = vadd.f32 %v4093_v23, %v4092_v10  ;;  %v3793_v27 = vadd.f32 %v3792_v46, %v3791_v31  ;;  %v7634_v38 = vadd.f32 %v3782_v21, %v3781_v24  ;;  %v7643_v24 = vpop.f32.mrb[48].mxu1 }
 0x261   : > { %v4085_v52 = vsel %vm3566_vm2, %v3512_v53, 0.0  ;;  %v3812_v8 = vsel %vm3566_vm2, %v3473_v1, 0.0  ;;  %v3515_v37 = vmax.f32 %v3185_v3, 0.0  ;;  %v2970_v63 = vadd.f32 %v7551_v48, %v7398_v4 }
 0x262   : > { %v3803_v51 = vrot.slane %v3802_v54, 1  ;;  %v4095_v47 = vrot.slane %v4094_v26, 2  ;;  %v3794_v12 = vrot.slane %v3793_v27, 2  ;;  %v4086_v34 = vrot.slane %v4085_v52, 4 }
 0x263   : > { %v3813_v49 = vrot.slane %v3812_v8, 4  ;;  %v4106_v7 = vsel %vm3566_vm2, %v3515_v37, 0.0  ;;  %v3180_v28 = vadd.f32 %v7551_v48, %v7400_v57  ;;  %v7645_v10 = vadd.f32 %v4076_v6, %v4075_v41  ;;  %v7653_v6 = vpop.f32.mrb[70].mxu0 }
 0x264   : > { %v4096_v31 = vadd.f32 %v4095_v47, %v4094_v26  ;;  %v3795_v21 = vadd.f32 %v3794_v12, %v3793_v27  ;;  %v4087_v9 = vadd.f32 %v4086_v34, %v4085_v52  ;;  %v4107_v46 = vrot.slane %v4106_v7, 4  ;;  %8523 = vst [vmem:[#allocation65_spill] sm:$0xff] %v7653_v6 }
 0x265   : > { %8522 = vst [vmem:[#allocation64_spill] sm:$0xff] %v7645_v10  ;;  %v3814_v23 = vadd.f32 %v3813_v49, %v3812_v8  ;;  %v3472_v53 = vmax.f32 %v2970_v63, 0.0  ;;  %v3514_v1 = vmax.f32 %v3180_v28, 0.0  ;;  %v7647_v3 = vadd.f32 %v3803_v51, %v3802_v54 }
 0x266   : > { %v4097_v37 = vrot.slane %v4096_v31, 1  ;;  %v4088_v62 = vrot.slane %v4087_v9, 2  ;;  %v2985_v4 = vadd.f32 %v7551_v48, %v7408_v19  ;;  %v4108_v57 = vadd.f32 %v4107_v46, %v4106_v7 }
 0x267   : > { %v3815_v17 = vrot.slane %v3814_v23, 2  ;;  %v3805_v15 = vsel %vm3566_vm2, %v3472_v53, 0.0  ;;  %v4099_v41 = vsel %vm3566_vm2, %v3514_v1, 0.0  ;;  %v3796_v27 = vrot.slane %v3795_v21, 1 }
 0x268   : > { %v7655_v26 = vadd.f32 %v4097_v37, %v4096_v31  ;;  %v4089_v52 = vadd.f32 %v4088_v62, %v4087_v9  ;;  %v3806_v8 = vrot.slane %v3805_v15, 4  ;;  %v4109_v51 = vrot.slane %v4108_v57, 2 }
 0x269   : > { %v3816_v54 = vadd.f32 %v3815_v17, %v3814_v23  ;;  %v4100_v47 = vrot.slane %v4099_v41, 4  ;;  %v3475_v12 = vmax.f32 %v2985_v4, 0.0  ;;  %v3195_v19 = vadd.f32 %v7551_v48, %v7410_v14 }
 0x26a   : > { %8524 = vst [vmem:[#allocation66_spill] sm:$0xff] %v7655_v26  ;;  %v4090_v34 = vrot.slane %v4089_v52, 1  ;;  %v3807_v49 = vadd.f32 %v3806_v8, %v3805_v15  ;;  %v2980_v7 = vadd.f32 %v7551_v48, %v7412_v35  ;;  %v4110_v28 = vadd.f32 %v4109_v51, %v4108_v57  ;;  %v7669_v57 = vpop.f32.mrb[49].mxu1 }
 0x26b   : > { %v3817_v63 = vrot.slane %v3816_v54, 1  ;;  %v4101_v46 = vadd.f32 %v4100_v47, %v4099_v41  ;;  %v3826_v31 = vsel %vm3566_vm2, %v3475_v12, 0.0  ;;  %v7662_v53 = vadd.f32 %v3796_v27, %v3795_v21  ;;  %8526 = vst [vmem:[#allocation68_spill] sm:$0xff] %v7669_v57  ;;  %v8563_v57 = vld [vmem:[#allocation18_spill] sm:$0xff] }
 0x26c   : > { %v3808_v62 = vrot.slane %v3807_v49, 2  ;;  %v3827_v17 = vrot.slane %v3826_v31, 4  ;;  %v3517_v9 = vmax.f32 %v3195_v19, 0.0  ;;  %v7664_v23 = vadd.f32 %v4090_v34, %v4089_v52 }
 0x26d   : > { %v4111_v1 = vrot.slane %v4110_v28, 1  ;;  %v4102_v15 = vrot.slane %v4101_v46, 2  ;;  %v3474_v37 = vmax.f32 %v2980_v7, 0.0  ;;  %v3190_v35 = vadd.f32 %v7551_v48, %v7414_v5 }
 0x26e   : > { %8525 = vst [vmem:[#allocation67_spill] sm:$0xff] %v7664_v23  ;;  %v3809_v4 = vadd.f32 %v3808_v62, %v3807_v49  ;;  %v3828_v14 = vadd.f32 %v3827_v17, %v3826_v31  ;;  %v4120_v8 = vsel %vm3566_vm2, %v3517_v9, 0.0  ;;  %v7671_v41 = vadd.f32 %v3817_v63, %v3816_v54  ;;  %v8528_v31 = vld [vmem:[#allocation29_spill] sm:$0xff] }
 0x26f   : > { %v4103_v21 = vadd.f32 %v4102_v15, %v4101_v46  ;;  %v4121_v27 = vrot.slane %v4120_v8, 4  ;;  %v3819_v51 = vsel %vm3566_vm2, %v3474_v37, 0.0  ;;  %v3516_v34 = vmax.f32 %v3190_v35, 0.0  ;;  %v7683_v35 = vpop.f32.mrb[71].mxu0 }
 0x270   : > { %v3810_v52 = vrot.slane %v3809_v4, 1  ;;  %v3829_v47 = vrot.slane %v3828_v14, 2  ;;  %v3820_v12 = vrot.slane %v3819_v51, 4  ;;  %v7674_v19 = vadd.f32 %v4111_v1, %v4110_v28  ;;  %8529 = vst [vmem:[#allocation29_spill] sm:$0xff] %v7683_v35 }
 0x271   : > { %v4122_v49 = vadd.f32 %v4121_v27, %v4120_v8  ;;  %v2995_v7 = vadd.f32 %v7551_v48, %v7424_v20  ;;  %v3205_v5 = vadd.f32 %v7551_v48, %v8528_v31  ;;  %v4104_v62 = vrot.slane %v4103_v21, 1 }
 0x272   : > { %8527 = vst [vmem:[#allocation69_spill] sm:$0xff] %v7674_v19  ;;  %v3830_v54 = vadd.f32 %v3829_v47, %v3828_v14  ;;  %v3821_v63 = vadd.f32 %v3820_v12, %v3819_v51  ;;  %v4113_v46 = vsel %vm3566_vm2, %v3516_v34, 0.0  ;;  %v7681_v17 = vadd.f32 %v3810_v52, %v3809_v4 }
 0x273   : > { %v4123_v9 = vrot.slane %v4122_v49, 2  ;;  %v4114_v15 = vrot.slane %v4113_v46, 4  ;;  %v3477_v37 = vmax.f32 %v2995_v7, 0.0  ;;  %v3519_v8 = vmax.f32 %v3205_v5, 0.0 }
 0x274   : > { %v3831_v28 = vrot.slane %v3830_v54, 1  ;;  %v3822_v1 = vrot.slane %v3821_v63, 2  ;;  %v2990_v20 = vadd.f32 %v7551_v48, %v7430_v36  ;;  %v3200_v51 = vadd.f32 %v7551_v48, %v7432_v61 }
 0x275   : > { %v4124_v27 = vadd.f32 %v4123_v9, %v4122_v49  ;;  %v4115_v31 = vadd.f32 %v4114_v15, %v4113_v46  ;;  %v3840_v14 = vsel %vm3566_vm2, %v3477_v37, 0.0  ;;  %v7690_v4 = vadd.f32 %v4104_v62, %v4103_v21 }
 0x276   : > { %v3823_v52 = vadd.f32 %v3822_v1, %v3821_v63  ;;  %v3841_v47 = vrot.slane %v3840_v14, 4  ;;  %v4134_v12 = vsel %vm3566_vm2, %v3519_v8, 0.0  ;;  %v3476_v5 = vmax.f32 %v2990_v20, 0.0 }
 0x277   : > { %8530 = vst [vmem:[#allocation70_spill] sm:$0xff] %v7690_v4  ;;  %v4125_v34 = vrot.slane %v4124_v27, 1  ;;  %v4116_v7 = vrot.slane %v4115_v31, 2  ;;  %v4135_v19 = vrot.slane %v4134_v12, 4  ;;  %v7693_v26 = vadd.f32 %v3831_v28, %v3830_v54 }
 0x278   : > { %v3842_v36 = vadd.f32 %v3841_v47, %v3840_v14  ;;  %v3518_v49 = vmax.f32 %v3200_v51, 0.0  ;;  %v3005_v46 = vadd.f32 %v7551_v48, %v7440_v59  ;;  %v3824_v9 = vrot.slane %v3823_v52, 1  ;;  %v7701_v14 = vpop.f32.mrb[50].mxu1 }
 0x279   : > { %v4117_v15 = vadd.f32 %v4116_v7, %v4115_v31  ;;  %v4136_v61 = vadd.f32 %v4135_v19, %v4134_v12  ;;  %v3833_v21 = vsel %vm3566_vm2, %v3476_v5, 0.0  ;;  %v7698_v62 = vadd.f32 %v4125_v34, %v4124_v27  ;;  %8532 = vst [vmem:[#allocation72_spill] sm:$0xff] %v7701_v14  ;;  %v8533_v19 = vld [vmem:[#allocation33_spill] sm:$0xff] }
 0x27a   : > { %v3843_v63 = vrot.slane %v3842_v36, 2  ;;  %v3834_v37 = vrot.slane %v3833_v21, 4  ;;  %v4127_v1 = vsel %vm3566_vm2, %v3518_v49, 0.0  ;;  %v3479_v28 = vmax.f32 %v3005_v46, 0.0 }
 0x27b   : > { %8531 = vst [vmem:[#allocation71_spill] sm:$0xff] %v7698_v62  ;;  %v4118_v8 = vrot.slane %v4117_v15, 1  ;;  %v4137_v20 = vrot.slane %v4136_v61, 2  ;;  %v4128_v54 = vrot.slane %v4127_v1, 4  ;;  %v3215_v59 = vadd.f32 %v7551_v48, %v7442_v39  ;;  %v7712_v39 = vpop.f32.mrb[72].mxu0 }
 0x27c   : > { %v3844_v51 = vadd.f32 %v3843_v63, %v3842_v36  ;;  %v3835_v47 = vadd.f32 %v3834_v37, %v3833_v21  ;;  %v3000_v31 = vadd.f32 %v7551_v48, %v8533_v19  ;;  %v7707_v27 = vadd.f32 %v3824_v9, %v3823_v52  ;;  %v8534_v21 = vld [vmem:[#allocation34_spill] sm:$0xff]  ;;  %8535 = vst [vmem:[#allocation33_spill] sm:$0xff] %v7712_v39 }
 0x27d   : > { %v4138_v12 = vadd.f32 %v4137_v20, %v4136_v61  ;;  %v4129_v34 = vadd.f32 %v4128_v54, %v4127_v1  ;;  %v3854_v7 = vsel %vm3566_vm2, %v3479_v28, 0.0  ;;  %v3521_v46 = vmax.f32 %v3215_v59, 0.0 }
 0x27e   : > { %v3845_v5 = vrot.slane %v3844_v51, 1  ;;  %v3836_v49 = vrot.slane %v3835_v47, 2  ;;  %v3855_v62 = vrot.slane %v3854_v7, 4  ;;  %v3478_v36 = vmax.f32 %v3000_v31, 0.0 }
 0x27f   : > { %v4139_v4 = vrot.slane %v4138_v12, 1  ;;  %v4130_v23 = vrot.slane %v4129_v34, 2  ;;  %v3210_v63 = vadd.f32 %v7551_v48, %v8534_v21  ;;  %v7714_v37 = vadd.f32 %v4118_v8, %v4117_v15  ;;  %v8539_v8 = vld [vmem:[#allocation36_spill] sm:$0xff] }
 0x280   : > { %v3837_v52 = vadd.f32 %v3836_v49, %v3835_v47  ;;  %v3856_v9 = vadd.f32 %v3855_v62, %v3854_v7  ;;  %v4148_v61 = vsel %vm3566_vm2, %v3521_v46, 0.0  ;;  %v7717_v1 = vadd.f32 %v3845_v5, %v3844_v51 }
 0x281   : > { %8536 = vst [vmem:[#allocation34_spill] sm:$0xff] %v7714_v37  ;;  %v4131_v20 = vadd.f32 %v4130_v23, %v4129_v34  ;;  %v4149_v54 = vrot.slane %v4148_v61, 4  ;;  %v3847_v28 = vsel %vm3566_vm2, %v3478_v36, 0.0  ;;  %v3520_v29 = vmax.f32 %v3210_v63, 0.0  ;;  %v7729_v36 = vpop.f32.mrb[51].mxu1 }
 0x282   : > { %8537 = vst [vmem:[#allocation73_spill] sm:$0xff] %v7717_v1  ;;  %v3838_v59 = vrot.slane %v3837_v52, 1  ;;  %v3857_v19 = vrot.slane %v3856_v9, 2  ;;  %v3848_v31 = vrot.slane %v3847_v28, 4  ;;  %v7720_v10 = vadd.f32 %v4139_v4, %v4138_v12  ;;  %8541 = vst [vmem:[#allocation75_spill] sm:$0xff] %v7729_v36  ;;  %v8569_v1 = vld [vmem:[#allocation24_spill] sm:$0xff] }
 0x283   : > { %v4150_v21 = vadd.f32 %v4149_v54, %v4148_v61  ;;  %v3015_v15 = vadd.f32 %v7551_v48, %v7457_v16  ;;  %v3225_v62 = vadd.f32 %v7551_v48, %v8539_v8  ;;  %v4132_v47 = vrot.slane %v4131_v20, 1  ;;  %v8542_v61 = vld [vmem:[#allocation38_spill] sm:$0xff] }
 0x284   : > { %8538 = vst [vmem:[#allocation74_spill] sm:$0xff] %v7720_v10  ;;  %v3858_v51 = vadd.f32 %v3857_v19, %v3856_v9  ;;  %v3849_v7 = vadd.f32 %v3848_v31, %v3847_v28  ;;  %v4141_v23 = vsel %vm3566_vm2, %v3520_v29, 0.0  ;;  %v7727_v34 = vadd.f32 %v3838_v59, %v3837_v52  ;;  %v8543_v28 = vld [vmem:[#allocation39_spill] sm:$0xff] }
 0x285   : > { %v4151_v5 = vrot.slane %v4150_v21, 2  ;;  %v4142_v49 = vrot.slane %v4141_v23, 4  ;;  %v3481_v46 = vmax.f32 %v3015_v15, 0.0  ;;  %v3523_v63 = vmax.f32 %v3225_v62, 0.0 }
 0x286   : > { %8540 = vst [vmem:[#allocation36_spill] sm:$0xff] %v7727_v34  ;;  %v3859_v4 = vrot.slane %v3858_v51, 1  ;;  %v3850_v12 = vrot.slane %v3849_v7, 2  ;;  %v3010_v16 = vadd.f32 %v7551_v48, %v8542_v61  ;;  %v3220_v29 = vadd.f32 %v7551_v48, %v8543_v28 }
 0x287   : > { %v4152_v54 = vadd.f32 %v4151_v5, %v4150_v21  ;;  %v4143_v8 = vadd.f32 %v4142_v49, %v4141_v23  ;;  %v3868_v9 = vsel %vm3566_vm2, %v3481_v46, 0.0  ;;  %v7736_v52 = vadd.f32 %v4132_v47, %v4131_v20  ;;  %v7744_v47 = vpop.f32.mrb[73].mxu0 }
 0x288   : > { %v3851_v59 = vadd.f32 %v3850_v12, %v3849_v7  ;;  %v3869_v19 = vrot.slane %v3868_v9, 4  ;;  %v4162_v31 = vsel %vm3566_vm2, %v3523_v63, 0.0  ;;  %v3480_v62 = vmax.f32 %v3010_v16, 0.0  ;;  %8545 = vst [vmem:[#allocation39_spill] sm:$0xff] %v7744_v47 }
 0x289   : > { %8544 = vst [vmem:[#allocation38_spill] sm:$0xff] %v7736_v52  ;;  %v4153_v15 = vrot.slane %v4152_v54, 1  ;;  %v4144_v10 = vrot.slane %v4143_v8, 2  ;;  %v4163_v37 = vrot.slane %v4162_v31, 4  ;;  %v7739_v36 = vadd.f32 %v3859_v4, %v3858_v51 }
 0x28a   : > { %v3870_v61 = vadd.f32 %v3869_v19, %v3868_v9  ;;  %v3522_v21 = vmax.f32 %v3220_v29, 0.0  ;;  %v3025_v23 = vadd.f32 %v7551_v48, %v7473_v44  ;;  %v3852_v5 = vrot.slane %v3851_v59, 1 }
 0x28b   : > { %v4145_v49 = vadd.f32 %v4144_v10, %v4143_v8  ;;  %v4164_v46 = vadd.f32 %v4163_v37, %v4162_v31  ;;  %v3861_v20 = vsel %vm3566_vm2, %v3480_v62, 0.0  ;;  %v7746_v7 = vadd.f32 %v4153_v15, %v4152_v54  ;;  %v8547_v10 = vld [vmem:[#allocation41_spill] sm:$0xff] }
 0x28c   : > { %v3871_v12 = vrot.slane %v3870_v61, 2  ;;  %v3862_v63 = vrot.slane %v3861_v20, 4  ;;  %v4155_v16 = vsel %vm3566_vm2, %v3522_v21, 0.0  ;;  %v3483_v28 = vmax.f32 %v3025_v23, 0.0 }
 0x28d   : > { %8546 = vst [vmem:[#allocation76_spill] sm:$0xff] %v7746_v7  ;;  %v4146_v51 = vrot.slane %v4145_v49, 1  ;;  %v4165_v4 = vrot.slane %v4164_v46, 2  ;;  %v4156_v9 = vrot.slane %v4155_v16, 4  ;;  %v3235_v44 = vadd.f32 %v7551_v48, %v7475_v40 }
 0x28e   : > { %v3872_v29 = vadd.f32 %v3871_v12, %v3870_v61  ;;  %v3863_v19 = vadd.f32 %v3862_v63, %v3861_v20  ;;  %v3020_v37 = vadd.f32 %v7551_v48, %v8547_v10  ;;  %v7753_v8 = vadd.f32 %v3852_v5, %v3851_v59  ;;  %v8548_v20 = vld [vmem:[#allocation42_spill] sm:$0xff]  ;;  %v7761_v5 = vpop.f32.mrb[52].mxu1 }
 0x28f   : > { %v4166_v54 = vadd.f32 %v4165_v4, %v4164_v46  ;;  %v4157_v31 = vadd.f32 %v4156_v9, %v4155_v16  ;;  %v3882_v15 = vsel %vm3566_vm2, %v3483_v28, 0.0  ;;  %v3525_v52 = vmax.f32 %v3235_v44, 0.0  ;;  %8550 = vst [vmem:[#allocation42_spill] sm:$0xff] %v7761_v5  ;;  %v8562_v5 = vld [vmem:[#allocation12_spill] sm:$0xff] }
 0x290   : > { %v3873_v62 = vrot.slane %v3872_v29, 1  ;;  %v3864_v21 = vrot.slane %v3863_v19, 2  ;;  %v3883_v7 = vrot.slane %v3882_v15, 4  ;;  %v3482_v61 = vmax.f32 %v3020_v37, 0.0 }
 0x291   : > { %v4167_v47 = vrot.slane %v4166_v54, 1  ;;  %v4158_v23 = vrot.slane %v4157_v31, 2  ;;  %v3230_v12 = vadd.f32 %v7551_v48, %v8548_v20  ;;  %v7758_v40 = vadd.f32 %v4146_v51, %v4145_v49 }
 0x292   : > { %v3865_v63 = vadd.f32 %v3864_v21, %v3863_v19  ;;  %v3884_v10 = vadd.f32 %v3883_v7, %v3882_v15  ;;  %v4176_v59 = vsel %vm3566_vm2, %v3525_v52, 0.0  ;;  %v7763_v46 = vadd.f32 %v3873_v62, %v3872_v29  ;;  %v7773_v15 = vpop.f32.mrb[74].mxu0 }
 0x293   : > { %8549 = vst [vmem:[#allocation41_spill] sm:$0xff] %v7758_v40  ;;  %v4159_v16 = vadd.f32 %v4158_v23, %v4157_v31  ;;  %v4177_v4 = vrot.slane %v4176_v59, 4  ;;  %v3875_v9 = vsel %vm3566_vm2, %v3482_v61, 0.0  ;;  %v3524_v39 = vmax.f32 %v3230_v12, 0.0  ;;  %8552 = vst [vmem:[#allocation78_spill] sm:$0xff] %v7773_v15 }
 0x294   : > { %v3866_v28 = vrot.slane %v3865_v63, 1  ;;  %v3885_v44 = vrot.slane %v3884_v10, 2  ;;  %v3876_v37 = vrot.slane %v3875_v9, 4  ;;  %v7766_v14 = vadd.f32 %v4167_v47, %v4166_v54 }
 0x295   : > { %v4178_v49 = vadd.f32 %v4177_v4, %v4176_v59  ;;  %v3035_v7 = vadd.f32 %v7551_v48, %v7490_v2  ;;  %v3245_v52 = vadd.f32 %v7551_v48, %v7492_v50  ;;  %v4160_v51 = vrot.slane %v4159_v16, 1  ;;  %v8553_v59 = vld [vmem:[#allocation45_spill] sm:$0xff] }
 0x296   : > { %8551 = vst [vmem:[#allocation77_spill] sm:$0xff] %v7766_v14  ;;  %v3886_v29 = vadd.f32 %v3885_v44, %v3884_v10  ;;  %v3877_v19 = vadd.f32 %v3876_v37, %v3875_v9  ;;  %v4169_v31 = vsel %vm3566_vm2, %v3524_v39, 0.0  ;;  %v7775_v62 = vadd.f32 %v3866_v28, %v3865_v63 }
 0x297   : > { %v4179_v21 = vrot.slane %v4178_v49, 2  ;;  %v4170_v23 = vrot.slane %v4169_v31, 4  ;;  %v3485_v47 = vmax.f32 %v3035_v7, 0.0  ;;  %v3527_v20 = vmax.f32 %v3245_v52, 0.0 }
 0x298   : > { %v3887_v54 = vrot.slane %v3886_v29, 1  ;;  %v3878_v61 = vrot.slane %v3877_v19, 2  ;;  %v3030_v2 = vadd.f32 %v7551_v48, %v7496_v25  ;;  %v3240_v39 = vadd.f32 %v7551_v48, %v8553_v59 }
 0x299   : > { %v4180_v12 = vadd.f32 %v4179_v21, %v4178_v49  ;;  %v4171_v50 = vadd.f32 %v4170_v23, %v4169_v31  ;;  %v3896_v10 = vsel %vm3566_vm2, %v3485_v47, 0.0  ;;  %v7782_v4 = vadd.f32 %v4160_v51, %v4159_v16  ;;  %v8555_v49 = vld [vmem:[#allocation47_spill] sm:$0xff]  ;;  %v7793_v51 = vld [vmem:[%s8436_s6] ss:$0 sm:$0xff] }
 0x29a   : > { %v3879_v63 = vadd.f32 %v3878_v61, %v3877_v19  ;;  %v3897_v9 = vrot.slane %v3896_v10, 4  ;;  %v4190_v28 = vsel %vm3566_vm2, %v3527_v20, 0.0  ;;  %v3484_v52 = vmax.f32 %v3030_v2, 0.0  ;;  %v7795_v19 = vpop.f32.mrb[53].mxu1 }
 0x29b   : > { %8554 = vst [vmem:[#allocation45_spill] sm:$0xff] %v7782_v4  ;;  %v4181_v44 = vrot.slane %v4180_v12, 1  ;;  %v4172_v37 = vrot.slane %v4171_v50, 2  ;;  %v4191_v7 = vrot.slane %v4190_v28, 4  ;;  %v3526_v25 = vmax.f32 %v3240_v39, 0.0  ;;  %8556 = vst [vmem:[#allocation47_spill] sm:$0xff] %v7795_v19 }
 0x29c   : > { %v3880_v14 = vrot.slane %v3879_v63, 1  ;;  %v3898_v40 = vadd.f32 %v3897_v9, %v3896_v10  ;;  %v3255_v31 = vadd.f32 %v7551_v48, %v8555_v49  ;;  %v7787_v21 = vadd.f32 %v3887_v54, %v3886_v29  ;;  %v7807_v19 = vpop.f32.mrb[75].mxu0 }
 0x29d   : > { %v4173_v23 = vadd.f32 %v4172_v37, %v4171_v50  ;;  %v4192_v47 = vadd.f32 %v4191_v7, %v4190_v28  ;;  %v3889_v16 = vsel %vm3566_vm2, %v3484_v52, 0.0  ;;  %v7797_v61 = vadd.f32 %v4181_v44, %v4180_v12  ;;  %8559 = vst [vmem:[#allocation81_spill] sm:$0xff] %v7807_v19 }
 0x29e   : > { %v3899_v20 = vrot.slane %v3898_v40, 2  ;;  %v3890_v2 = vrot.slane %v3889_v16, 4  ;;  %v4183_v10 = vsel %vm3566_vm2, %v3526_v25, 0.0  ;;  %v3529_v50 = vmax.f32 %v3255_v31, 0.0 }
 0x29f   : > { %8557 = vst [vmem:[#allocation79_spill] sm:$0xff] %v7797_v61  ;;  %v4174_v59 = vrot.slane %v4173_v23, 1  ;;  %v4193_v29 = vrot.slane %v4192_v47, 2  ;;  %v4184_v54 = vrot.slane %v4183_v10, 4  ;;  %v7800_v39 = vadd.f32 %v3880_v14, %v3879_v63 }
 0x2a0   : > { %v3900_v9 = vadd.f32 %v3899_v20, %v3898_v40  ;;  %v3891_v28 = vadd.f32 %v3890_v2, %v3889_v16  ;;  %v4543_v37 = vadd.f32 %v7508_v13, %v7793_v51  ;;  %v4204_v44 = vsel %vm3566_vm2, %v3529_v50, 0.0 }
 0x2a1   : > { %v7804_v7 = vadd.f32 %v4174_v59, %v4173_v23  ;;  %v4194_v52 = vadd.f32 %v4193_v29, %v4192_v47  ;;  %v4185_v12 = vadd.f32 %v4184_v54, %v4183_v10  ;;  %v4205_v25 = vrot.slane %v4204_v44, 4 }
 0x2a2   : > { %v3901_v49 = vrot.slane %v3900_v9, 1  ;;  %v3892_v61 = vrot.slane %v3891_v28, 2  ;;  %v4639_v4 = vrot.slane %v4543_v37, 1  ;;  %v4640_v63 = vrot.slane %v4543_v37, 2 }
 0x2a3   : > { %8558 = vst [vmem:[#allocation80_spill] sm:$0xff] %v7804_v7  ;;  %v4195_v31 = vrot.slane %v4194_v52, 1  ;;  %v4186_v14 = vrot.slane %v4185_v12, 2  ;;  %v4641_v40 = vrot.slane %v4543_v37, 3  ;;  %v4206_v13 = vadd.f32 %v4205_v25, %v4204_v44  ;;  %v8561_v7 = vld [vmem:[#allocation14_spill] sm:$0xff] }
 0x2a4   : > { %v7809_v16 = vadd.f32 %v3901_v49, %v3900_v9  ;;  %v3893_v20 = vadd.f32 %v3892_v61, %v3891_v28  ;;  %v4642_v23 = vrot.slane %v4543_v37, 4  ;;  %v4643_v10 = vrot.slane %v4543_v37, 5  ;;  %v8564_v49 = vld [vmem:[#allocation16_spill] sm:$0xff] }
 0x2a5   : > { %v7811_v47 = vadd.f32 %v4195_v31, %v4194_v52  ;;  %v4187_v2 = vadd.f32 %v4186_v14, %v4185_v12  ;;  %v4644_v59 = vrot.slane %v4543_v37, 6  ;;  %v4207_v54 = vrot.slane %v4206_v13, 2  ;;  %v8565_v52 = vld [vmem:[#allocation22_spill] sm:$0xff]  ;;  %v8566_v12 = vld [vmem:[#allocation20_spill] sm:$0xff] }
 0x2a6   : > { %v3894_v29 = vrot.slane %v3893_v20, 1  ;;  %v4645_v50 = vrot.slane %v4543_v37, 7  ;;  %v4880_v19 = vadd.f32 %v4543_v37, %v8561_v7  ;;  %v4881_v35 = vadd.f32 %v4639_v4, %v8562_v5 }
 0x2a7   : > { %8560 = vst [vmem:[#allocation82_spill] sm:$0xff] %v7811_v47  ;;  %v4188_v15 = vrot.slane %v4187_v2, 1  ;;  %v4882_v9 = vadd.f32 %v4640_v63, %v8563_v57  ;;  %v4883_v61 = vadd.f32 %v4641_v40, %v8564_v49  ;;  %v4208_v44 = vadd.f32 %v4207_v54, %v4206_v13  ;;  %v8568_v47 = vld [vmem:[#allocation26_spill] sm:$0xff]  ;;  %v7825_v63 = vpop.f32.mrb[54].mxu1  ;;  %v8572_v54 = vld [vmem:[#allocation49_spill] sm:$0xff] }
 0x2a8   : > { %v7817_v28 = vadd.f32 %v3894_v29, %v3893_v20  ;;  %v4884_v25 = vadd.f32 %v4642_v23, %v8565_v52  ;;  %v4885_v31 = vadd.f32 %v4643_v10, %v8566_v12  ;;  %v4886_v6 = vadd.f32 %v4644_v59, %v8568_v47  ;;  %v8574_v49 = vld [vmem:[#allocation50_spill] sm:$0xff] }
 0x2a9   : > { %v7821_v14 = vadd.f32 %v4188_v15, %v4187_v2  ;;  %v4887_v37 = vadd.f32 %v4645_v50, %v8569_v1  ;;  %v5008_v7 = vmax.f32 %v4880_v19, 0.0  ;;  %v4209_v34 = vrot.slane %v4208_v44, 1  ;;  %v7829_v2 = vpop.f32.mrb[76].mxu0  ;;  %v7834_v50 = vpop.f32.mrb[55].mxu1 }
 0x2aa   : > { %v5009_v5 = vmax.f32 %v4881_v35, 0.0  ;;  %v5010_v4 = vmax.f32 %v4882_v9, 0.0  ;;  %v5011_v57 = vmax.f32 %v4883_v61, 0.0  ;;  %v5012_v40 = vmax.f32 %v4884_v25, 0.0  ;;  %8571 = vst [vmem:[#allocation18_spill] sm:$0xff] %v7829_v2  ;;  %8573 = vst [vmem:[#allocation16_spill] sm:$0xff] %v7834_v50 }
 0x2ab   : > { %8567 = vst [vmem:[#allocation14_spill] sm:$0xff] %v7821_v14  ;;  %v5013_v20 = vmax.f32 %v4885_v31, 0.0  ;;  %v5014_v13 = vmax.f32 %v4886_v6, 0.0  ;;  %v5015_v29 = vmax.f32 %v4887_v37, 0.0  ;;  %v7827_v23 = vadd.f32 %v4209_v34, %v4208_v44  ;;  %v8575_v44 = vld [vmem:[#allocation53_spill] sm:$0xff]  ;;  %v8576_v25 = vld [vmem:[#allocation54_spill] sm:$0xff] }
 0x2ac   : > { %v5277_v1 = vrot.slane %v5009_v5, 7  ;;  %v5279_v15 = vrot.slane %v5010_v4, 6  ;;  %v5281_v19 = vrot.slane %v5011_v57, 5  ;;  %v5283_v35 = vrot.slane %v5012_v40, 4  ;;  %v7845_v31 = vpop.f32.mrb[77].mxu0  ;;  %v8585_v2 = vld [vmem:[#allocation10_spill] sm:$0xff] }
 0x2ad   : > { %8570 = vst [vmem:[#allocation12_spill] sm:$0xff] %v7827_v23  ;;  %v5285_v47 = vrot.slane %v5013_v20, 3  ;;  %v5287_v59 = vrot.slane %v5014_v13, 2  ;;  %v5289_v6 = vrot.slane %v5015_v29, 1  ;;  %v3250_v34 = vadd.f32 %v7551_v48, %v8572_v54  ;;  %8577 = vst [vmem:[#allocation22_spill] sm:$0xff] %v7845_v31  ;;  %v8578_v54 = vld [vmem:[#allocation2_spill] sm:$0xff] }
 0x2ae   : > { %v5278_v10 = vsel %vm5257_vm3, %v5277_v1, %v5008_v7  ;;  %v4538_v61 = vadd.f32 %v7793_v51, %v8574_v49  ;;  %v3265_v52 = vadd.f32 %v7551_v48, %v8575_v44  ;;  %v7843_v12 = vadd.f32 %v8576_v25, %v7793_v51  ;;  %v8580_v44 = vld [vmem:[#allocation5_spill] sm:$0xff]  ;;  %v8583_v31 = vld [vmem:[#allocation7_spill] sm:$0xff] }
 0x2af   : > { %v5280_v9 = vsel %vm5260_vm4, %v5279_v15, %v5278_v10  ;;  %v3528_v7 = vmax.f32 %v3250_v34, 0.0  ;;  %v7850_v5 = vadd.f32 %v7551_v48, %v7541_v58  ;;  %v7854_v4 = vadd.f32 %v7793_v51, %v7563_v33 }
 0x2b0   : > { %v5282_v37 = vsel %vm5263_vm5, %v5281_v19, %v5280_v9  ;;  %v4632_v40 = vrot.slane %v4538_v61, 1  ;;  %v4633_v20 = vrot.slane %v4538_v61, 2  ;;  %v4634_v13 = vrot.slane %v4538_v61, 3  ;;  %v8579_v9 = vld [vmem:[#allocation3_spill] sm:$0xff] }
 0x2b1   : > { %v5284_v57 = vsel %vm5266_vm6, %v5283_v35, %v5282_v37  ;;  %v4197_v58 = vsel %vm3566_vm2, %v3528_v7, 0.0  ;;  %v4635_v48 = vrot.slane %v4538_v61, 4  ;;  %v4636_v1 = vrot.slane %v4538_v61, 5  ;;  %v7871_v37 = vpop.f32.mrb[56].mxu1  ;;  %v8582_v7 = vld [vmem:[#allocation4_spill] sm:$0xff] }
 0x2b2   : > { %v5286_v29 = vsel %vm5269_vm7, %v5285_v47, %v5284_v57  ;;  %v4198_v15 = vrot.slane %v4197_v58, 4  ;;  %v4637_v19 = vrot.slane %v4538_v61, 6  ;;  %v4638_v35 = vrot.slane %v4538_v61, 7  ;;  %8581 = vst [vmem:[#allocation20_spill] sm:$0xff] %v7871_v37 }
 0x2b3   : > { %v5288_v33 = vsel %vm5272_vm8, %v5287_v59, %v5286_v29  ;;  %v4872_v34 = vadd.f32 %v4538_v61, %v8578_v54  ;;  %v4873_v49 = vadd.f32 %v4632_v40, %v8579_v9  ;;  %v4874_v25 = vadd.f32 %v4633_v20, %v8580_v44  ;;  %v8584_v29 = vld [vmem:[#allocation6_spill] sm:$0xff] }
 0x2b4   : > { %v5290_v10 = vsel %vm5275_vm9, %v5289_v6, %v5288_v33  ;;  %v4199_v47 = vadd.f32 %v4198_v15, %v4197_v58  ;;  %v4875_v57 = vadd.f32 %v4634_v13, %v8582_v7  ;;  %v4876_v59 = vadd.f32 %v4635_v48, %v8583_v31  ;;  %v8586_v6 = vld [vmem:[#allocation8_spill] sm:$0xff]  ;;  %v7880_v15 = vpop.f32.mrb[57].mxu1 }
 0x2b5   : > { %5504 = vst.msk [vmem:[%s7862_s9 + $0x8] sm:$0xff] %vm3566_vm2, %v5290_v10  ;;  %v4877_v50 = vadd.f32 %v4636_v1, %v8584_v29  ;;  %v4878_v23 = vadd.f32 %v4637_v19, %v8585_v2  ;;  %v4879_v33 = vadd.f32 %v4638_v35, %v8586_v6  ;;  %v5000_v61 = vmax.f32 %v4872_v34, 0.0 }
 0x2b6   : > { %v5001_v54 = vmax.f32 %v4873_v49, 0.0  ;;  %v4200_v40 = vrot.slane %v4199_v47, 2  ;;  %v5002_v9 = vmax.f32 %v4874_v25, 0.0  ;;  %v5003_v20 = vmax.f32 %v4875_v57, 0.0 }
 0x2b7   : > { %v5004_v44 = vmax.f32 %v4876_v59, 0.0  ;;  %v5005_v37 = vmax.f32 %v4877_v50, 0.0  ;;  %v5006_v14 = vmax.f32 %v4878_v23, 0.0  ;;  %v5007_v10 = vmax.f32 %v4879_v33, 0.0 }
 0x2b8   : > { %v5256_v58 = vrot.slane %v5001_v54, 7  ;;  %v4201_v13 = vadd.f32 %v4200_v40, %v4199_v47  ;;  %v5259_v31 = vrot.slane %v5002_v9, 6  ;;  %v5262_v48 = vrot.slane %v5003_v20, 5 }
 0x2b9   : > { %v5265_v1 = vrot.slane %v5004_v44, 4  ;;  %v5268_v19 = vrot.slane %v5005_v37, 3  ;;  %v5271_v35 = vrot.slane %v5006_v14, 2  ;;  %v5274_v34 = vrot.slane %v5007_v10, 1 }
 0x2ba   : > { %v5258_v2 = vsel %vm5257_vm3, %v5256_v58, %v5000_v61  ;;  %v4202_v49 = vrot.slane %v4201_v13, 1  ;;  %v3531_v7 = vmax.f32 %v3265_v52, 0.0  ;;  %v4653_v50 = vrot.slane %v7843_v12, 1 }
 0x2bb   : > { %v5261_v25 = vsel %vm5260_vm4, %v5259_v31, %v5258_v2  ;;  %v4654_v57 = vrot.slane %v7843_v12, 2  ;;  %v4655_v47 = vrot.slane %v7843_v12, 3  ;;  %v4656_v59 = vrot.slane %v7843_v12, 4 }
 0x2bc   : > { %v5264_v23 = vsel %vm5263_vm5, %v5262_v48, %v5261_v25  ;;  %v7889_v29 = vadd.f32 %v4202_v49, %v4201_v13  ;;  %v4218_v14 = vsel %vm3566_vm2, %v3531_v7, 0.0  ;;  %v4657_v6 = vrot.slane %v7843_v12, 5  ;;  %v7905_v48 = vpop.f32.mrb[58].mxu1 }
 0x2bd   : > { %v5267_v37 = vsel %vm5266_vm6, %v5265_v1, %v5264_v23  ;;  %v4219_v33 = vrot.slane %v4218_v14, 4  ;;  %v4658_v61 = vrot.slane %v7843_v12, 6  ;;  %v4659_v54 = vrot.slane %v7843_v12, 7 }
 0x2be   : > { %v5270_v52 = vsel %vm5269_vm7, %v5268_v19, %v5267_v37  ;;  %v4896_v9 = vadd.f32 %v7843_v12, %v7569_v55  ;;  %v4897_v20 = vadd.f32 %v4653_v50, %v7555_v42  ;;  %v4898_v44 = vadd.f32 %v4654_v57, %v7590_v0  ;;  %v7912_v12 = vpop.f32.mrb[59].mxu1 }
 0x2bf   : > { %v5273_v40 = vsel %vm5272_vm8, %v5271_v35, %v5270_v52  ;;  %v4220_v58 = vadd.f32 %v4219_v33, %v4218_v14  ;;  %v4899_v13 = vadd.f32 %v4655_v47, %v7575_v30  ;;  %v4900_v31 = vadd.f32 %v4656_v59, %v7616_v11 }
 0x2c0   : > { %v5276_v10 = vsel %vm5275_vm9, %v5274_v34, %v5273_v40  ;;  %v4901_v1 = vadd.f32 %v4657_v6, %v7601_v18  ;;  %v4902_v2 = vadd.f32 %v4658_v61, %v7634_v38  ;;  %v4903_v55 = vadd.f32 %v4659_v54, %v7626_v22  ;;  %v7914_v18 = vpop.f32.mrb[60].mxu1 }
 0x2c1   : > { %5503 = vst.msk [vmem:[%s7862_s9] sm:$0xff] %vm3566_vm2, %v5276_v10  ;;  %v5024_v42 = vmax.f32 %v4896_v9, 0.0  ;;  %v4221_v0 = vrot.slane %v4220_v58, 2  ;;  %v5025_v19 = vmax.f32 %v4897_v20, 0.0  ;;  %v5026_v35 = vmax.f32 %v4898_v44, 0.0  ;;  %v7916_v37 = vpop.f32.mrb[61].mxu1 }
 0x2c2   : > { %v5027_v34 = vmax.f32 %v4899_v13, 0.0  ;;  %v5028_v30 = vmax.f32 %v4900_v31, 0.0  ;;  %v5029_v49 = vmax.f32 %v4901_v1, 0.0  ;;  %v5030_v11 = vmax.f32 %v4902_v2, 0.0  ;;  %v7930_v13 = vpop.f32.mrb[62].mxu1 }
 0x2c3   : > { %v5031_v25 = vmax.f32 %v4903_v55, 0.0  ;;  %v4222_v7 = vadd.f32 %v4221_v0, %v4220_v58  ;;  %v5305_v50 = vrot.slane %v5025_v19, 7  ;;  %v5307_v23 = vrot.slane %v5026_v35, 6  ;;  %v8588_v19 = vld [vmem:[#allocation28_spill] sm:$0xff] }
 0x2c4   : > { %v5309_v57 = vrot.slane %v5027_v34, 5  ;;  %v5311_v38 = vrot.slane %v5028_v30, 4  ;;  %v5313_v47 = vrot.slane %v5029_v49, 3  ;;  %v5315_v22 = vrot.slane %v5030_v11, 2  ;;  %v8589_v34 = vld [vmem:[#allocation40_spill] sm:$0xff]  ;;  %v7940_v49 = vpop.f32.mrb[63].mxu1 }
 0x2c5   : > { %v5317_v59 = vrot.slane %v5031_v25, 1  ;;  %v4223_v14 = vrot.slane %v4222_v7, 1  ;;  %v5306_v6 = vsel %vm5257_vm3, %v5305_v50, %v5024_v42  ;;  %v3530_v52 = vmax.f32 %v7850_v5, 0.0  ;;  %v8587_v42 = vld [vmem:[#allocation31_spill] sm:$0xff] }
 0x2c6   : > { %v4646_v33 = vrot.slane %v7854_v4, 1  ;;  %v5308_v61 = vsel %vm5260_vm4, %v5307_v23, %v5306_v6  ;;  %v4647_v54 = vrot.slane %v7854_v4, 2  ;;  %v4648_v40 = vrot.slane %v7854_v4, 3  ;;  %v8591_v23 = vld [vmem:[#allocation48_spill] sm:$0xff] }
 0x2c7   : > { %v4649_v9 = vrot.slane %v7854_v4, 4  ;;  %v7925_v20 = vadd.f32 %v4223_v14, %v4222_v7  ;;  %v5310_v44 = vsel %vm5263_vm5, %v5309_v57, %v5308_v61  ;;  %v4211_v10 = vsel %vm3566_vm2, %v3530_v52, 0.0  ;;  %v8590_v7 = vld [vmem:[#allocation35_spill] sm:$0xff]  ;;  %v8592_v14 = vld [vmem:[#allocation44_spill] sm:$0xff] }
 0x2c8   : > { %v4650_v58 = vrot.slane %v7854_v4, 5  ;;  %v5312_v5 = vsel %vm5266_vm6, %v5311_v38, %v5310_v44  ;;  %v4212_v31 = vrot.slane %v4211_v10, 4  ;;  %v4651_v1 = vrot.slane %v7854_v4, 6 }
 0x2c9   : > { %v4652_v2 = vrot.slane %v7854_v4, 7  ;;  %v5314_v55 = vsel %vm5269_vm7, %v5313_v47, %v5312_v5  ;;  %v4888_v0 = vadd.f32 %v7854_v4, %v8587_v42  ;;  %v4889_v35 = vadd.f32 %v4646_v33, %v8588_v19  ;;  %v8593_v4 = vld [vmem:[#allocation52_spill] sm:$0xff]  ;;  %v7951_v42 = vpop.f32.mrb[64].mxu1 }
 0x2ca   : > { %v4890_v30 = vadd.f32 %v4647_v54, %v8589_v34  ;;  %v5316_v11 = vsel %vm5272_vm8, %v5315_v22, %v5314_v55  ;;  %v4213_v25 = vadd.f32 %v4212_v31, %v4211_v10  ;;  %v4891_v50 = vadd.f32 %v4648_v40, %v8590_v7 }
 0x2cb   : > { %v4892_v57 = vadd.f32 %v4649_v9, %v8591_v23  ;;  %v5318_v38 = vsel %vm5275_vm9, %v5317_v59, %v5316_v11  ;;  %v4893_v47 = vadd.f32 %v4650_v58, %v8592_v14  ;;  %v4894_v6 = vadd.f32 %v4651_v1, %v7539_v43  ;;  %v7972_v23 = vpop.f32.mrb[65].mxu1 }
 0x2cc   : > { %v4895_v52 = vadd.f32 %v4652_v2, %v8593_v4  ;;  %5506 = vst.msk [vmem:[%s7862_s9 + $0x18] sm:$0xff] %vm3566_vm2, %v5318_v38  ;;  %v4214_v33 = vrot.slane %v4213_v25, 2  ;;  %v5016_v61 = vmax.f32 %v4888_v0, 0.0  ;;  %v5017_v54 = vmax.f32 %v4889_v35, 0.0  ;;  %v7957_v35 = vld [vmem:[%s8434_s4] ss:$0 sm:$0xff] }
 0x2cd   : > { %v5018_v44 = vmax.f32 %v4890_v30, 0.0  ;;  %v5019_v22 = vmax.f32 %v4891_v50, 0.0  ;;  %v5020_v10 = vmax.f32 %v4892_v57, 0.0  ;;  %v5021_v5 = vmax.f32 %v4893_v47, 0.0 }
 0x2ce   : > { %v5022_v40 = vmax.f32 %v4894_v6, 0.0  ;;  %v4215_v31 = vadd.f32 %v4214_v33, %v4213_v25  ;;  %v5023_v9 = vmax.f32 %v4895_v52, 0.0  ;;  %v5291_v55 = vrot.slane %v5017_v54, 7 }
 0x2cf   : > { %v5293_v59 = vrot.slane %v5018_v44, 6  ;;  %v5295_v58 = vrot.slane %v5019_v22, 5  ;;  %v5297_v43 = vrot.slane %v5020_v10, 4  ;;  %v5299_v1 = vrot.slane %v5021_v5, 3 }
 0x2d0   : > { %v5301_v2 = vrot.slane %v5022_v40, 2  ;;  %v4216_v19 = vrot.slane %v4215_v31, 1  ;;  %v5292_v34 = vsel %vm5257_vm3, %v5291_v55, %v5016_v61  ;;  %v5303_v0 = vrot.slane %v5023_v9, 1 }
 0x2d1   : > { %v3275_v30 = vadd.f32 %v7957_v35, %v7582_v60  ;;  %v5294_v11 = vsel %vm5260_vm4, %v5293_v59, %v5292_v34  ;;  %v4563_v25 = vadd.f32 %v7596_v32, %v7793_v51  ;;  %v7966_v7 = vadd.f32 %v7957_v35, %v7607_v45 }
 0x2d2   : > { %v7970_v50 = vadd.f32 %v7793_v51, %v7624_v56  ;;  %v7974_v57 = vadd.f32 %v4216_v19, %v4215_v31  ;;  %v5296_v38 = vsel %vm5263_vm5, %v5295_v58, %v5294_v11  ;;  %v7979_v14 = vadd.f32 %v7957_v35, %v7643_v24  ;;  %v7994_v58 = vpop.f32.mrb[66].mxu1 }
 0x2d3   : > { %v3533_v60 = vmax.f32 %v3275_v30, 0.0  ;;  %v5298_v32 = vsel %vm5266_vm6, %v5297_v43, %v5296_v38  ;;  %v4667_v45 = vrot.slane %v4563_v25, 1  ;;  %v4668_v47 = vrot.slane %v4563_v25, 2 }
 0x2d4   : > { %v4669_v6 = vrot.slane %v4563_v25, 3  ;;  %v5300_v56 = vsel %vm5269_vm7, %v5299_v1, %v5298_v32  ;;  %v4670_v52 = vrot.slane %v4563_v25, 4  ;;  %v4671_v33 = vrot.slane %v4563_v25, 5 }
 0x2d5   : > { %v4232_v4 = vsel %vm3566_vm2, %v3533_v60, 0.0  ;;  %v5302_v61 = vsel %vm5272_vm8, %v5301_v2, %v5300_v56  ;;  %v4672_v44 = vrot.slane %v4563_v25, 6  ;;  %v4673_v22 = vrot.slane %v4563_v25, 7 }
 0x2d6   : > { %v4233_v54 = vrot.slane %v4232_v4, 4  ;;  %v5304_v24 = vsel %vm5275_vm9, %v5303_v0, %v5302_v61  ;;  %v4912_v10 = vadd.f32 %v4563_v25, %v7753_v8  ;;  %v4913_v5 = vadd.f32 %v4667_v45, %v7739_v36  ;;  %v7998_v36 = vpop.f32.mrb[67].mxu1 }
 0x2d7   : > { %v4914_v40 = vadd.f32 %v4668_v47, %v7775_v62  ;;  %5505 = vst.msk [vmem:[%s7862_s9 + $0x10] sm:$0xff] %vm3566_vm2, %v5304_v24  ;;  %v4915_v9 = vadd.f32 %v4669_v6, %v7763_v46  ;;  %v4916_v55 = vadd.f32 %v4670_v52, %v7800_v39  ;;  %v4917_v59 = vadd.f32 %v4671_v33, %v7787_v21  ;;  %v8000_v32 = vpop.f32.mrb[68].mxu1 }
 0x2d8   : > { %v4234_v31 = vadd.f32 %v4233_v54, %v4232_v4  ;;  %v4918_v43 = vadd.f32 %v4672_v44, %v7817_v28  ;;  %v4919_v1 = vadd.f32 %v4673_v22, %v7809_v16  ;;  %v5040_v8 = vmax.f32 %v4912_v10, 0.0  ;;  %v8003_v6 = vpop.f32.mrb[69].mxu1 }
 0x2d9   : > { %v5041_v2 = vmax.f32 %v4913_v5, 0.0  ;;  %v5042_v19 = vmax.f32 %v4914_v40, 0.0  ;;  %v5043_v34 = vmax.f32 %v4915_v9, 0.0  ;;  %v5044_v0 = vmax.f32 %v4916_v55, 0.0 }
 0x2da   : > { %v4235_v62 = vrot.slane %v4234_v31, 2  ;;  %v5045_v30 = vmax.f32 %v4917_v59, 0.0  ;;  %v5046_v46 = vmax.f32 %v4918_v43, 0.0  ;;  %v5047_v11 = vmax.f32 %v4919_v1, 0.0 }
 0x2db   : > { %v5333_v39 = vrot.slane %v5041_v2, 7  ;;  %v5335_v21 = vrot.slane %v5042_v19, 6  ;;  %v5337_v38 = vrot.slane %v5043_v34, 5  ;;  %v5339_v60 = vrot.slane %v5044_v0, 4  ;;  %v8028_v0 = vpop.f32.mrb[70].mxu1 }
 0x2dc   : > { %v4236_v25 = vadd.f32 %v4235_v62, %v4234_v31  ;;  %v5341_v28 = vrot.slane %v5045_v30, 3  ;;  %v5343_v45 = vrot.slane %v5046_v46, 2  ;;  %v5345_v47 = vrot.slane %v5047_v11, 1  ;;  %v8030_v30 = vpop.f32.mrb[78].mxu0 }
 0x2dd   : > { %v5334_v16 = vsel %vm5257_vm3, %v5333_v39, %v5040_v8  ;;  %v3532_v52 = vmax.f32 %v7966_v7, 0.0  ;;  %v4660_v33 = vrot.slane %v7970_v50, 1  ;;  %v4661_v54 = vrot.slane %v7970_v50, 2  ;;  %v8037_v39 = vpop.f32.mrb[71].mxu1 }
 0x2de   : > { %v4237_v56 = vrot.slane %v4236_v25, 1  ;;  %v5336_v4 = vsel %vm5260_vm4, %v5335_v21, %v5334_v16  ;;  %v4662_v44 = vrot.slane %v7970_v50, 3  ;;  %v4663_v22 = vrot.slane %v7970_v50, 4 }
 0x2df   : > { %v5338_v61 = vsel %vm5263_vm5, %v5337_v38, %v5336_v4  ;;  %v4225_v5 = vsel %vm3566_vm2, %v3532_v52, 0.0  ;;  %v4664_v40 = vrot.slane %v7970_v50, 5  ;;  %v4665_v9 = vrot.slane %v7970_v50, 6 }
 0x2e0   : > { %v8012_v24 = vadd.f32 %v4237_v56, %v4236_v25  ;;  %v5340_v10 = vsel %vm5266_vm6, %v5339_v60, %v5338_v61  ;;  %v4226_v31 = vrot.slane %v4225_v5, 4  ;;  %v4666_v55 = vrot.slane %v7970_v50, 7 }
 0x2e1   : > { %v5342_v7 = vsel %vm5269_vm7, %v5341_v28, %v5340_v10  ;;  %v4904_v43 = vadd.f32 %v7970_v50, %v7662_v53  ;;  %v4905_v1 = vadd.f32 %v4660_v33, %v7647_v3  ;;  %v4906_v8 = vadd.f32 %v4661_v54, %v7681_v17  ;;  %v8594_v53 = vld [vmem:[#allocation36_spill] sm:$0xff]  ;;  %v8595_v3 = vld [vmem:[#allocation73_spill] sm:$0xff] }
 0x2e2   : > { %v5344_v59 = vsel %vm5272_vm8, %v5343_v45, %v5342_v7  ;;  %v4227_v62 = vadd.f32 %v4226_v31, %v4225_v5  ;;  %v4907_v19 = vadd.f32 %v4662_v44, %v7671_v41  ;;  %v4908_v34 = vadd.f32 %v4663_v22, %v7707_v27  ;;  %v8039_v27 = vpop.f32.mrb[79].mxu0  ;;  %v8596_v5 = vld [vmem:[#allocation65_spill] sm:$0xff]  ;;  %v8597_v31 = vld [vmem:[#allocation68_spill] sm:$0xff] }
 0x2e3   : > { %v5346_v2 = vsel %vm5275_vm9, %v5345_v47, %v5344_v59  ;;  %v4909_v46 = vadd.f32 %v4664_v40, %v7693_v26  ;;  %v4910_v50 = vadd.f32 %v4665_v9, %v8594_v53  ;;  %v4911_v11 = vadd.f32 %v4666_v55, %v8595_v3  ;;  %v8598_v55 = vld [vmem:[#allocation29_spill] sm:$0xff] }
 0x2e4   : > { %5508 = vst.msk [vmem:[%s7862_s9 + $0x28] sm:$0xff] %vm3566_vm2, %v5346_v2  ;;  %v5032_v17 = vmax.f32 %v4904_v43, 0.0  ;;  %v4228_v25 = vrot.slane %v4227_v62, 2  ;;  %v5033_v21 = vmax.f32 %v4905_v1, 0.0  ;;  %v5034_v41 = vmax.f32 %v4906_v8, 0.0  ;;  %v8599_v43 = vld [vmem:[#allocation72_spill] sm:$0xff] }
 0x2e5   : > { %v5035_v38 = vmax.f32 %v4907_v19, 0.0  ;;  %v5036_v60 = vmax.f32 %v4908_v34, 0.0  ;;  %v5037_v16 = vmax.f32 %v4909_v46, 0.0  ;;  %v5038_v28 = vmax.f32 %v4910_v50, 0.0  ;;  %v8060_v19 = vpop.f32.mrb[72].mxu1 }
 0x2e6   : > { %v5039_v45 = vmax.f32 %v4911_v11, 0.0  ;;  %v4229_v47 = vadd.f32 %v4228_v25, %v4227_v62  ;;  %v5319_v56 = vrot.slane %v5033_v21, 7  ;;  %v5321_v26 = vrot.slane %v5034_v41, 6 }
 0x2e7   : > { %v5323_v4 = vrot.slane %v5035_v38, 5  ;;  %v5325_v52 = vrot.slane %v5036_v60, 4  ;;  %v5327_v33 = vrot.slane %v5037_v16, 3  ;;  %v5329_v61 = vrot.slane %v5038_v28, 2  ;;  %v8600_v60 = vld [vmem:[#allocation27_spill] sm:$0xff] }
 0x2e8   : > { %v5331_v54 = vrot.slane %v5039_v45, 1  ;;  %v4230_v44 = vrot.slane %v4229_v47, 1  ;;  %v5320_v22 = vsel %vm5257_vm3, %v5319_v56, %v5032_v17  ;;  %v3535_v10 = vmax.f32 %v7979_v14, 0.0  ;;  %v8601_v45 = vld [vmem:[#allocation25_spill] sm:$0xff]  ;;  %v8602_v56 = vld [vmem:[#allocation32_spill] sm:$0xff] }
 0x2e9   : > { %v4573_v40 = vadd.f32 %v8596_v5, %v7793_v51  ;;  %v5322_v7 = vsel %vm5260_vm4, %v5321_v26, %v5320_v22  ;;  %v3280_v9 = vadd.f32 %v7957_v35, %v8597_v31  ;;  %v8050_v59 = vadd.f32 %v7793_v51, %v8598_v55  ;;  %v8604_v22 = vld [vmem:[#allocation43_spill] sm:$0xff] }
 0x2ea   : > { %v8054_v1 = vadd.f32 %v7957_v35, %v8599_v43  ;;  %v8056_v8 = vadd.f32 %v4230_v44, %v4229_v47  ;;  %v5324_v14 = vsel %vm5263_vm5, %v5323_v4, %v5322_v7  ;;  %v4246_v2 = vsel %vm3566_vm2, %v3535_v10, 0.0  ;;  %v8603_v4 = vld [vmem:[#allocation30_spill] sm:$0xff]  ;;  %v8070_v44 = vpop.f32.mrb[73].mxu1  ;;  %v8606_v7 = vld [vmem:[#allocation51_spill] sm:$0xff] }
 0x2eb   : > { %v4681_v62 = vrot.slane %v4573_v40, 1  ;;  %v5326_v34 = vsel %vm5266_vm6, %v5325_v52, %v5324_v14  ;;  %v4247_v46 = vrot.slane %v4246_v2, 4  ;;  %v4682_v53 = vrot.slane %v4573_v40, 2 }
 0x2ec   : > { %v4683_v50 = vrot.slane %v4573_v40, 3  ;;  %v5328_v3 = vsel %vm5269_vm7, %v5327_v33, %v5326_v34  ;;  %v4684_v11 = vrot.slane %v4573_v40, 4  ;;  %v4685_v17 = vrot.slane %v4573_v40, 5 }
 0x2ed   : > { %v4686_v25 = vrot.slane %v4573_v40, 6  ;;  %v5330_v21 = vsel %vm5272_vm8, %v5329_v61, %v5328_v3  ;;  %v4248_v41 = vadd.f32 %v4247_v46, %v4246_v2  ;;  %v4687_v38 = vrot.slane %v4573_v40, 7  ;;  %v8605_v61 = vld [vmem:[#allocation37_spill] sm:$0xff] }
 0x2ee   : > { %v4928_v16 = vadd.f32 %v4573_v40, %v8600_v60  ;;  %v5332_v28 = vsel %vm5275_vm9, %v5331_v54, %v5330_v21  ;;  %v4929_v47 = vadd.f32 %v4681_v62, %v8601_v45  ;;  %v4930_v26 = vadd.f32 %v4682_v53, %v8602_v56  ;;  %v8607_v40 = vld [vmem:[#allocation46_spill] sm:$0xff] }
 0x2ef   : > { %v4931_v52 = vadd.f32 %v4683_v50, %v8603_v4  ;;  %5507 = vst.msk [vmem:[%s7862_s9 + $0x20] sm:$0xff] %vm3566_vm2, %v5332_v28  ;;  %v4249_v33 = vrot.slane %v4248_v41, 2  ;;  %v4932_v10 = vadd.f32 %v4684_v11, %v8604_v22  ;;  %v4933_v5 = vadd.f32 %v4685_v17, %v8605_v61 }
 0x2f0   : > { %v4934_v31 = vadd.f32 %v4686_v25, %v8606_v7  ;;  %v4935_v55 = vadd.f32 %v4687_v38, %v8607_v40  ;;  %v5056_v54 = vmax.f32 %v4928_v16, 0.0  ;;  %v5057_v43 = vmax.f32 %v4929_v47, 0.0 }
 0x2f1   : > { %v5058_v14 = vmax.f32 %v4930_v26, 0.0  ;;  %v4250_v2 = vadd.f32 %v4249_v33, %v4248_v41  ;;  %v5059_v62 = vmax.f32 %v4931_v52, 0.0  ;;  %v5060_v34 = vmax.f32 %v4932_v10, 0.0  ;;  %v8088_v10 = vpop.f32.mrb[74].mxu1 }
 0x2f2   : > { %v5061_v46 = vmax.f32 %v4933_v5, 0.0  ;;  %v5062_v53 = vmax.f32 %v4934_v31, 0.0  ;;  %v5063_v50 = vmax.f32 %v4935_v55, 0.0  ;;  %v5361_v3 = vrot.slane %v5057_v43, 7  ;;  %v8093_v31 = vpop.f32.mrb[75].mxu1 }
 0x2f3   : > { %v5363_v21 = vrot.slane %v5058_v14, 6  ;;  %v4251_v60 = vrot.slane %v4250_v2, 1  ;;  %v5365_v28 = vrot.slane %v5059_v62, 5  ;;  %v5367_v11 = vrot.slane %v5060_v34, 4  ;;  %v8609_v14 = vld [vmem:[#allocation9_spill] sm:$0xff] }
 0x2f4   : > { %v5369_v45 = vrot.slane %v5061_v46, 3  ;;  %v5362_v17 = vsel %vm5257_vm3, %v5361_v3, %v5056_v54  ;;  %v5371_v25 = vrot.slane %v5062_v53, 2  ;;  %v5373_v56 = vrot.slane %v5063_v50, 1  ;;  %v8608_v54 = vld [vmem:[#allocation11_spill] sm:$0xff]  ;;  %v8611_v50 = vld [vmem:[#allocation13_spill] sm:$0xff] }
 0x2f5   : > { %v3534_v38 = vmax.f32 %v3280_v9, 0.0  ;;  %v8079_v16 = vadd.f32 %v4251_v60, %v4250_v2  ;;  %v5364_v41 = vsel %vm5260_vm4, %v5363_v21, %v5362_v17  ;;  %v4674_v47 = vrot.slane %v8050_v59, 1  ;;  %v8610_v46 = vld [vmem:[#allocation15_spill] sm:$0xff] }
 0x2f6   : > { %v4675_v26 = vrot.slane %v8050_v59, 2  ;;  %v5366_v4 = vsel %vm5263_vm5, %v5365_v28, %v5364_v41  ;;  %v4676_v33 = vrot.slane %v8050_v59, 3  ;;  %v4677_v22 = vrot.slane %v8050_v59, 4  ;;  %v8612_v60 = vld [vmem:[#allocation19_spill] sm:$0xff]  ;;  %v8107_v41 = vpop.f32.mrb[76].mxu1 }
 0x2f7   : > { %v4239_v52 = vsel %vm3566_vm2, %v3534_v38, 0.0  ;;  %v5368_v9 = vsel %vm5266_vm6, %v5367_v11, %v5366_v4  ;;  %v4678_v5 = vrot.slane %v8050_v59, 5  ;;  %v4679_v7 = vrot.slane %v8050_v59, 6  ;;  %v8613_v11 = vld [vmem:[#allocation17_spill] sm:$0xff]  ;;  %v8614_v17 = vld [vmem:[#allocation23_spill] sm:$0xff]  ;;  %8615 = vst [vmem:[#allocation26_spill] sm:$0xff] %v8107_v41 }
 0x2f8   : > { %v4240_v61 = vrot.slane %v4239_v52, 4  ;;  %v5370_v40 = vsel %vm5269_vm7, %v5369_v45, %v5368_v9  ;;  %v4680_v55 = vrot.slane %v8050_v59, 7  ;;  %v4920_v43 = vadd.f32 %v8050_v59, %v8608_v54 }
 0x2f9   : > { %v4921_v2 = vadd.f32 %v4674_v47, %v8609_v14  ;;  %v5372_v62 = vsel %vm5272_vm8, %v5371_v25, %v5370_v40  ;;  %v4922_v53 = vadd.f32 %v4675_v26, %v8610_v46  ;;  %v4923_v3 = vadd.f32 %v4676_v33, %v8611_v50  ;;  %v8616_v47 = vld [vmem:[#allocation21_spill] sm:$0xff]  ;;  %v8112_v26 = vpop.f32.mrb[77].mxu1 }
 0x2fa   : > { %v4241_v34 = vadd.f32 %v4240_v61, %v4239_v52  ;;  %v5374_v21 = vsel %vm5275_vm9, %v5373_v56, %v5372_v62  ;;  %v4924_v28 = vadd.f32 %v4677_v22, %v8612_v60  ;;  %v4925_v45 = vadd.f32 %v4678_v5, %v8613_v11  ;;  %8617 = vst [vmem:[#allocation24_spill] sm:$0xff] %v8112_v26  ;;  %v8631_v26 = vld [vmem:[#allocation71_spill] sm:$0xff] }
 0x2fb   : > { %v4926_v38 = vadd.f32 %v4679_v7, %v8614_v17  ;;  %5510 = vst.msk [vmem:[%s7862_s9 + $0x38] sm:$0xff] %vm3566_vm2, %v5374_v21  ;;  %v4927_v25 = vadd.f32 %v4680_v55, %v8616_v47  ;;  %v5048_v4 = vmax.f32 %v4920_v43, 0.0  ;;  %v5049_v52 = vmax.f32 %v4921_v2, 0.0  ;;  %v8115_v2 = vpop.f32.mrb[78].mxu1 }
 0x2fc   : > { %v4242_v59 = vrot.slane %v4241_v34, 2  ;;  %v5050_v33 = vmax.f32 %v4922_v53, 0.0  ;;  %v5051_v9 = vmax.f32 %v4923_v3, 0.0  ;;  %v5052_v56 = vmax.f32 %v4924_v28, 0.0  ;;  %8618 = vst [vmem:[#allocation49_spill] sm:$0xff] %v8115_v2  ;;  %v8620_v28 = vld [vmem:[#allocation75_spill] sm:$0xff] }
 0x2fd   : > { %v5053_v61 = vmax.f32 %v4925_v45, 0.0  ;;  %v5054_v40 = vmax.f32 %v4926_v38, 0.0  ;;  %v5055_v5 = vmax.f32 %v4927_v25, 0.0  ;;  %v5347_v54 = vrot.slane %v5049_v52, 7  ;;  %v8123_v45 = vpop.f32.mrb[79].mxu1  ;;  %v8623_v25 = vld [vmem:[#allocation42_spill] sm:$0xff] }
 0x2fe   : > { %v4243_v22 = vadd.f32 %v4242_v59, %v4241_v34  ;;  %v5349_v7 = vrot.slane %v5050_v33, 6  ;;  %v5351_v14 = vrot.slane %v5051_v9, 5  ;;  %v5353_v62 = vrot.slane %v5052_v56, 4  ;;  %v8619_v34 = vld [vmem:[#allocation33_spill] sm:$0xff]  ;;  %8621 = vst [vmem:[#allocation50_spill] sm:$0xff] %v8123_v45  ;;  %v8622_v59 = vld [vmem:[#allocation39_spill] sm:$0xff] }
 0x2ff   : > { %v5355_v46 = vrot.slane %v5053_v61, 3  ;;  %v5348_v21 = vsel %vm5257_vm3, %v5347_v54, %v5048_v4  ;;  %v5357_v55 = vrot.slane %v5054_v40, 2  ;;  %v5359_v43 = vrot.slane %v5055_v5, 1  ;;  %v8630_v45 = vld [vmem:[#allocation34_spill] sm:$0xff] }
 0x300   : > { %v4244_v50 = vrot.slane %v4243_v22, 1  ;;  %v5350_v53 = vsel %vm5260_vm4, %v5349_v7, %v5348_v21  ;;  %v3537_v3 = vmax.f32 %v8054_v1, 0.0  ;;  %v4583_v60 = vadd.f32 %v8619_v34, %v7793_v51  ;;  %v8624_v21 = vld [vmem:[#allocation64_spill] sm:$0xff] }
 0x301   : > { %v3290_v11 = vadd.f32 %v7957_v35, %v8620_v28  ;;  %v5352_v38 = vsel %vm5263_vm5, %v5351_v14, %v5350_v53  ;;  %v8130_v47 = vadd.f32 %v7793_v51, %v8622_v59  ;;  %v8134_v4 = vadd.f32 %v7957_v35, %v8623_v25  ;;  %v8625_v53 = vld [vmem:[#allocation63_spill] sm:$0xff]  ;;  %v8628_v59 = vld [vmem:[#allocation70_spill] sm:$0xff] }
 0x302   : > { %v8125_v17 = vadd.f32 %v4244_v50, %v4243_v22  ;;  %v5354_v1 = vsel %vm5266_vm6, %v5353_v62, %v5352_v38  ;;  %v4260_v52 = vsel %vm3566_vm2, %v3537_v3, 0.0  ;;  %v4695_v33 = vrot.slane %v4583_v60, 1  ;;  %v8626_v3 = vld [vmem:[#allocation67_spill] sm:$0xff] }
 0x303   : > { %v4696_v9 = vrot.slane %v4583_v60, 2  ;;  %v5356_v56 = vsel %vm5269_vm7, %v5355_v46, %v5354_v1  ;;  %v4261_v61 = vrot.slane %v4260_v52, 4  ;;  %v4697_v22 = vrot.slane %v4583_v60, 3  ;;  %v8627_v46 = vld [vmem:[#allocation66_spill] sm:$0xff]  ;;  %v8629_v1 = vld [vmem:[#allocation69_spill] sm:$0xff] }
 0x304   : > { %v4698_v40 = vrot.slane %v4583_v60, 4  ;;  %v5358_v5 = vsel %vm5272_vm8, %v5357_v55, %v5356_v56  ;;  %v4699_v51 = vrot.slane %v4583_v60, 5  ;;  %v4700_v54 = vrot.slane %v4583_v60, 6 }
 0x305   : > { %v4701_v7 = vrot.slane %v4583_v60, 7  ;;  %v5360_v14 = vsel %vm5275_vm9, %v5359_v43, %v5358_v5  ;;  %v4262_v50 = vadd.f32 %v4261_v61, %v4260_v52  ;;  %v4944_v62 = vadd.f32 %v4583_v60, %v8624_v21 }
 0x306   : > { %v4945_v34 = vadd.f32 %v4695_v33, %v8625_v53  ;;  %5509 = vst.msk [vmem:[%s7862_s9 + $0x30] sm:$0xff] %vm3566_vm2, %v5360_v14  ;;  %v4946_v28 = vadd.f32 %v4696_v9, %v8626_v3  ;;  %v4947_v38 = vadd.f32 %v4697_v22, %v8627_v46  ;;  %v4948_v25 = vadd.f32 %v4698_v40, %v8628_v59 }
 0x307   : > { %v4949_v55 = vadd.f32 %v4699_v51, %v8629_v1  ;;  %v4263_v56 = vrot.slane %v4262_v50, 2  ;;  %v4950_v2 = vadd.f32 %v4700_v54, %v8630_v45  ;;  %v4951_v43 = vadd.f32 %v4701_v7, %v8631_v26 }
 0x308   : > { %v5072_v52 = vmax.f32 %v4944_v62, 0.0  ;;  %v5073_v61 = vmax.f32 %v4945_v34, 0.0  ;;  %v5074_v60 = vmax.f32 %v4946_v28, 0.0  ;;  %v5075_v5 = vmax.f32 %v4947_v38, 0.0 }
 0x309   : > { %v5076_v33 = vmax.f32 %v4948_v25, 0.0  ;;  %v4264_v21 = vadd.f32 %v4263_v56, %v4262_v50  ;;  %v5077_v14 = vmax.f32 %v4949_v55, 0.0  ;;  %v5078_v53 = vmax.f32 %v4950_v2, 0.0 }
 0x30a   : > { %v5079_v9 = vmax.f32 %v4951_v43, 0.0  ;;  %v5389_v3 = vrot.slane %v5073_v61, 7  ;;  %v5391_v22 = vrot.slane %v5074_v60, 6  ;;  %v5393_v46 = vrot.slane %v5075_v5, 5  ;;  %v8633_v5 = vld [vmem:[#allocation55_spill] sm:$0xff] }
 0x30b   : > { %v5395_v40 = vrot.slane %v5076_v33, 4  ;;  %v4265_v59 = vrot.slane %v4264_v21, 1  ;;  %v5397_v51 = vrot.slane %v5077_v14, 3  ;;  %v5399_v1 = vrot.slane %v5078_v53, 2  ;;  %v8635_v53 = vld [vmem:[#allocation57_spill] sm:$0xff] }
 0x30c   : > { %v5401_v41 = vrot.slane %v5079_v9, 1  ;;  %v5390_v45 = vsel %vm5257_vm3, %v5389_v3, %v5072_v52  ;;  %v3536_v26 = vmax.f32 %v3290_v11, 0.0  ;;  %v4688_v54 = vrot.slane %v8130_v47, 1  ;;  %v8632_v52 = vld [vmem:[#allocation56_spill] sm:$0xff] }
 0x30d   : > { %v4689_v7 = vrot.slane %v8130_v47, 2  ;;  %v8154_v62 = vadd.f32 %v4265_v59, %v4264_v21  ;;  %v5392_v2 = vsel %vm5260_vm4, %v5391_v22, %v5390_v45  ;;  %v4690_v50 = vrot.slane %v8130_v47, 3  ;;  %v8634_v21 = vld [vmem:[#allocation58_spill] sm:$0xff]  ;;  %v8637_v59 = vld [vmem:[#allocation59_spill] sm:$0xff] }
 0x30e   : > { %v4691_v34 = vrot.slane %v8130_v47, 4  ;;  %v5394_v28 = vsel %vm5263_vm5, %v5393_v46, %v5392_v2  ;;  %v4253_v38 = vsel %vm3566_vm2, %v3536_v26, 0.0  ;;  %v4692_v25 = vrot.slane %v8130_v47, 5  ;;  %v8636_v46 = vld [vmem:[#allocation60_spill] sm:$0xff]  ;;  %v8638_v2 = vld [vmem:[#allocation62_spill] sm:$0xff] }
 0x30f   : > { %v4693_v11 = vrot.slane %v8130_v47, 6  ;;  %v5396_v55 = vsel %vm5266_vm6, %v5395_v40, %v5394_v28  ;;  %v4254_v56 = vrot.slane %v4253_v38, 4  ;;  %v4694_v43 = vrot.slane %v8130_v47, 7 }
 0x310   : > { %v4936_v61 = vadd.f32 %v8130_v47, %v8632_v52  ;;  %v5398_v60 = vsel %vm5269_vm7, %v5397_v51, %v5396_v55  ;;  %v4937_v33 = vadd.f32 %v4688_v54, %v8633_v5  ;;  %v4938_v14 = vadd.f32 %v4689_v7, %v8634_v21  ;;  %v8639_v47 = vld [vmem:[#allocation61_spill] sm:$0xff] }
 0x311   : > { %v4939_v9 = vadd.f32 %v4690_v50, %v8635_v53  ;;  %v5400_v3 = vsel %vm5272_vm8, %v5399_v1, %v5398_v60  ;;  %v4255_v22 = vadd.f32 %v4254_v56, %v4253_v38  ;;  %v4940_v40 = vadd.f32 %v4691_v34, %v8636_v46 }
 0x312   : > { %v4941_v45 = vadd.f32 %v4692_v25, %v8637_v59  ;;  %v5402_v26 = vsel %vm5275_vm9, %v5401_v41, %v5400_v3  ;;  %v4942_v28 = vadd.f32 %v4693_v11, %v8638_v2  ;;  %v4943_v52 = vadd.f32 %v4694_v43, %v8639_v47 }
 0x313   : > { %v5064_v51 = vmax.f32 %v4936_v61, 0.0  ;;  %5512 = vst.msk [vmem:[%s7862_s9 + $0x48] sm:$0xff] %vm3566_vm2, %v5402_v26  ;;  %v4256_v54 = vrot.slane %v4255_v22, 2  ;;  %v5065_v7 = vmax.f32 %v4937_v33, 0.0  ;;  %v5066_v55 = vmax.f32 %v4938_v14, 0.0  ;;  %v8640_v14 = vld [vmem:[#allocation78_spill] sm:$0xff] }
 0x314   : > { %v5067_v50 = vmax.f32 %v4939_v9, 0.0  ;;  %v5068_v5 = vmax.f32 %v4940_v40, 0.0  ;;  %v5069_v1 = vmax.f32 %v4941_v45, 0.0  ;;  %v5070_v38 = vmax.f32 %v4942_v28, 0.0  ;;  %v8184_v33 = vld [vmem:[%s8436_s6] ss:$0 sm:$0xff] }
 0x315   : > { %v5071_v56 = vmax.f32 %v4943_v52, 0.0  ;;  %v4257_v34 = vadd.f32 %v4256_v54, %v4255_v22  ;;  %v5375_v60 = vrot.slane %v5065_v7, 7  ;;  %v5377_v25 = vrot.slane %v5066_v55, 6  ;;  %v8641_v40 = vld [vmem:[#allocation47_spill] sm:$0xff]  ;;  %v8642_v45 = vld [vmem:[#allocation81_spill] sm:$0xff] }
 0x316   : > { %v5379_v21 = vrot.slane %v5067_v50, 5  ;;  %v5381_v41 = vrot.slane %v5068_v5, 4  ;;  %v5383_v53 = vrot.slane %v5069_v1, 3  ;;  %v5385_v11 = vrot.slane %v5070_v38, 2 }
 0x317   : > { %v5387_v3 = vrot.slane %v5071_v56, 1  ;;  %v4258_v43 = vrot.slane %v4257_v34, 1  ;;  %v5376_v61 = vsel %vm5257_vm3, %v5375_v60, %v5064_v51  ;;  %v3539_v46 = vmax.f32 %v8134_v4, 0.0  ;;  %v8643_v60 = vld [vmem:[#allocation14_spill] sm:$0xff] }
 0x318   : > { %v4593_v9 = vadd.f32 %v8184_v33, %v8640_v14  ;;  %v5378_v22 = vsel %vm5260_vm4, %v5377_v25, %v5376_v61  ;;  %v3300_v59 = vadd.f32 %v7957_v35, %v8641_v40  ;;  %v8193_v26 = vadd.f32 %v8184_v33, %v8642_v45 }
 0x319   : > { %v8197_v4 = vadd.f32 %v7957_v35, %v7825_v63  ;;  %v8199_v2 = vadd.f32 %v4258_v43, %v4257_v34  ;;  %v5380_v28 = vsel %vm5263_vm5, %v5379_v21, %v5378_v22  ;;  %v4274_v47 = vsel %vm3566_vm2, %v3539_v46, 0.0  ;;  %v8644_v43 = vld [vmem:[#allocation82_spill] sm:$0xff]  ;;  %v8645_v46 = vld [vmem:[#allocation12_spill] sm:$0xff] }
 0x31a   : > { %v4709_v52 = vrot.slane %v4593_v9, 1  ;;  %v5382_v51 = vsel %vm5266_vm6, %v5381_v41, %v5380_v28  ;;  %v4275_v54 = vrot.slane %v4274_v47, 4  ;;  %v4710_v7 = vrot.slane %v4593_v9, 2 }
 0x31b   : > { %v4711_v55 = vrot.slane %v4593_v9, 3  ;;  %v5384_v50 = vsel %vm5269_vm7, %v5383_v53, %v5382_v51  ;;  %v4712_v5 = vrot.slane %v4593_v9, 4  ;;  %v4713_v1 = vrot.slane %v4593_v9, 5 }
 0x31c   : > { %v4714_v38 = vrot.slane %v4593_v9, 6  ;;  %v5386_v63 = vsel %vm5272_vm8, %v5385_v11, %v5384_v50  ;;  %v4276_v56 = vadd.f32 %v4275_v54, %v4274_v47  ;;  %v4715_v34 = vrot.slane %v4593_v9, 7 }
 0x31d   : > { %v4960_v25 = vadd.f32 %v4593_v9, %v8643_v60  ;;  %v5388_v21 = vsel %vm5275_vm9, %v5387_v3, %v5386_v63  ;;  %v4961_v61 = vadd.f32 %v4709_v52, %v8644_v43  ;;  %v4962_v41 = vadd.f32 %v4710_v7, %v7889_v29 }
 0x31e   : > { %v4963_v14 = vadd.f32 %v4711_v55, %v8645_v46  ;;  %5511 = vst.msk [vmem:[%s7862_s9 + $0x40] sm:$0xff] %vm3566_vm2, %v5388_v21  ;;  %v4277_v53 = vrot.slane %v4276_v56, 2  ;;  %v4964_v22 = vadd.f32 %v4712_v5, %v7974_v57  ;;  %v4965_v40 = vadd.f32 %v4713_v1, %v7925_v20 }
 0x31f   : > { %v4966_v11 = vadd.f32 %v4714_v38, %v8056_v8  ;;  %v4967_v45 = vadd.f32 %v4715_v34, %v8012_v24  ;;  %v5088_v9 = vmax.f32 %v4960_v25, 0.0  ;;  %v5089_v28 = vmax.f32 %v4961_v61, 0.0 }
 0x320   : > { %v5090_v3 = vmax.f32 %v4962_v41, 0.0  ;;  %v4278_v47 = vadd.f32 %v4277_v53, %v4276_v56  ;;  %v5091_v52 = vmax.f32 %v4963_v14, 0.0  ;;  %v5092_v51 = vmax.f32 %v4964_v22, 0.0 }
 0x321   : > { %v5093_v29 = vmax.f32 %v4965_v40, 0.0  ;;  %v5094_v54 = vmax.f32 %v4966_v11, 0.0  ;;  %v5095_v7 = vmax.f32 %v4967_v45, 0.0  ;;  %v5417_v55 = vrot.slane %v5089_v28, 7  ;;  %v8646_v11 = vld [vmem:[#allocation38_spill] sm:$0xff] }
 0x322   : > { %v5419_v50 = vrot.slane %v5090_v3, 6  ;;  %v4279_v63 = vrot.slane %v4278_v47, 1  ;;  %v5421_v60 = vrot.slane %v5091_v52, 5  ;;  %v5423_v57 = vrot.slane %v5092_v51, 4  ;;  %v8648_v52 = vld [vmem:[#allocation41_spill] sm:$0xff] }
 0x323   : > { %v5425_v5 = vrot.slane %v5093_v29, 3  ;;  %v5418_v20 = vsel %vm5257_vm3, %v5417_v55, %v5088_v9  ;;  %v5427_v8 = vrot.slane %v5094_v54, 2  ;;  %v5429_v1 = vrot.slane %v5095_v7, 1  ;;  %v8647_v9 = vld [vmem:[#allocation74_spill] sm:$0xff]  ;;  %v8649_v29 = vld [vmem:[#allocation76_spill] sm:$0xff]  ;;  %v8650_v55 = vld [vmem:[#allocation45_spill] sm:$0xff] }
 0x324   : > { %v3538_v24 = vmax.f32 %v3300_v59, 0.0  ;;  %v8218_v38 = vadd.f32 %v4279_v63, %v4278_v47  ;;  %v5420_v56 = vsel %vm5260_vm4, %v5419_v50, %v5418_v20  ;;  %v4702_v34 = vrot.slane %v8193_v26, 1  ;;  %v8651_v63 = vld [vmem:[#allocation77_spill] sm:$0xff]  ;;  %v8653_v20 = vld [vmem:[#allocation79_spill] sm:$0xff] }
 0x325   : > { %v4703_v25 = vrot.slane %v8193_v26, 2  ;;  %v5422_v21 = vsel %vm5263_vm5, %v5421_v60, %v5420_v56  ;;  %v4704_v61 = vrot.slane %v8193_v26, 3  ;;  %v4705_v41 = vrot.slane %v8193_v26, 4 }
 0x326   : > { %v4267_v43 = vsel %vm3566_vm2, %v3538_v24, 0.0  ;;  %v5424_v46 = vsel %vm5266_vm6, %v5423_v57, %v5422_v21  ;;  %v4706_v14 = vrot.slane %v8193_v26, 5  ;;  %v4707_v53 = vrot.slane %v8193_v26, 6  ;;  %v8652_v57 = vld [vmem:[#allocation80_spill] sm:$0xff] }
 0x327   : > { %v4268_v59 = vrot.slane %v4267_v43, 4  ;;  %v5426_v22 = vsel %vm5269_vm7, %v5425_v5, %v5424_v46  ;;  %v4708_v40 = vrot.slane %v8193_v26, 7  ;;  %v4952_v45 = vadd.f32 %v8193_v26, %v8646_v11 }
 0x328   : > { %v4953_v28 = vadd.f32 %v4702_v34, %v8647_v9  ;;  %v5428_v3 = vsel %vm5272_vm8, %v5427_v8, %v5426_v22  ;;  %v4954_v51 = vadd.f32 %v4703_v25, %v8648_v52  ;;  %v4955_v54 = vadd.f32 %v4704_v61, %v8649_v29 }
 0x329   : > { %v4269_v47 = vadd.f32 %v4268_v59, %v4267_v43  ;;  %v5430_v7 = vsel %vm5275_vm9, %v5429_v1, %v5428_v3  ;;  %v4956_v50 = vadd.f32 %v4705_v41, %v8650_v55  ;;  %v4957_v60 = vadd.f32 %v4706_v14, %v8651_v63  ;;  %v8656_v55 = vld [vmem:[#allocation22_spill] sm:$0xff]  ;;  %v8657_v63 = vld [vmem:[#allocation20_spill] sm:$0xff] }
 0x32a   : > { %v4958_v5 = vadd.f32 %v4707_v53, %v8652_v57  ;;  %5514 = vst.msk [vmem:[%s7862_s9 + $0x58] sm:$0xff] %vm3566_vm2, %v5430_v7  ;;  %v4959_v24 = vadd.f32 %v4708_v40, %v8653_v20  ;;  %v5080_v56 = vmax.f32 %v4952_v45, 0.0  ;;  %v5081_v8 = vmax.f32 %v4953_v28, 0.0  ;;  %v8654_v28 = vld [vmem:[#allocation18_spill] sm:$0xff] }
 0x32b   : > { %v4270_v26 = vrot.slane %v4269_v47, 2  ;;  %v5082_v34 = vmax.f32 %v4954_v51, 0.0  ;;  %v5083_v21 = vmax.f32 %v4955_v54, 0.0  ;;  %v5084_v25 = vmax.f32 %v4956_v50, 0.0 }
 0x32c   : > { %v5085_v43 = vmax.f32 %v4957_v60, 0.0  ;;  %v5086_v46 = vmax.f32 %v4958_v5, 0.0  ;;  %v5087_v1 = vmax.f32 %v4959_v24, 0.0  ;;  %v5403_v59 = vrot.slane %v5081_v8, 7 }
 0x32d   : > { %v4271_v61 = vadd.f32 %v4270_v26, %v4269_v47  ;;  %v5405_v41 = vrot.slane %v5082_v34, 6  ;;  %v5407_v22 = vrot.slane %v5083_v21, 5  ;;  %v5409_v14 = vrot.slane %v5084_v25, 4  ;;  %v8655_v47 = vld [vmem:[#allocation16_spill] sm:$0xff] }
 0x32e   : > { %v5411_v11 = vrot.slane %v5085_v43, 3  ;;  %v5404_v9 = vsel %vm5257_vm3, %v5403_v59, %v5080_v56  ;;  %v5413_v3 = vrot.slane %v5086_v46, 2  ;;  %v5415_v52 = vrot.slane %v5087_v1, 1 }
 0x32f   : > { %v4272_v53 = vrot.slane %v4271_v61, 1  ;;  %v5406_v40 = vsel %vm5260_vm4, %v5405_v41, %v5404_v9  ;;  %v3541_v45 = vmax.f32 %v8197_v4, 0.0  ;;  %v8250_v51 = vadd.f32 %v8184_v33, %v8654_v28 }
 0x330   : > { %v3310_v29 = vadd.f32 %v7957_v35, %v8655_v47  ;;  %v5408_v7 = vsel %vm5263_vm5, %v5407_v22, %v5406_v40  ;;  %v8257_v50 = vadd.f32 %v8184_v33, %v8656_v55  ;;  %v3325_v60 = vadd.f32 %v7957_v35, %v8657_v63 }
 0x331   : > { %v4273_v54 = vadd.f32 %v4272_v53, %v4271_v61  ;;  %v5410_v57 = vsel %vm5266_vm6, %v5409_v14, %v5408_v7  ;;  %v4288_v4 = vsel %vm3566_vm2, %v3541_v45, 0.0  ;;  %v4723_v26 = vrot.slane %v8250_v51, 1 }
 0x332   : > { %v3540_v5 = vmax.f32 %v3310_v29, 0.0  ;;  %v5412_v20 = vsel %vm5269_vm7, %v5411_v11, %v5410_v57  ;;  %v4289_v24 = vrot.slane %v4288_v4, 4  ;;  %v4716_v56 = vrot.slane %v8257_v50, 1 }
 0x333   : > { %v4717_v8 = vrot.slane %v8257_v50, 2  ;;  %v5414_v34 = vsel %vm5272_vm8, %v5413_v3, %v5412_v20  ;;  %v4718_v25 = vrot.slane %v8257_v50, 3  ;;  %v4719_v43 = vrot.slane %v8257_v50, 4 }
 0x334   : > { %v4281_v21 = vsel %vm3566_vm2, %v3540_v5, 0.0  ;;  %v5416_v61 = vsel %vm5275_vm9, %v5415_v52, %v5414_v34  ;;  %v4290_v46 = vadd.f32 %v4289_v24, %v4288_v4  ;;  %v4720_v59 = vrot.slane %v8257_v50, 5 }
 0x335   : > { %v4282_v1 = vrot.slane %v4281_v21, 4  ;;  %5513 = vst.msk [vmem:[%s7862_s9 + $0x50] sm:$0xff] %vm3566_vm2, %v5416_v61  ;;  %v4721_v41 = vrot.slane %v8257_v50, 6  ;;  %v4722_v22 = vrot.slane %v8257_v50, 7  ;;  %v4968_v14 = vadd.f32 %v8257_v50, %v8125_v17 }
 0x336   : > { %v4969_v11 = vadd.f32 %v4716_v56, %v8079_v16  ;;  %v4291_v53 = vrot.slane %v4290_v46, 2  ;;  %v4970_v3 = vadd.f32 %v4717_v8, %v8199_v2  ;;  %v4971_v52 = vadd.f32 %v4718_v25, %v8154_v62 }
 0x337   : > { %v4283_v9 = vadd.f32 %v4282_v1, %v4281_v21  ;;  %v4972_v40 = vadd.f32 %v4719_v43, %v4273_v54  ;;  %v4973_v45 = vadd.f32 %v4720_v59, %v8218_v38  ;;  %v5096_v28 = vmax.f32 %v4968_v14, 0.0 }
 0x338   : > { %v5097_v47 = vmax.f32 %v4969_v11, 0.0  ;;  %v4292_v29 = vadd.f32 %v4291_v53, %v4290_v46  ;;  %v5098_v55 = vmax.f32 %v4970_v3, 0.0  ;;  %v5099_v63 = vmax.f32 %v4971_v52, 0.0 }
 0x339   : > { %v4284_v7 = vrot.slane %v4283_v9, 2  ;;  %v5100_v57 = vmax.f32 %v4972_v40, 0.0  ;;  %v5101_v4 = vmax.f32 %v4973_v45, 0.0  ;;  %v3543_v50 = vmax.f32 %v3325_v60, 0.0 }
 0x33a   : > { %v5431_v17 = vrot.slane %v5097_v47, 7  ;;  %v4293_v16 = vrot.slane %v4292_v29, 1  ;;  %v5433_v20 = vrot.slane %v5098_v55, 6  ;;  %v5435_v24 = vrot.slane %v5099_v63, 5 }
 0x33b   : > { %v4285_v5 = vadd.f32 %v4284_v7, %v4283_v9  ;;  %v5437_v62 = vrot.slane %v5100_v57, 4  ;;  %v5439_v54 = vrot.slane %v5101_v4, 3  ;;  %v4302_v38 = vsel %vm3566_vm2, %v3543_v50, 0.0 }
 0x33c   : > { %v5432_v2 = vsel %vm5257_vm3, %v5431_v17, %v5096_v28  ;;  %v4294_v56 = vadd.f32 %v4293_v16, %v4292_v29  ;;  %v4303_v21 = vrot.slane %v4302_v38, 4  ;;  %v3320_v60 = vadd.f32 %v7957_v35, %v7880_v15 }
 0x33d   : > { %v4286_v8 = vrot.slane %v4285_v5, 1  ;;  %v5434_v34 = vsel %vm5260_vm4, %v5433_v20, %v5432_v2  ;;  %v3335_v43 = vadd.f32 %v7957_v35, %v7905_v48  ;;  %v4725_v61 = vrot.slane %v8250_v51, 3 }
 0x33e   : > { %v5436_v25 = vsel %vm5263_vm5, %v5435_v24, %v5434_v34  ;;  %v4975_v1 = vadd.f32 %v4722_v22, %v4294_v56  ;;  %v4304_v14 = vadd.f32 %v4303_v21, %v4302_v38  ;;  %v3542_v53 = vmax.f32 %v3320_v60, 0.0 }
 0x33f   : > { %v4287_v46 = vadd.f32 %v4286_v8, %v4285_v5  ;;  %v5438_v59 = vsel %vm5266_vm6, %v5437_v62, %v5436_v25  ;;  %v3545_v9 = vmax.f32 %v3335_v43, 0.0  ;;  %v3330_v3 = vadd.f32 %v7957_v35, %v7912_v12 }
 0x340   : > { %v5440_v11 = vsel %vm5269_vm7, %v5439_v54, %v5438_v59  ;;  %v5103_v40 = vmax.f32 %v4975_v1, 0.0  ;;  %v4305_v15 = vrot.slane %v4304_v14, 2  ;;  %v4724_v45 = vrot.slane %v8250_v51, 2 }
 0x341   : > { %v4974_v52 = vadd.f32 %v4721_v41, %v4287_v46  ;;  %v4295_v48 = vsel %vm3566_vm2, %v3542_v53, 0.0  ;;  %v4316_v28 = vsel %vm3566_vm2, %v3545_v9, 0.0  ;;  %v3544_v22 = vmax.f32 %v3330_v3, 0.0 }
 0x342   : > { %v3345_v47 = vadd.f32 %v7957_v35, %v7914_v18  ;;  %v5443_v7 = vrot.slane %v5103_v40, 1  ;;  %v4306_v55 = vadd.f32 %v4305_v15, %v4304_v14  ;;  %v4296_v63 = vrot.slane %v4295_v48, 4 }
 0x343   : > { %v5102_v29 = vmax.f32 %v4974_v52, 0.0  ;;  %v4317_v57 = vrot.slane %v4316_v28, 4  ;;  %v4309_v12 = vsel %vm3566_vm2, %v3544_v22, 0.0  ;;  %v4727_v4 = vrot.slane %v8250_v51, 5 }
 0x344   : > { %v3547_v41 = vmax.f32 %v3345_v47, 0.0  ;;  %v4307_v50 = vrot.slane %v4306_v55, 1  ;;  %v4297_v16 = vadd.f32 %v4296_v63, %v4295_v48  ;;  %v4310_v5 = vrot.slane %v4309_v12, 4 }
 0x345   : > { %v5441_v17 = vrot.slane %v5102_v29, 2  ;;  %v4318_v20 = vadd.f32 %v4317_v57, %v4316_v28  ;;  %v3340_v18 = vadd.f32 %v7957_v35, %v7916_v37  ;;  %v4726_v2 = vrot.slane %v8250_v51, 4 }
 0x346   : > { %v4330_v24 = vsel %vm3566_vm2, %v3547_v41, 0.0  ;;  %v4308_v54 = vadd.f32 %v4307_v50, %v4306_v55  ;;  %v4298_v38 = vrot.slane %v4297_v16, 2  ;;  %v4311_v56 = vadd.f32 %v4310_v5, %v4309_v12 }
 0x347   : > { %v5442_v62 = vsel %vm5272_vm8, %v5441_v17, %v5440_v11  ;;  %v4319_v34 = vrot.slane %v4318_v20, 2  ;;  %v4331_v21 = vrot.slane %v4330_v24, 4  ;;  %v3546_v25 = vmax.f32 %v3340_v18, 0.0 }
 0x348   : > { %v5444_v8 = vsel %vm5275_vm9, %v5443_v7, %v5442_v62  ;;  %v4977_v60 = vadd.f32 %v4723_v26, %v4308_v54  ;;  %v4299_v43 = vadd.f32 %v4298_v38, %v4297_v16  ;;  %v4312_v46 = vrot.slane %v4311_v56, 2  ;;  %v8320_v26 = vld [vmem:[%s8434_s4] ss:$0 sm:$0xff] }
 0x349   : > { %5515 = vst.msk [vmem:[%s7862_s9 + $0x60] sm:$0xff] %vm3566_vm2, %v5444_v8  ;;  %v3355_v37 = vadd.f32 %v7957_v35, %v7930_v13  ;;  %v4320_v1 = vadd.f32 %v4319_v34, %v4318_v20  ;;  %v4332_v59 = vadd.f32 %v4331_v21, %v4330_v24  ;;  %v4323_v14 = vsel %vm3566_vm2, %v3546_v25, 0.0 }
 0x34a   : > { %v4729_v11 = vrot.slane %v8250_v51, 7  ;;  %v5105_v53 = vmax.f32 %v4977_v60, 0.0  ;;  %v4300_v9 = vrot.slane %v4299_v43, 1  ;;  %v4313_v3 = vadd.f32 %v4312_v46, %v4311_v56 }
 0x34b   : > { %v4324_v52 = vrot.slane %v4323_v14, 4  ;;  %v4321_v40 = vrot.slane %v4320_v1, 1  ;;  %v4333_v15 = vrot.slane %v4332_v59, 2  ;;  %v3549_v48 = vmax.f32 %v3355_v37, 0.0 }
 0x34c   : > { %v3350_v13 = vadd.f32 %v8320_v26, %v7940_v49  ;;  %v5445_v35 = vrot.slane %v5105_v53, 7  ;;  %v4301_v28 = vadd.f32 %v4300_v9, %v4299_v43  ;;  %v4314_v22 = vrot.slane %v4313_v3, 1 }
 0x34d   : > { %v4325_v47 = vadd.f32 %v4324_v52, %v4323_v14  ;;  %v4322_v29 = vadd.f32 %v4321_v40, %v4320_v1  ;;  %v4334_v7 = vadd.f32 %v4333_v15, %v4332_v59  ;;  %v4344_v55 = vsel %vm3566_vm2, %v3549_v48, 0.0 }
 0x34e   : > { %v3548_v63 = vmax.f32 %v3350_v13, 0.0  ;;  %v4976_v57 = vadd.f32 %v8250_v51, %v4301_v28  ;;  %v4315_v12 = vadd.f32 %v4314_v22, %v4313_v3  ;;  %v4345_v17 = vrot.slane %v4344_v55, 4 }
 0x34f   : > { %v4326_v41 = vrot.slane %v4325_v47, 2  ;;  %v4979_v50 = vadd.f32 %v4725_v61, %v4322_v29  ;;  %v4335_v16 = vrot.slane %v4334_v7, 1  ;;  %v4728_v5 = vrot.slane %v8250_v51, 6 }
 0x350   : > { %v4337_v49 = vsel %vm3566_vm2, %v3548_v63, 0.0  ;;  %v5104_v20 = vmax.f32 %v4976_v57, 0.0  ;;  %v4978_v24 = vadd.f32 %v4724_v45, %v4315_v12  ;;  %v4346_v62 = vadd.f32 %v4345_v17, %v4344_v55 }
 0x351   : > { %v4327_v18 = vadd.f32 %v4326_v41, %v4325_v47  ;;  %v5107_v54 = vmax.f32 %v4979_v50, 0.0  ;;  %v4336_v38 = vadd.f32 %v4335_v16, %v4334_v7  ;;  %v4338_v56 = vrot.slane %v4337_v49, 4 }
 0x352   : > { %v3365_v8 = vadd.f32 %v8320_v26, %v7951_v42  ;;  %v5446_v34 = vsel %vm5257_vm3, %v5445_v35, %v5104_v20  ;;  %v5106_v61 = vmax.f32 %v4978_v24, 0.0  ;;  %v4347_v25 = vrot.slane %v4346_v62, 2 }
 0x353   : > { %v4328_v21 = vrot.slane %v4327_v18, 1  ;;  %v5449_v60 = vrot.slane %v5107_v54, 5  ;;  %v4981_v43 = vadd.f32 %v4727_v4, %v4336_v38  ;;  %v4339_v46 = vadd.f32 %v4338_v56, %v4337_v49 }
 0x354   : > { %v3551_v37 = vmax.f32 %v3365_v8, 0.0  ;;  %v5447_v45 = vrot.slane %v5106_v61, 6  ;;  %v4348_v59 = vadd.f32 %v4347_v25, %v4346_v62  ;;  %v3360_v14 = vadd.f32 %v8320_v26, %v7972_v23 }
 0x355   : > { %v4329_v1 = vadd.f32 %v4328_v21, %v4327_v18  ;;  %v5109_v53 = vmax.f32 %v4981_v43, 0.0  ;;  %v4340_v9 = vrot.slane %v4339_v46, 2  ;;  %v3375_v3 = vadd.f32 %v8320_v26, %v7994_v58 }
 0x356   : > { %v4358_v42 = vsel %vm3566_vm2, %v3551_v37, 0.0  ;;  %v5448_v52 = vsel %vm5260_vm4, %v5447_v45, %v5446_v34  ;;  %v4349_v40 = vrot.slane %v4348_v59, 1  ;;  %v3550_v28 = vmax.f32 %v3360_v14, 0.0 }
 0x357   : > { %v4980_v4 = vadd.f32 %v4726_v2, %v4329_v1  ;;  %v4359_v15 = vrot.slane %v4358_v42, 4  ;;  %v5453_v48 = vrot.slane %v5109_v53, 3  ;;  %v5450_v13 = vsel %vm5263_vm5, %v5449_v60, %v5448_v52 }
 0x358   : > { %v4341_v35 = vadd.f32 %v4340_v9, %v4339_v46  ;;  %v4350_v22 = vadd.f32 %v4349_v40, %v4348_v59  ;;  %v3553_v29 = vmax.f32 %v3375_v3, 0.0  ;;  %v4351_v55 = vsel %vm3566_vm2, %v3550_v28, 0.0 }
 0x359   : > { %v5108_v23 = vmax.f32 %v4980_v4, 0.0  ;;  %v4360_v47 = vadd.f32 %v4359_v15, %v4358_v42  ;;  %v3370_v58 = vadd.f32 %v8320_v26, %v7998_v36  ;;  %v3385_v2 = vadd.f32 %v8320_v26, %v8000_v32 }
 0x35a   : > { %v4342_v7 = vrot.slane %v4341_v35, 1  ;;  %v4983_v57 = vadd.f32 %v4729_v11, %v4350_v22  ;;  %v4352_v41 = vrot.slane %v4351_v55, 4  ;;  %v4372_v50 = vsel %vm3566_vm2, %v3553_v29, 0.0 }
 0x35b   : > { %v5451_v63 = vrot.slane %v5108_v23, 4  ;;  %v4361_v12 = vrot.slane %v4360_v47, 2  ;;  %v3552_v16 = vmax.f32 %v3370_v58, 0.0  ;;  %v3555_v49 = vmax.f32 %v3385_v2, 0.0 }
 0x35c   : > { %v4343_v17 = vadd.f32 %v4342_v7, %v4341_v35  ;;  %v4353_v18 = vadd.f32 %v4352_v41, %v4351_v55  ;;  %v4373_v54 = vrot.slane %v4372_v50, 4  ;;  %v5111_v38 = vmax.f32 %v4983_v57, 0.0 }
 0x35d   : > { %v5452_v20 = vsel %vm5266_vm6, %v5451_v63, %v5450_v13  ;;  %v4362_v24 = vadd.f32 %v4361_v12, %v4360_v47  ;;  %v4365_v32 = vsel %vm3566_vm2, %v3552_v16, 0.0  ;;  %v4386_v34 = vsel %vm3566_vm2, %v3555_v49, 0.0 }
 0x35e   : > { %v4982_v62 = vadd.f32 %v4728_v5, %v4343_v17  ;;  %v5454_v36 = vsel %vm5269_vm7, %v5453_v48, %v5452_v20  ;;  %v4354_v51 = vrot.slane %v4353_v18, 2  ;;  %v4366_v11 = vrot.slane %v4365_v32, 4 }
 0x35f   : > { %v4374_v8 = vadd.f32 %v4373_v54, %v4372_v50  ;;  %v3380_v61 = vadd.f32 %v8320_v26, %v8003_v6  ;;  %v4363_v21 = vrot.slane %v4362_v24, 1  ;;  %v4387_v43 = vrot.slane %v4386_v34, 4 }
 0x360   : > { %v5110_v56 = vmax.f32 %v4982_v62, 0.0  ;;  %v4355_v25 = vadd.f32 %v4354_v51, %v4353_v18  ;;  %v4367_v60 = vadd.f32 %v4366_v11, %v4365_v32  ;;  %v3395_v45 = vadd.f32 %v8320_v26, %v8028_v0 }
 0x361   : > { %v4375_v46 = vrot.slane %v4374_v8, 2  ;;  %v3554_v37 = vmax.f32 %v3380_v61, 0.0  ;;  %v5457_v1 = vrot.slane %v5111_v38, 1  ;;  %v4388_v53 = vadd.f32 %v4387_v43, %v4386_v34 }
 0x362   : > { %v5455_v5 = vrot.slane %v5110_v56, 2  ;;  %v4356_v59 = vrot.slane %v4355_v25, 1  ;;  %v4368_v14 = vrot.slane %v4367_v60, 2  ;;  %v3557_v3 = vmax.f32 %v3395_v45, 0.0 }
 0x363   : > { %v4376_v42 = vadd.f32 %v4375_v46, %v4374_v8  ;;  %v4379_v6 = vsel %vm3566_vm2, %v3554_v37, 0.0  ;;  %v4364_v4 = vadd.f32 %v4363_v21, %v4362_v24  ;;  %v4389_v15 = vrot.slane %v4388_v53, 2 }
 0x364   : > { %v5456_v9 = vsel %vm5272_vm8, %v5455_v5, %v5454_v36  ;;  %v4369_v40 = vadd.f32 %v4368_v14, %v4367_v60  ;;  %v4380_v13 = vrot.slane %v4379_v6, 4  ;;  %v4400_v0 = vsel %vm3566_vm2, %v3557_v3, 0.0 }
 0x365   : > { %v5458_v52 = vsel %vm5275_vm9, %v5457_v1, %v5456_v9  ;;  %v4377_v48 = vrot.slane %v4376_v42, 1  ;;  %v3390_v35 = vadd.f32 %v8320_v26, %v8037_v39  ;;  %v4390_v23 = vadd.f32 %v4389_v15, %v4388_v53 }
 0x366   : > { %5516 = vst.msk [vmem:[%s7862_s9 + $0x68] sm:$0xff] %vm3566_vm2, %v5458_v52  ;;  %v4370_v28 = vrot.slane %v4369_v40, 1  ;;  %v4401_v22 = vrot.slane %v4400_v0, 4  ;;  %v4608_v47 = vadd.f32 %v8184_v33, %v8039_v27  ;;  %v4357_v29 = vadd.f32 %v4356_v59, %v4355_v25 }
 0x367   : > { %v4378_v7 = vadd.f32 %v4377_v48, %v4376_v42  ;;  %v4381_v55 = vadd.f32 %v4380_v13, %v4379_v6  ;;  %v3556_v58 = vmax.f32 %v3390_v35, 0.0  ;;  %v4391_v63 = vrot.slane %v4390_v23, 1 }
 0x368   : > { %v4371_v2 = vadd.f32 %v4370_v28, %v4369_v40  ;;  %v4402_v57 = vadd.f32 %v4401_v22, %v4400_v0  ;;  %v4730_v12 = vrot.slane %v4608_v47, 1  ;;  %v4731_v50 = vrot.slane %v4608_v47, 2 }
 0x369   : > { %v4382_v41 = vrot.slane %v4381_v55, 2  ;;  %v4393_v17 = vsel %vm3566_vm2, %v3556_v58, 0.0  ;;  %v4732_v16 = vrot.slane %v4608_v47, 3  ;;  %v4392_v39 = vadd.f32 %v4391_v63, %v4390_v23 }
 0x36a   : > { %v4403_v49 = vrot.slane %v4402_v57, 2  ;;  %v4394_v20 = vrot.slane %v4393_v17, 4  ;;  %v3405_v24 = vadd.f32 %v8320_v26, %v8060_v19  ;;  %v4733_v18 = vrot.slane %v4608_v47, 4 }
 0x36b   : > { %v4383_v27 = vadd.f32 %v4382_v41, %v4381_v55  ;;  %v4734_v62 = vrot.slane %v4608_v47, 5  ;;  %v4736_v36 = vrot.slane %v4608_v47, 7  ;;  %v4984_v38 = vadd.f32 %v4608_v47, %v4357_v29 }
 0x36c   : > { %v4404_v54 = vadd.f32 %v4403_v49, %v4402_v57  ;;  %v4395_v32 = vadd.f32 %v4394_v20, %v4393_v17  ;;  %v4985_v51 = vadd.f32 %v4730_v12, %v4364_v4  ;;  %v4986_v56 = vadd.f32 %v4731_v50, %v4371_v2 }
 0x36d   : > { %v4384_v11 = vrot.slane %v4383_v27, 1  ;;  %v4987_v8 = vadd.f32 %v4732_v16, %v4378_v7  ;;  %v4989_v34 = vadd.f32 %v4734_v62, %v4392_v39  ;;  %v5112_v25 = vmax.f32 %v4984_v38, 0.0  ;;  %v8658_v39 = vld [vmem:[#allocation26_spill] sm:$0xff] }
 0x36e   : > { %v4405_v61 = vrot.slane %v4404_v54, 1  ;;  %v4396_v21 = vrot.slane %v4395_v32, 2  ;;  %v5113_v60 = vmax.f32 %v4985_v51, 0.0  ;;  %v4735_v5 = vrot.slane %v4608_v47, 6 }
 0x36f   : > { %v4385_v43 = vadd.f32 %v4384_v11, %v4383_v27  ;;  %v5114_v46 = vmax.f32 %v4986_v56, 0.0  ;;  %v5115_v19 = vmax.f32 %v4987_v8, 0.0  ;;  %v3559_v59 = vmax.f32 %v3405_v24, 0.0  ;;  %v8659_v11 = vld [vmem:[#allocation24_spill] sm:$0xff] }
 0x370   : > { %v4406_v37 = vadd.f32 %v4405_v61, %v4404_v54  ;;  %v4397_v45 = vadd.f32 %v4396_v21, %v4395_v32  ;;  %v5459_v1 = vrot.slane %v5113_v60, 7  ;;  %v5117_v53 = vmax.f32 %v4989_v34, 0.0 }
 0x371   : > { %v4988_v14 = vadd.f32 %v4733_v18, %v4385_v43  ;;  %v5461_v9 = vrot.slane %v5114_v46, 6  ;;  %v5463_v42 = vrot.slane %v5115_v19, 5  ;;  %v4414_v4 = vsel %vm3566_vm2, %v3559_v59, 0.0 }
 0x372   : > { %v4398_v6 = vrot.slane %v4397_v45, 1  ;;  %v4991_v3 = vadd.f32 %v4736_v36, %v4406_v37  ;;  %v5460_v52 = vsel %vm5257_vm3, %v5459_v1, %v5112_v25  ;;  %v8379_v40 = vadd.f32 %v8184_v33, %v8030_v30 }
 0x373   : > { %v5116_v15 = vmax.f32 %v4988_v14, 0.0  ;;  %v5462_v48 = vsel %vm5260_vm4, %v5461_v9, %v5460_v52  ;;  %v4415_v13 = vrot.slane %v4414_v4, 4  ;;  %v3400_v28 = vadd.f32 %v8320_v26, %v8070_v44 }
 0x374   : > { %v4399_v0 = vadd.f32 %v4398_v6, %v4397_v45  ;;  %v5464_v35 = vsel %vm5263_vm5, %v5463_v42, %v5462_v48  ;;  %v5467_v22 = vrot.slane %v5117_v53, 3  ;;  %v3415_v29 = vadd.f32 %v8320_v26, %v8088_v10 }
 0x375   : > { %v5465_v23 = vrot.slane %v5116_v15, 4  ;;  %v4416_v47 = vadd.f32 %v4415_v13, %v4414_v4  ;;  %v5119_v55 = vmax.f32 %v4991_v3, 0.0  ;;  %v3558_v30 = vmax.f32 %v3400_v28, 0.0  ;;  %v8661_v13 = vld [vmem:[#allocation50_spill] sm:$0xff] }
 0x376   : > { %v4990_v7 = vadd.f32 %v4735_v5, %v4399_v0  ;;  %v3410_v33 = vadd.f32 %v8320_v26, %v8093_v31  ;;  %v4737_v63 = vrot.slane %v8379_v40, 1  ;;  %v3561_v57 = vmax.f32 %v3415_v29, 0.0  ;;  %v8660_v5 = vld [vmem:[#allocation49_spill] sm:$0xff] }
 0x377   : > { %v5466_v58 = vsel %vm5266_vm6, %v5465_v23, %v5464_v35  ;;  %v4417_v2 = vrot.slane %v4416_v47, 2  ;;  %v4407_v41 = vsel %vm3566_vm2, %v3558_v30, 0.0  ;;  %v3425_v49 = vadd.f32 %v8320_v26, %v8658_v39 }
 0x378   : > { %v5118_v12 = vmax.f32 %v4990_v7, 0.0  ;;  %v5468_v44 = vsel %vm5269_vm7, %v5467_v22, %v5466_v58  ;;  %v3560_v17 = vmax.f32 %v3410_v33, 0.0  ;;  %v4408_v10 = vrot.slane %v4407_v41, 4 }
 0x379   : > { %v4418_v50 = vadd.f32 %v4417_v2, %v4416_v47  ;;  %v4428_v16 = vsel %vm3566_vm2, %v3561_v57, 0.0  ;;  %v5471_v20 = vrot.slane %v5119_v55, 1  ;;  %v3563_v54 = vmax.f32 %v3425_v49, 0.0 }
 0x37a   : > { %v5469_v31 = vrot.slane %v5118_v12, 2  ;;  %v4429_v24 = vrot.slane %v4428_v16, 4  ;;  %v4421_v27 = vsel %vm3566_vm2, %v3560_v17, 0.0  ;;  %v4409_v62 = vadd.f32 %v4408_v10, %v4407_v41 }
 0x37b   : > { %v4419_v18 = vrot.slane %v4418_v50, 1  ;;  %v4422_v36 = vrot.slane %v4421_v27, 4  ;;  %v4739_v51 = vrot.slane %v8379_v40, 3  ;;  %v3420_v56 = vadd.f32 %v8320_v26, %v8659_v11 }
 0x37c   : > { %v5470_v32 = vsel %vm5272_vm8, %v5469_v31, %v5468_v44  ;;  %v4430_v38 = vadd.f32 %v4429_v24, %v4428_v16  ;;  %v4410_v61 = vrot.slane %v4409_v62, 2  ;;  %v4442_v60 = vsel %vm3566_vm2, %v3563_v54, 0.0 }
 0x37d   : > { %v5472_v8 = vsel %vm5275_vm9, %v5471_v20, %v5470_v32  ;;  %v4420_v34 = vadd.f32 %v4419_v18, %v4418_v50  ;;  %v4423_v21 = vadd.f32 %v4422_v36, %v4421_v27  ;;  %v3562_v43 = vmax.f32 %v3420_v56, 0.0 }
 0x37e   : > { %5517 = vst.msk [vmem:[%s7862_s9 + $0x70] sm:$0xff] %vm3566_vm2, %v5472_v8  ;;  %v4431_v25 = vrot.slane %v4430_v38, 2  ;;  %v3435_v46 = vadd.f32 %v8320_v26, %v8660_v5  ;;  %v4411_v37 = vadd.f32 %v4410_v61, %v4409_v62  ;;  %v4443_v1 = vrot.slane %v4442_v60, 4 }
 0x37f   : > { %v4993_v19 = vadd.f32 %v4737_v63, %v4420_v34  ;;  %v4424_v45 = vrot.slane %v4423_v21, 2  ;;  %v4738_v14 = vrot.slane %v8379_v40, 2  ;;  %v4435_v53 = vsel %vm3566_vm2, %v3562_v43, 0.0 }
 0x380   : > { %v4432_v59 = vadd.f32 %v4431_v25, %v4430_v38  ;;  %v3565_v9 = vmax.f32 %v3435_v46, 0.0  ;;  %v4412_v6 = vrot.slane %v4411_v37, 1  ;;  %v4444_v52 = vadd.f32 %v4443_v1, %v4442_v60 }
 0x381   : > { %v5121_v42 = vmax.f32 %v4993_v19, 0.0  ;;  %v4425_v3 = vadd.f32 %v4424_v45, %v4423_v21  ;;  %v4436_v15 = vrot.slane %v4435_v53, 4  ;;  %v3430_v0 = vadd.f32 %v8320_v26, %v8661_v13 }
 0x382   : > { %v4433_v4 = vrot.slane %v4432_v59, 1  ;;  %v4456_v48 = vsel %vm3566_vm2, %v3565_v9, 0.0  ;;  %v4413_v35 = vadd.f32 %v4412_v6, %v4411_v37  ;;  %v4445_v23 = vrot.slane %v4444_v52, 2 }
 0x383   : > { %v4426_v28 = vrot.slane %v4425_v3, 1  ;;  %v4741_v22 = vrot.slane %v8379_v40, 5  ;;  %v4437_v29 = vadd.f32 %v4436_v15, %v4435_v53  ;;  %v4457_v7 = vrot.slane %v4456_v48, 4 }
 0x384   : > { %v4434_v47 = vadd.f32 %v4433_v4, %v4432_v59  ;;  %v3564_v55 = vmax.f32 %v3430_v0, 0.0  ;;  %v5473_v30 = vrot.slane %v5121_v42, 7  ;;  %v4992_v33 = vadd.f32 %v8379_v40, %v4413_v35 }
 0x385   : > { %v4427_v58 = vadd.f32 %v4426_v28, %v4425_v3  ;;  %v4446_v2 = vadd.f32 %v4445_v23, %v4444_v52  ;;  %v4438_v57 = vrot.slane %v4437_v29, 2  ;;  %v4458_v12 = vadd.f32 %v4457_v7, %v4456_v48 }
 0x386   : > { %v4995_v63 = vadd.f32 %v4739_v51, %v4434_v47  ;;  %v4449_v44 = vsel %vm3566_vm2, %v3564_v55, 0.0  ;;  %v5120_v26 = vmax.f32 %v4992_v33, 0.0  ;;  %v4740_v51 = vrot.slane %v8379_v40, 4 }
 0x387   : > { %v4994_v41 = vadd.f32 %v4738_v14, %v4427_v58  ;;  %v4447_v17 = vrot.slane %v4446_v2, 1  ;;  %v4450_v50 = vrot.slane %v4449_v44, 4  ;;  %v4439_v16 = vadd.f32 %v4438_v57, %v4437_v29 }
 0x388   : > { %v5123_v10 = vmax.f32 %v4995_v63, 0.0  ;;  %v4459_v39 = vrot.slane %v4458_v12, 2  ;;  %v5474_v49 = vsel %vm5257_vm3, %v5473_v30, %v5120_v26  ;;  %v4743_v25 = vrot.slane %v8379_v40, 7 }
 0x389   : > { %v5122_v31 = vmax.f32 %v4994_v41, 0.0  ;;  %v4448_v20 = vadd.f32 %v4447_v17, %v4446_v2  ;;  %v4451_v24 = vadd.f32 %v4450_v50, %v4449_v44  ;;  %v4440_v27 = vrot.slane %v4439_v16, 1 }
 0x38a   : > { %v4460_v18 = vadd.f32 %v4459_v39, %v4458_v12  ;;  %v5477_v32 = vrot.slane %v5123_v10, 5  ;;  %v4742_v37 = vrot.slane %v8379_v40, 6 }
 0x38b   : > { %v5475_v62 = vrot.slane %v5122_v31, 6  ;;  %v4997_v36 = vadd.f32 %v4741_v22, %v4448_v20  ;;  %v4452_v54 = vrot.slane %v4451_v24, 2  ;;  %v4441_v38 = vadd.f32 %v4440_v27, %v4439_v16 }
 0x38c   : > { %v4461_v11 = vrot.slane %v4460_v18, 1 }
 0x38d   : > { %v5476_v56 = vsel %vm5260_vm4, %v5475_v62, %v5474_v49  ;;  %v4453_v8 = vadd.f32 %v4452_v54, %v4451_v24  ;;  %v4996_v34 = vadd.f32 %v4740_v51, %v4441_v38  ;;  %v5125_v60 = vmax.f32 %v4997_v36, 0.0 }
 0x38e   : > { %v5478_v61 = vsel %vm5263_vm5, %v5477_v32, %v5476_v56  ;;  %v4462_v21 = vadd.f32 %v4461_v11, %v4460_v18 }
 0x38f   : > { %v4454_v43 = vrot.slane %v4453_v8, 1  ;;  %v5124_v5 = vmax.f32 %v4996_v34, 0.0  ;;  %v5481_v1 = vrot.slane %v5125_v60, 3 }
 0x390   : > { %v4999_v46 = vadd.f32 %v4743_v25, %v4462_v21 }
 0x391   : > { %v4455_v19 = vadd.f32 %v4454_v43, %v4453_v8  ;;  %v5479_v45 = vrot.slane %v5124_v5, 4 }
 0x392   : > { %v5127_v53 = vmax.f32 %v4999_v46, 0.0 }
 0x393   : > { %v4998_v59 = vadd.f32 %v4742_v37, %v4455_v19  ;;  %v5480_v14 = vsel %vm5266_vm6, %v5479_v45, %v5478_v61 }
 0x394   : > { %v5482_v42 = vsel %vm5269_vm7, %v5481_v1, %v5480_v14  ;;  %v5485_v3 = vrot.slane %v5127_v53, 1 }
 0x395   : > { %v5126_v9 = vmax.f32 %v4998_v59, 0.0 }
 0x397   : > { %v5483_v6 = vrot.slane %v5126_v9, 2 }
 0x399   : > { %v5484_v52 = vsel %vm5272_vm8, %v5483_v6, %v5482_v42 }
 0x39a   : > { %v5486_v4 = vsel %vm5275_vm9, %v5485_v3, %v5484_v52 }
 0x39b   : > { %5518 = vst.msk [vmem:[%s7862_s9 + $0x78] sm:$0xff] %vm3566_vm2, %v5486_v4 }
 0x39c PF: > { %s17_s24 = sadd.s32 1, %s6215_s24  }
 0x39d   : > { %p14_p5 = scmp.ge.s32.totalorder %s17_s24, 4  }
 0x39f   :  { %16 = sbr.rel (!%p14_p5) target bundleno = 1 (0x1), region = 81 }

</bundles_post_ra>
